<compile_context>
chip_gen: v7x
topology: tpu7x:2x2x1
jax: 0.10.0
libtpu: 0.0.40
codegen_flags: <defaults>
</compile_context>

<pallas_src>
import functools

import numpy as np
import jax
import jax.numpy as jnp
from jax.experimental import pallas as pl
from jax.experimental.pallas import tpu as pltpu

LN_EPS = 1e-5  # torch.nn.LayerNorm default


# ----------------------------------------------------------------------------
# Sinusoid positional encoding (same formula as the PyTorch helper).
# ----------------------------------------------------------------------------
def get_sinusoid_encoding_table(n_position, d_hid):
    def cal_angle(position, hid_idx):
        return position / np.power(10000, 2 * (hid_idx // 2) / d_hid)

    table = np.array(
        [[cal_angle(pos, j) for j in range(d_hid)] for pos in range(n_position)],
        dtype=np.float64,
    )
    table[:, 0::2] = np.sin(table[:, 0::2])
    table[:, 1::2] = np.cos(table[:, 1::2])
    return jnp.asarray(table, dtype=jnp.float32)


def _nbytes(*arrs):
    return int(sum(int(a.size) * a.dtype.itemsize for a in arrs))


# ----------------------------------------------------------------------------
# Fused FFT-block kernel: MHA + residual + LN + mask, conv-FFN + residual + LN + mask
# ----------------------------------------------------------------------------
def _make_fft_block_kernel(*, n_head, d_k, d_v, K1, pad1, K2, pad2, eps,
                           add_pos, mm_dtype):
    def kernel(*refs):
        it = iter(refs)
        x_ref = next(it)                              # (1, T, D)
        pos_ref = next(it) if add_pos else None       # (T, D) (first layer only)
        mrow_ref = next(it)                           # (1, 1, T) key-pad mask (1.0 = pad)
        mcol_ref = next(it)                           # (1, T, 1) same mask, column form
        wqkv_ref = next(it); bqkv_ref = next(it)      # fused QKV projection
        wo_ref = next(it); bo_ref = next(it)
        g1_ref = next(it); b1_ref = next(it)          # LayerNorm 1
        w1_ref = next(it); b1c_ref = next(it)         # conv1 (im2col) weight / bias
        w2_ref = next(it); b2c_ref = next(it)         # conv2 weight / bias
        g2_ref = next(it); b2_ref = next(it)          # LayerNorm 2
        o_ref = next(it)                              # (1, T, D) output
        attn_ref = next(it)                           # (T, H*d_v) VMEM scratch
        xpad_ref = next(it)                           # (T + 2*pad1, D) VMEM scratch
        hpad_ref = next(it) if K2 > 1 else None       # (T + 2*pad2, d_inner) scratch

        T, D = x_ref.shape[1], x_ref.shape[2]
        x = x_ref[0]                                  # (T, D), also the MHA residual
        if add_pos:
            x = x + pos_ref[...]

        key_pad = mrow_ref[0] > 0.5                   # (1, T)  True = padded key
        pad_col = mcol_ref[0] > 0.5                   # (T, 1)  True = padded time step

        # ---- multi-head self-attention (single fused QKV matmul) ----
        qkv = jnp.dot(x.astype(mm_dtype), wqkv_ref[...],
                      preferred_element_type=jnp.float32) + bqkv_ref[...]
        dq = n_head * d_k
        q, k, v = qkv[:, :dq], qkv[:, dq:2 * dq], qkv[:, 2 * dq:]
        inv_temp = 1.0 / (d_k ** 0.5)
        for h in range(n_head):                       # static unroll (n_head small)
            qh = q[:, h * d_k:(h + 1) * d_k].astype(mm_dtype)
            kh = k[:, h * d_k:(h + 1) * d_k].astype(mm_dtype)
            vh = v[:, h * d_v:(h + 1) * d_v].astype(mm_dtype)
            # contract last axes directly: no value-level kh.T transpose
            s = jax.lax.dot_general(qh, kh, (((1,), (1,)), ((), ())),
                                    preferred_element_type=jnp.float32) * inv_temp
            s = jnp.where(key_pad, -jnp.inf, s)       # masked_fill(mask, -inf)
            s_max = jnp.max(s, axis=-1, keepdims=True)
            p = jnp.exp(s - s_max)
            p = p / jnp.sum(p, axis=-1, keepdims=True)
            attn_ref[:, h * d_v:(h + 1) * d_v] = jnp.dot(
                p.astype(mm_dtype), vh,
                preferred_element_type=jnp.float32).astype(attn_ref.dtype)

        y = jnp.dot(attn_ref[...], wo_ref[...],
                    preferred_element_type=jnp.float32) + bo_ref[...]
        z = y + x                                     # residual add
        mean = jnp.mean(z, axis=-1, keepdims=True)
        var = jnp.mean(jnp.square(z - mean), axis=-1, keepdims=True)
        x1 = (z - mean) * jax.lax.rsqrt(var + eps) * g1_ref[...] + b1_ref[...]
        x1 = jnp.where(pad_col, 0.0, x1)              # masked_fill(mask, 0)

        # ---- position-wise conv feed-forward ----
        # Zero only the pad rows (every step: scratch is per-core and the centre
        # is fully rewritten; init-once under program_id==0 would be unsafe when
        # a "parallel" batch axis is split across TensorCores).
        if pad1 > 0:
            zpad = jnp.zeros((pad1, D), xpad_ref.dtype)
            xpad_ref[pl.ds(0, pad1), :] = zpad
            xpad_ref[pl.ds(T + pad1, pad1), :] = zpad
        xpad_ref[pl.ds(pad1, T), :] = x1.astype(xpad_ref.dtype)
        # im2col straight from the scratch ref: one (T, K1*D) @ (K1*D, d_inner) matmul.
        cols = [xpad_ref[pl.ds(kk, T), :] for kk in range(K1)]
        im2col = cols[0] if K1 == 1 else jnp.concatenate(cols, axis=-1)
        h1 = jnp.dot(im2col, w1_ref[...],
                     preferred_element_type=jnp.float32) + b1c_ref[...]
        h1 = jnp.maximum(h1, 0.0)                     # ReLU

        if K2 == 1:
            # Fast path: plain matmul, no hpad scratch / redundant VMEM traffic.
            y2 = jnp.dot(h1.astype(mm_dtype), w2_ref[...],
                         preferred_element_type=jnp.float32) + b2c_ref[...]
        else:
            d_inner = hpad_ref.shape[1]
            if pad2 > 0:
                zpad2 = jnp.zeros((pad2, d_inner), hpad_ref.dtype)
                hpad_ref[pl.ds(0, pad2), :] = zpad2
                hpad_ref[pl.ds(T + pad2, pad2), :] = zpad2
            hpad_ref[pl.ds(pad2, T), :] = h1.astype(hpad_ref.dtype)
            cols2 = [hpad_ref[pl.ds(kk, T), :] for kk in range(K2)]
            im2col2 = jnp.concatenate(cols2, axis=-1)
            y2 = jnp.dot(im2col2, w2_ref[...],
                         preferred_element_type=jnp.float32) + b2c_ref[...]

        # Residual + LayerNorm + masked_fill(mask, 0).
        z2 = y2 + x1
        mean2 = jnp.mean(z2, axis=-1, keepdims=True)
        var2 = jnp.mean(jnp.square(z2 - mean2), axis=-1, keepdims=True)
        out = (z2 - mean2) * jax.lax.rsqrt(var2 + eps) * g2_ref[...] + b2_ref[...]
        o_ref[0] = jnp.where(pad_col, 0.0, out).astype(o_ref.dtype)

    return kernel


def fft_block(x, mask_row, mask_col, lp, *, pos=None, mm_dtype=jnp.float32):
    """One fused FFT block as a single pallas_call, grid over batch."""
    B, T, D = x.shape
    H, d_k, d_v = lp["n_head"], lp["d_k"], lp["d_v"]
    K1, pad1, K2, pad2 = lp["K1"], lp["pad1"], lp["K2"], lp["pad2"]
    d_inner = lp["w1"].shape[-1]

    # Fused QKV weight: one wide (D, 2*H*dk + H*dv) matmul in the kernel.
    wqkv = jnp.concatenate([lp["wq"], lp["wk"], lp["wv"]], axis=1).astype(mm_dtype)
    bqkv = jnp.concatenate([lp["bq"], lp["bk"], lp["bv"]], axis=1)
    wo = lp["wo"].astype(mm_dtype)
    # Conv weights stored (K, C_in, C_out) -> (K*C_in, C_out): k-major, matches im2col.
    w1 = lp["w1"].reshape(K1 * D, d_inner).astype(mm_dtype)
    w2 = lp["w2"].reshape(K2 * d_inner, D).astype(mm_dtype)

    def full(a):
        return pl.BlockSpec(a.shape, lambda b, _nd=a.ndim: (0,) * _nd)

    inputs = [x]
    in_specs = [pl.BlockSpec((1, T, D), lambda b: (b, 0, 0))]
    if pos is not None:                                 # pos-enc add folded into layer 0
        inputs.append(pos)
        in_specs.append(pl.BlockSpec((T, D), lambda b: (0, 0)))
    inputs += [mask_row, mask_col,
               wqkv, bqkv, wo, lp["bo"], lp["ln1_g"], lp["ln1_b"],
               w1, lp["b1"], w2, lp["b2"], lp["ln2_g"], lp["ln2_b"]]
    in_specs += [pl.BlockSpec((1, 1, T), lambda b: (b, 0, 0)),
                 pl.BlockSpec((1, T, 1), lambda b: (b, 0, 0)),
                 full(wqkv), full(bqkv), full(wo), full(lp["bo"]),
                 full(lp["ln1_g"]), full(lp["ln1_b"]),
                 full(w1), full(lp["b1"]), full(w2), full(lp["b2"]),
                 full(lp["ln2_g"]), full(lp["ln2_b"])]

    scratch = [pltpu.VMEM((T, H * d_v), mm_dtype),         # per-head attention output
               pltpu.VMEM((T + 2 * pad1, D), mm_dtype)]     # padded input for conv1
    if K2 > 1:                                              # only allocated if needed
        scratch.append(pltpu.VMEM((T + 2 * pad2, d_inner), mm_dtype))

    kernel = _make_fft_block_kernel(
        n_head=H, d_k=d_k, d_v=d_v, K1=K1, pad1=pad1, K2=K2, pad2=pad2,
        eps=LN_EPS, add_pos=pos is not None, mm_dtype=mm_dtype)

    flops = B * (2 * T * D * wqkv.shape[1]
                 + 2 * H * T * T * (d_k + d_v)
                 + 2 * T * H * d_v * D
                 + 2 * T * (K1 * D) * d_inner
                 + 2 * T * (K2 * d_inner) * D)
    bytes_accessed = _nbytes(*inputs) + _nbytes(x)

    return pl.pallas_call(
        kernel,
        out_shape=jax.ShapeDtypeStruct((B, T, D), x.dtype),
        grid_spec=pltpu.PrefetchScalarGridSpec(
            num_scalar_prefetch=0,
            grid=(B,),
            in_specs=in_specs,
            out_specs=pl.BlockSpec((1, T, D), lambda b: (b, 0, 0)),
            scratch_shapes=scratch),
        compiler_params=pltpu.CompilerParams(
            dimension_semantics=("parallel",),
            vmem_limit_bytes=64 * 1024 * 1024),
        cost_estimate=pl.CostEstimate(flops=int(flops),
                                      transcendentals=int(B * H * T * T),
                                      bytes_accessed=int(bytes_accessed)),
    )(*inputs)


# ----------------------------------------------------------------------------
# Decoder forward (Pallas) and pure-JAX reference
# ----------------------------------------------------------------------------
def decoder_forward(enc_seq, mask, params, mm_dtype=jnp.float32):
    """enc_seq: (B, T, d_model) f32; mask: (B, T) bool (True = padding)."""
    B, T, D = enc_seq.shape
    # TODO(synk): the PyTorch eval branch for T > max_seq_len recomputes a longer
    # positional table and keeps the full length; only the T <= max_seq_len path here.
    max_len = min(T, params["max_seq_len"])
    x = enc_seq[:, :max_len, :]
    mask = mask[:, :max_len]
    pos = params["pos_enc"][:max_len, :]
    mask_f = mask.astype(jnp.float32)
    mask_row = mask_f.reshape(B, 1, max_len)          # key-padding mask for attention
    mask_col = mask_f.reshape(B, max_len, 1)          # same mask, time-column form
    for li, lp in enumerate(params["layers"]):
        x = fft_block(x, mask_row, mask_col, lp,
                      pos=pos if li == 0 else None, mm_dtype=mm_dtype)
    return x, mask


def _layer_norm_ref(z, g, b):
    mean = jnp.mean(z, axis=-1, keepdims=True)
    var = jnp.mean(jnp.square(z - mean), axis=-1, keepdims=True)
    return (z - mean) * jax.lax.rsqrt(var + LN_EPS) * g + b


def decoder_forward_ref(enc_seq, mask, params):
    B, T, D = enc_seq.shape
    x = enc_seq + params["pos_enc"][None, :T, :]
    pad_col = mask[:, :, None]
    for p in params["layers"]:
        H, dk, dv = p["n_head"], p["d_k"], p["d_v"]
        res = x
        q = (x @ p["wq"] + p["bq"]).reshape(B, T, H, dk).transpose(0, 2, 1, 3)
        k = (x @ p["wk"] + p["bk"]).reshape(B, T, H, dk).transpose(0, 2, 1, 3)
        v = (x @ p["wv"] + p["bv"]).reshape(B, T, H, dv).transpose(0, 2, 1, 3)
        s = jnp.einsum("bhqd,bhkd->bhqk", q, k) / (dk ** 0.5)
        s = jnp.where(mask[:, None, None, :], -jnp.inf, s)
        a = jax.nn.softmax(s, axis=-1)
        o = jnp.einsum("bhqk,bhkd->bhqd", a, v).transpose(0, 2, 1, 3).reshape(B, T, H * dv)
        x = _layer_norm_ref(o @ p["wo"] + p["bo"] + res, p["ln1_g"], p["ln1_b"])
        x = jnp.where(pad_col, 0.0, x)
        res = x
        h = jax.lax.conv_general_dilated(
            x, p["w1"], window_strides=(1,), padding=[(p["pad1"], p["pad1"])],
            dimension_numbers=("NWC", "WIO", "NWC")) + p["b1"]
        h = jnp.maximum(h, 0.0)
        y = jax.lax.conv_general_dilated(
            h, p["w2"], window_strides=(1,), padding=[(p["pad2"], p["pad2"])],
            dimension_numbers=("NWC", "WIO", "NWC")) + p["b2"]
        x = _layer_norm_ref(y + res, p["ln2_g"], p["ln2_b"])
        x = jnp.where(pad_col, 0.0, x)
    return x, mask


# ----------------------------------------------------------------------------
# Deterministic parameter construction
# ----------------------------------------------------------------------------
def init_decoder_params(key, *, n_layers, d_model, n_head, d_k, d_v, d_inner,
                        kernel_size, max_seq_len):
    K1, K2 = kernel_size
    layers = []
    for _ in range(n_layers):
        key, *ks = jax.random.split(key, 13)

        def dense(k, din, dout):
            return jax.random.normal(k, (din, dout), jnp.float32) / np.sqrt(din)

        lp = {
            "n_head": n_head, "d_k": d_k, "d_v": d_v,
            "K1": K1, "pad1": (K1 - 1) // 2, "K2": K2, "pad2": (K2 - 1) // 2,
            "wq": dense(ks[0], d_model, n_head * d_k),
            "bq": 0.02 * jax.random.normal(ks[1], (1, n_head * d_k), jnp.float32),
            "wk": dense(ks[2], d_model, n_head * d_k),
            "bk": 0.02 * jax.random.normal(ks[3], (1, n_head * d_k), jnp.float32),
            "wv": dense(ks[4], d_model, n_head * d_v),
            "bv": 0.02 * jax.random.normal(ks[5], (1, n_head * d_v), jnp.float32),
            "wo": dense(ks[6], n_head * d_v, d_model),
            "bo": 0.02 * jax.random.normal(ks[7], (1, d_model), jnp.float32),
            # conv weights stored as (K, C_in, C_out) == "WIO" layout
            "w1": jax.random.normal(ks[8], (K1, d_model, d_inner), jnp.float32)
                  / np.sqrt(K1 * d_model),
            "b1": 0.02 * jax.random.normal(ks[9], (1, d_inner), jnp.float32),
            "w2": jax.random.normal(ks[10], (K2, d_inner, d_model), jnp.float32)
                  / np.sqrt(K2 * d_inner),
            "b2": 0.02 * jax.random.normal(ks[11], (1, d_model), jnp.float32),
            "ln1_g": jnp.ones((1, d_model), jnp.float32),
            "ln1_b": jnp.zeros((1, d_model), jnp.float32),
            "ln2_g": jnp.ones((1, d_model), jnp.float32),
            "ln2_b": jnp.zeros((1, d_model), jnp.float32),
        }
        layers.append(lp)
    return {
        "layers": layers,
        "pos_enc": get_sinusoid_encoding_table(max_seq_len + 1, d_model),
        "max_seq_len": max_seq_len,
    }


if __name__ == "__main__":
    # Keep both the Pallas kernels and the JAX reference in true f32 matmuls
    # so the correctness check is tight.
    jax.config.update("jax_default_matmul_precision", "highest")

    key = jax.random.PRNGKey(0)
    k_x, k_p = jax.random.split(key)

    # Small shapes consistent with the Decoder config.
    B, T = 2, 16
    d_model, n_head = 32, 2
    d_k = d_v = d_model // n_head
    d_inner = 64
    kernel_size = (9, 1)          # FastSpeech2 conv_kernel_size
    n_layers = 2
    max_seq_len = 32

    enc_seq = jax.random.normal(k_x, (B, T, d_model), jnp.float32)
    lengths = jnp.array([T, 12], dtype=jnp.int32)
    mask = jnp.arange(T)[None, :] >= lengths[:, None]       # (B, T), True = padding

    params = init_decoder_params(
        k_p, n_layers=n_layers, d_model=d_model, n_head=n_head, d_k=d_k, d_v=d_v,
        d_inner=d_inner, kernel_size=kernel_size, max_seq_len=max_seq_len)

    out, out_mask = decoder_forward(enc_seq, mask, params)
    out = jax.block_until_ready(out)

    ref, _ = decoder_forward_ref(enc_seq, mask, params)
    assert out.shape == (B, T, d_model)
    assert out_mask.shape == (B, T)
    assert bool(jnp.all(jnp.isfinite(out)))
    err = float(jnp.max(jnp.abs(out - ref)))
    assert err < 3e-4, err

    print("KERNEL_OK")
</pallas_src>

<mosaic_0001>
module attributes {stable_mosaic.version = 11 : i64} {
  func.func @kernel(%arg0: i32, %arg1: memref<1x16x32xf32, #tpu.memory_space<vmem>>, %arg2: memref<16x32xf32, #tpu.memory_space<vmem>>, %arg3: memref<1x1x16xf32, #tpu.memory_space<vmem>>, %arg4: memref<1x16x1xf32, #tpu.memory_space<vmem>>, %arg5: memref<32x96xf32, #tpu.memory_space<vmem>>, %arg6: memref<1x96xf32, #tpu.memory_space<vmem>>, %arg7: memref<32x32xf32, #tpu.memory_space<vmem>>, %arg8: memref<1x32xf32, #tpu.memory_space<vmem>>, %arg9: memref<1x32xf32, #tpu.memory_space<vmem>>, %arg10: memref<1x32xf32, #tpu.memory_space<vmem>>, %arg11: memref<288x64xf32, #tpu.memory_space<vmem>>, %arg12: memref<1x64xf32, #tpu.memory_space<vmem>>, %arg13: memref<64x32xf32, #tpu.memory_space<vmem>>, %arg14: memref<1x32xf32, #tpu.memory_space<vmem>>, %arg15: memref<1x32xf32, #tpu.memory_space<vmem>>, %arg16: memref<1x32xf32, #tpu.memory_space<vmem>>, %arg17: memref<1x16x32xf32, #tpu.memory_space<vmem>>, %arg18: memref<16x32xf32, #tpu.memory_space<vmem>>, %arg19: memref<24x32xf32, #tpu.memory_space<vmem>>) attributes {dimension_semantics = [#tpu.dimension_semantics<parallel>], iteration_bounds = array<i64: 2>, scalar_prefetch = 0 : i64, scratch_operands = 2 : i64, tpu.core_type = #tpu.core_type<tc>, window_params = [{transform_indices = @transform_0, window_bounds = array<i64: 1, 16, 32>}, {pipeline_mode = #tpu.pipeline_mode<synchronous>, transform_indices = @transform_1, window_bounds = array<i64: 16, 32>}, {transform_indices = @transform_2, window_bounds = array<i64: 1, 1, 16>}, {transform_indices = @transform_3, window_bounds = array<i64: 1, 16, 1>}, {pipeline_mode = #tpu.pipeline_mode<synchronous>, transform_indices = @transform_4, window_bounds = array<i64: 32, 96>}, {pipeline_mode = #tpu.pipeline_mode<synchronous>, transform_indices = @transform_5, window_bounds = array<i64: 1, 96>}, {pipeline_mode = #tpu.pipeline_mode<synchronous>, transform_indices = @transform_6, window_bounds = array<i64: 32, 32>}, {pipeline_mode = #tpu.pipeline_mode<synchronous>, transform_indices = @transform_7, window_bounds = array<i64: 1, 32>}, {pipeline_mode = #tpu.pipeline_mode<synchronous>, transform_indices = @transform_8, window_bounds = array<i64: 1, 32>}, {pipeline_mode = #tpu.pipeline_mode<synchronous>, transform_indices = @transform_9, window_bounds = array<i64: 1, 32>}, {pipeline_mode = #tpu.pipeline_mode<synchronous>, transform_indices = @transform_10, window_bounds = array<i64: 288, 64>}, {pipeline_mode = #tpu.pipeline_mode<synchronous>, transform_indices = @transform_11, window_bounds = array<i64: 1, 64>}, {pipeline_mode = #tpu.pipeline_mode<synchronous>, transform_indices = @transform_12, window_bounds = array<i64: 64, 32>}, {pipeline_mode = #tpu.pipeline_mode<synchronous>, transform_indices = @transform_13, window_bounds = array<i64: 1, 32>}, {pipeline_mode = #tpu.pipeline_mode<synchronous>, transform_indices = @transform_14, window_bounds = array<i64: 1, 32>}, {pipeline_mode = #tpu.pipeline_mode<synchronous>, transform_indices = @transform_15, window_bounds = array<i64: 1, 32>}, {transform_indices = @transform_16, window_bounds = array<i64: 1, 16, 32>}]} {
    %c0 = arith.constant 0 : index
    %c0_0 = arith.constant 0 : index
    %c0_1 = arith.constant 0 : index
    %0 = vector.load %arg1[%c0, %c0_0, %c0_1] : memref<1x16x32xf32, #tpu.memory_space<vmem>>, vector<1x16x32xf32>
    %1 = vector.shape_cast %0 : vector<1x16x32xf32> to vector<16x32xf32>
    %c0_2 = arith.constant 0 : index
    %c0_3 = arith.constant 0 : index
    %2 = vector.load %arg2[%c0_2, %c0_3] : memref<16x32xf32, #tpu.memory_space<vmem>>, vector<16x32xf32>
    %3 = arith.addf %1, %2 : vector<16x32xf32>
    %c0_4 = arith.constant 0 : index
    %c0_5 = arith.constant 0 : index
    %c0_6 = arith.constant 0 : index
    %4 = vector.load %arg3[%c0_4, %c0_5, %c0_6] : memref<1x1x16xf32, #tpu.memory_space<vmem>>, vector<1x1x16xf32>
    %5 = vector.shape_cast %4 : vector<1x1x16xf32> to vector<1x16xf32>
    %cst = arith.constant 5.000000e-01 : f32
    %6 = vector.broadcast %cst : f32 to vector<1x16xf32>
    %7 = arith.cmpf ogt, %5, %6 : vector<1x16xf32>
    %c0_7 = arith.constant 0 : index
    %c0_8 = arith.constant 0 : index
    %c0_9 = arith.constant 0 : index
    %8 = vector.load %arg4[%c0_7, %c0_8, %c0_9] : memref<1x16x1xf32, #tpu.memory_space<vmem>>, vector<1x16x1xf32>
    %9 = vector.shape_cast %8 : vector<1x16x1xf32> to vector<16x1xf32>
    %cst_10 = arith.constant 5.000000e-01 : f32
    %10 = vector.broadcast %cst_10 : f32 to vector<16x1xf32>
    %11 = arith.cmpf ogt, %9, %10 : vector<16x1xf32>
    %c0_11 = arith.constant 0 : index
    %c0_12 = arith.constant 0 : index
    %12 = vector.load %arg5[%c0_11, %c0_12] : memref<32x96xf32, #tpu.memory_space<vmem>>, vector<32x96xf32>
    %cst_13 = arith.constant dense<0.000000e+00> : vector<16x96xf32>
    %13 = tpu.matmul %3, %12, %cst_13 {dimension_numbers = #tpu.dot_dimension_numbers<[1], [0], [0], [1], [0, 0, 1, 1], [], []>, precision = #tpu.contract_precision<fp32>} : vector<16x32xf32>, vector<32x96xf32>, vector<16x96xf32> -> vector<16x96xf32>
    %c0_14 = arith.constant 0 : index
    %c0_15 = arith.constant 0 : index
    %14 = vector.load %arg6[%c0_14, %c0_15] : memref<1x96xf32, #tpu.memory_space<vmem>>, vector<1x96xf32>
    %15 = vector.broadcast %14 : vector<1x96xf32> to vector<16x96xf32>
    %16 = arith.addf %13, %15 : vector<16x96xf32>
    %17 = vector.extract_strided_slice %16 {offsets = [0, 0], sizes = [16, 32], strides = [1, 1]} : vector<16x96xf32> to vector<16x32xf32>
    %18 = vector.extract_strided_slice %16 {offsets = [0, 32], sizes = [16, 32], strides = [1, 1]} : vector<16x96xf32> to vector<16x32xf32>
    %19 = vector.extract_strided_slice %16 {offsets = [0, 64], sizes = [16, 32], strides = [1, 1]} : vector<16x96xf32> to vector<16x32xf32>
    %20 = vector.extract_strided_slice %17 {offsets = [0, 0], sizes = [16, 16], strides = [1, 1]} : vector<16x32xf32> to vector<16x16xf32>
    %21 = vector.extract_strided_slice %18 {offsets = [0, 0], sizes = [16, 16], strides = [1, 1]} : vector<16x32xf32> to vector<16x16xf32>
    %22 = vector.extract_strided_slice %19 {offsets = [0, 0], sizes = [16, 16], strides = [1, 1]} : vector<16x32xf32> to vector<16x16xf32>
    %cst_16 = arith.constant dense<0.000000e+00> : vector<16x16xf32>
    %23 = tpu.matmul %20, %21, %cst_16 {dimension_numbers = #tpu.dot_dimension_numbers<[1], [1], [0], [0], [0, 0, 1, 0], [], []>, precision = #tpu.contract_precision<fp32>} : vector<16x16xf32>, vector<16x16xf32>, vector<16x16xf32> -> vector<16x16xf32>
    %cst_17 = arith.constant 2.500000e-01 : f32
    %24 = vector.broadcast %cst_17 : f32 to vector<16x16xf32>
    %25 = arith.mulf %23, %24 : vector<16x16xf32>
    %cst_18 = arith.constant 0xFF800000 : f32
    %26 = vector.shape_cast %7 : vector<1x16xi1> to vector<1x16xi1>
    %27 = vector.broadcast %26 : vector<1x16xi1> to vector<16x16xi1>
    %28 = vector.broadcast %cst_18 : f32 to vector<16x16xf32>
    %29 = arith.select %27, %28, %25 : vector<16x16xi1>, vector<16x16xf32>
    %cst_19 = arith.constant dense<0xFF800000> : vector<16xf32>
    %30 = vector.multi_reduction <maximumf>, %29, %cst_19 [1] : vector<16x16xf32> to vector<16xf32>
    %31 = vector.shape_cast %30 : vector<16xf32> to vector<16x1xf32>
    %32 = vector.broadcast %31 : vector<16x1xf32> to vector<16x16xf32>
    %33 = arith.subf %29, %32 : vector<16x16xf32>
    %34 = math.exp %33 : vector<16x16xf32>
    %cst_20 = arith.constant dense<0.000000e+00> : vector<16xf32>
    %35 = vector.multi_reduction <add>, %34, %cst_20 [1] : vector<16x16xf32> to vector<16xf32>
    %36 = vector.shape_cast %35 : vector<16xf32> to vector<16x1xf32>
    %37 = vector.broadcast %36 : vector<16x1xf32> to vector<16x16xf32>
    %38 = arith.divf %34, %37 : vector<16x16xf32>
    %cst_21 = arith.constant dense<0.000000e+00> : vector<16x16xf32>
    %39 = tpu.matmul %38, %22, %cst_21 {dimension_numbers = #tpu.dot_dimension_numbers<[1], [0], [0], [1], [0, 0, 1, 1], [], []>, precision = #tpu.contract_precision<fp32>} : vector<16x16xf32>, vector<16x16xf32>, vector<16x16xf32> -> vector<16x16xf32>
    %c0_22 = arith.constant 0 : index
    %c0_23 = arith.constant 0 : index
    %40 = vector.load %arg18[%c0_22, %c0_23] : memref<16x32xf32, #tpu.memory_space<vmem>>, vector<16x16xf32>
    tpu.vector_store %arg18[%c0_22, %c0_23], %39 {strides = array<i32>} : memref<16x32xf32, #tpu.memory_space<vmem>>, vector<16x16xf32>,
    %41 = vector.extract_strided_slice %17 {offsets = [0, 16], sizes = [16, 16], strides = [1, 1]} : vector<16x32xf32> to vector<16x16xf32>
    %42 = vector.extract_strided_slice %18 {offsets = [0, 16], sizes = [16, 16], strides = [1, 1]} : vector<16x32xf32> to vector<16x16xf32>
    %43 = vector.extract_strided_slice %19 {offsets = [0, 16], sizes = [16, 16], strides = [1, 1]} : vector<16x32xf32> to vector<16x16xf32>
    %cst_24 = arith.constant dense<0.000000e+00> : vector<16x16xf32>
    %44 = tpu.matmul %41, %42, %cst_24 {dimension_numbers = #tpu.dot_dimension_numbers<[1], [1], [0], [0], [0, 0, 1, 0], [], []>, precision = #tpu.contract_precision<fp32>} : vector<16x16xf32>, vector<16x16xf32>, vector<16x16xf32> -> vector<16x16xf32>
    %cst_25 = arith.constant 2.500000e-01 : f32
    %45 = vector.broadcast %cst_25 : f32 to vector<16x16xf32>
    %46 = arith.mulf %44, %45 : vector<16x16xf32>
    %cst_26 = arith.constant 0xFF800000 : f32
    %47 = vector.shape_cast %7 : vector<1x16xi1> to vector<1x16xi1>
    %48 = vector.broadcast %47 : vector<1x16xi1> to vector<16x16xi1>
    %49 = vector.broadcast %cst_26 : f32 to vector<16x16xf32>
    %50 = arith.select %48, %49, %46 : vector<16x16xi1>, vector<16x16xf32>
    %cst_27 = arith.constant dense<0xFF800000> : vector<16xf32>
    %51 = vector.multi_reduction <maximumf>, %50, %cst_27 [1] : vector<16x16xf32> to vector<16xf32>
    %52 = vector.shape_cast %51 : vector<16xf32> to vector<16x1xf32>
    %53 = vector.broadcast %52 : vector<16x1xf32> to vector<16x16xf32>
    %54 = arith.subf %50, %53 : vector<16x16xf32>
    %55 = math.exp %54 : vector<16x16xf32>
    %cst_28 = arith.constant dense<0.000000e+00> : vector<16xf32>
    %56 = vector.multi_reduction <add>, %55, %cst_28 [1] : vector<16x16xf32> to vector<16xf32>
    %57 = vector.shape_cast %56 : vector<16xf32> to vector<16x1xf32>
    %58 = vector.broadcast %57 : vector<16x1xf32> to vector<16x16xf32>
    %59 = arith.divf %55, %58 : vector<16x16xf32>
    %cst_29 = arith.constant dense<0.000000e+00> : vector<16x16xf32>
    %60 = tpu.matmul %59, %43, %cst_29 {dimension_numbers = #tpu.dot_dimension_numbers<[1], [0], [0], [1], [0, 0, 1, 1], [], []>, precision = #tpu.contract_precision<fp32>} : vector<16x16xf32>, vector<16x16xf32>, vector<16x16xf32> -> vector<16x16xf32>
    %c0_30 = arith.constant 0 : index
    %c16 = arith.constant 16 : index
    %61 = vector.load %arg18[%c0_30, %c16] : memref<16x32xf32, #tpu.memory_space<vmem>>, vector<16x16xf32>
    tpu.vector_store %arg18[%c0_30, %c16], %60 {strides = array<i32>} : memref<16x32xf32, #tpu.memory_space<vmem>>, vector<16x16xf32>,
    %c0_31 = arith.constant 0 : index
    %c0_32 = arith.constant 0 : index
    %62 = vector.load %arg18[%c0_31, %c0_32] : memref<16x32xf32, #tpu.memory_space<vmem>>, vector<16x32xf32>
    %c0_33 = arith.constant 0 : index
    %c0_34 = arith.constant 0 : index
    %63 = vector.load %arg7[%c0_33, %c0_34] : memref<32x32xf32, #tpu.memory_space<vmem>>, vector<32x32xf32>
    %cst_35 = arith.constant dense<0.000000e+00> : vector<16x32xf32>
    %64 = tpu.matmul %62, %63, %cst_35 {dimension_numbers = #tpu.dot_dimension_numbers<[1], [0], [0], [1], [0, 0, 1, 1], [], []>, precision = #tpu.contract_precision<fp32>} : vector<16x32xf32>, vector<32x32xf32>, vector<16x32xf32> -> vector<16x32xf32>
    %c0_36 = arith.constant 0 : index
    %c0_37 = arith.constant 0 : index
    %65 = vector.load %arg8[%c0_36, %c0_37] : memref<1x32xf32, #tpu.memory_space<vmem>>, vector<1x32xf32>
    %66 = vector.broadcast %65 : vector<1x32xf32> to vector<16x32xf32>
    %67 = arith.addf %64, %66 : vector<16x32xf32>
    %68 = arith.addf %67, %3 : vector<16x32xf32>
    %cst_38 = arith.constant dense<0.000000e+00> : vector<16xf32>
    %69 = vector.multi_reduction <add>, %68, %cst_38 [1] : vector<16x32xf32> to vector<16xf32>
    %70 = vector.shape_cast %69 : vector<16xf32> to vector<16x1xf32>
    %cst_39 = arith.constant 3.200000e+01 : f32
    %71 = vector.broadcast %cst_39 : f32 to vector<16x1xf32>
    %72 = arith.divf %70, %71 : vector<16x1xf32>
    %73 = vector.broadcast %72 : vector<16x1xf32> to vector<16x32xf32>
    %74 = arith.subf %68, %73 : vector<16x32xf32>
    %75 = arith.mulf %74, %74 : vector<16x32xf32>
    %cst_40 = arith.constant dense<0.000000e+00> : vector<16xf32>
    %76 = vector.multi_reduction <add>, %75, %cst_40 [1] : vector<16x32xf32> to vector<16xf32>
    %77 = vector.shape_cast %76 : vector<16xf32> to vector<16x1xf32>
    %cst_41 = arith.constant 3.200000e+01 : f32
    %78 = vector.broadcast %cst_41 : f32 to vector<16x1xf32>
    %79 = arith.divf %77, %78 : vector<16x1xf32>
    %80 = vector.broadcast %72 : vector<16x1xf32> to vector<16x32xf32>
    %81 = arith.subf %68, %80 : vector<16x32xf32>
    %cst_42 = arith.constant 9.99999974E-6 : f32
    %82 = vector.broadcast %cst_42 : f32 to vector<16x1xf32>
    %83 = arith.addf %79, %82 : vector<16x1xf32>
    %84 = math.rsqrt %83 : vector<16x1xf32>
    %85 = vector.broadcast %84 : vector<16x1xf32> to vector<16x32xf32>
    %86 = arith.mulf %81, %85 : vector<16x32xf32>
    %c0_43 = arith.constant 0 : index
    %c0_44 = arith.constant 0 : index
    %87 = vector.load %arg9[%c0_43, %c0_44] : memref<1x32xf32, #tpu.memory_space<vmem>>, vector<1x32xf32>
    %88 = vector.broadcast %87 : vector<1x32xf32> to vector<16x32xf32>
    %89 = arith.mulf %86, %88 : vector<16x32xf32>
    %c0_45 = arith.constant 0 : index
    %c0_46 = arith.constant 0 : index
    %90 = vector.load %arg10[%c0_45, %c0_46] : memref<1x32xf32, #tpu.memory_space<vmem>>, vector<1x32xf32>
    %91 = vector.broadcast %90 : vector<1x32xf32> to vector<16x32xf32>
    %92 = arith.addf %89, %91 : vector<16x32xf32>
    %cst_47 = arith.constant 0.000000e+00 : f32
    %93 = vector.shape_cast %11 : vector<16x1xi1> to vector<16x1xi1>
    %94 = vector.broadcast %93 : vector<16x1xi1> to vector<16x32xi1>
    %95 = vector.broadcast %cst_47 : f32 to vector<16x32xf32>
    %96 = arith.select %94, %95, %92 : vector<16x32xi1>, vector<16x32xf32>
    %cst_48 = arith.constant 0.000000e+00 : f32
    %97 = vector.broadcast %cst_48 : f32 to vector<4x32xf32>
    %c0_49 = arith.constant 0 : index
    %c0_50 = arith.constant 0 : index
    %98 = vector.load %arg19[%c0_49, %c0_50] : memref<24x32xf32, #tpu.memory_space<vmem>>, vector<4x32xf32>
    tpu.vector_store %arg19[%c0_49, %c0_50], %97 {strides = array<i32>} : memref<24x32xf32, #tpu.memory_space<vmem>>, vector<4x32xf32>,
    %c20 = arith.constant 20 : index
    %c0_51 = arith.constant 0 : index
    %99 = vector.load %arg19[%c20, %c0_51] : memref<24x32xf32, #tpu.memory_space<vmem>>, vector<4x32xf32>
    tpu.vector_store %arg19[%c20, %c0_51], %97 {strides = array<i32>} : memref<24x32xf32, #tpu.memory_space<vmem>>, vector<4x32xf32>,
    %c4 = arith.constant 4 : index
    %c0_52 = arith.constant 0 : index
    %100 = vector.load %arg19[%c4, %c0_52] : memref<24x32xf32, #tpu.memory_space<vmem>>, vector<16x32xf32>
    tpu.vector_store %arg19[%c4, %c0_52], %96 {strides = array<i32>} : memref<24x32xf32, #tpu.memory_space<vmem>>, vector<16x32xf32>,
    %c0_53 = arith.constant 0 : index
    %c0_54 = arith.constant 0 : index
    %101 = vector.load %arg19[%c0_53, %c0_54] : memref<24x32xf32, #tpu.memory_space<vmem>>, vector<16x32xf32>
    %c1 = arith.constant 1 : index
    %c0_55 = arith.constant 0 : index
    %102 = vector.load %arg19[%c1, %c0_55] : memref<24x32xf32, #tpu.memory_space<vmem>>, vector<16x32xf32>
    %c2 = arith.constant 2 : index
    %c0_56 = arith.constant 0 : index
    %103 = vector.load %arg19[%c2, %c0_56] : memref<24x32xf32, #tpu.memory_space<vmem>>, vector<16x32xf32>
    %c3 = arith.constant 3 : index
    %c0_57 = arith.constant 0 : index
    %104 = vector.load %arg19[%c3, %c0_57] : memref<24x32xf32, #tpu.memory_space<vmem>>, vector<16x32xf32>
    %c4_58 = arith.constant 4 : index
    %c0_59 = arith.constant 0 : index
    %105 = vector.load %arg19[%c4_58, %c0_59] : memref<24x32xf32, #tpu.memory_space<vmem>>, vector<16x32xf32>
    %c5 = arith.constant 5 : index
    %c0_60 = arith.constant 0 : index
    %106 = vector.load %arg19[%c5, %c0_60] : memref<24x32xf32, #tpu.memory_space<vmem>>, vector<16x32xf32>
    %c6 = arith.constant 6 : index
    %c0_61 = arith.constant 0 : index
    %107 = vector.load %arg19[%c6, %c0_61] : memref<24x32xf32, #tpu.memory_space<vmem>>, vector<16x32xf32>
    %c7 = arith.constant 7 : index
    %c0_62 = arith.constant 0 : index
    %108 = vector.load %arg19[%c7, %c0_62] : memref<24x32xf32, #tpu.memory_space<vmem>>, vector<16x32xf32>
    %c8 = arith.constant 8 : index
    %c0_63 = arith.constant 0 : index
    %109 = vector.load %arg19[%c8, %c0_63] : memref<24x32xf32, #tpu.memory_space<vmem>>, vector<16x32xf32>
    %110 = tpu.concatenate %101, %102, %103, %104, %105, %106, %107, %108, %109 in 1 : vector<16x32xf32>, vector<16x32xf32>, vector<16x32xf32>, vector<16x32xf32>, vector<16x32xf32>, vector<16x32xf32>, vector<16x32xf32>, vector<16x32xf32>, vector<16x32xf32> -> vector<16x288xf32>
    %c0_64 = arith.constant 0 : index
    %c0_65 = arith.constant 0 : index
    %111 = vector.load %arg11[%c0_64, %c0_65] : memref<288x64xf32, #tpu.memory_space<vmem>>, vector<288x64xf32>
    %cst_66 = arith.constant dense<0.000000e+00> : vector<16x64xf32>
    %112 = tpu.matmul %110, %111, %cst_66 {dimension_numbers = #tpu.dot_dimension_numbers<[1], [0], [0], [1], [0, 0, 1, 1], [], []>, precision = #tpu.contract_precision<fp32>} : vector<16x288xf32>, vector<288x64xf32>, vector<16x64xf32> -> vector<16x64xf32>
    %c0_67 = arith.constant 0 : index
    %c0_68 = arith.constant 0 : index
    %113 = vector.load %arg12[%c0_67, %c0_68] : memref<1x64xf32, #tpu.memory_space<vmem>>, vector<1x64xf32>
    %114 = vector.broadcast %113 : vector<1x64xf32> to vector<16x64xf32>
    %115 = arith.addf %112, %114 : vector<16x64xf32>
    %cst_69 = arith.constant 0.000000e+00 : f32
    %116 = vector.broadcast %cst_69 : f32 to vector<16x64xf32>
    %117 = arith.maximumf %115, %116 : vector<16x64xf32>
    %c0_70 = arith.constant 0 : index
    %c0_71 = arith.constant 0 : index
    %118 = vector.load %arg13[%c0_70, %c0_71] : memref<64x32xf32, #tpu.memory_space<vmem>>, vector<64x32xf32>
    %cst_72 = arith.constant dense<0.000000e+00> : vector<16x32xf32>
    %119 = tpu.matmul %117, %118, %cst_72 {dimension_numbers = #tpu.dot_dimension_numbers<[1], [0], [0], [1], [0, 0, 1, 1], [], []>, precision = #tpu.contract_precision<fp32>} : vector<16x64xf32>, vector<64x32xf32>, vector<16x32xf32> -> vector<16x32xf32>
    %c0_73 = arith.constant 0 : index
    %c0_74 = arith.constant 0 : index
    %120 = vector.load %arg14[%c0_73, %c0_74] : memref<1x32xf32, #tpu.memory_space<vmem>>, vector<1x32xf32>
    %121 = vector.broadcast %120 : vector<1x32xf32> to vector<16x32xf32>
    %122 = arith.addf %119, %121 : vector<16x32xf32>
    %123 = arith.addf %122, %96 : vector<16x32xf32>
    %cst_75 = arith.constant dense<0.000000e+00> : vector<16xf32>
    %124 = vector.multi_reduction <add>, %123, %cst_75 [1] : vector<16x32xf32> to vector<16xf32>
    %125 = vector.shape_cast %124 : vector<16xf32> to vector<16x1xf32>
    %cst_76 = arith.constant 3.200000e+01 : f32
    %126 = vector.broadcast %cst_76 : f32 to vector<16x1xf32>
    %127 = arith.divf %125, %126 : vector<16x1xf32>
    %128 = vector.broadcast %127 : vector<16x1xf32> to vector<16x32xf32>
    %129 = arith.subf %123, %128 : vector<16x32xf32>
    %130 = arith.mulf %129, %129 : vector<16x32xf32>
    %cst_77 = arith.constant dense<0.000000e+00> : vector<16xf32>
    %131 = vector.multi_reduction <add>, %130, %cst_77 [1] : vector<16x32xf32> to vector<16xf32>
    %132 = vector.shape_cast %131 : vector<16xf32> to vector<16x1xf32>
    %cst_78 = arith.constant 3.200000e+01 : f32
    %133 = vector.broadcast %cst_78 : f32 to vector<16x1xf32>
    %134 = arith.divf %132, %133 : vector<16x1xf32>
    %135 = vector.broadcast %127 : vector<16x1xf32> to vector<16x32xf32>
    %136 = arith.subf %123, %135 : vector<16x32xf32>
    %cst_79 = arith.constant 9.99999974E-6 : f32
    %137 = vector.broadcast %cst_79 : f32 to vector<16x1xf32>
    %138 = arith.addf %134, %137 : vector<16x1xf32>
    %139 = math.rsqrt %138 : vector<16x1xf32>
    %140 = vector.broadcast %139 : vector<16x1xf32> to vector<16x32xf32>
    %141 = arith.mulf %136, %140 : vector<16x32xf32>
    %c0_80 = arith.constant 0 : index
    %c0_81 = arith.constant 0 : index
    %142 = vector.load %arg15[%c0_80, %c0_81] : memref<1x32xf32, #tpu.memory_space<vmem>>, vector<1x32xf32>
    %143 = vector.broadcast %142 : vector<1x32xf32> to vector<16x32xf32>
    %144 = arith.mulf %141, %143 : vector<16x32xf32>
    %c0_82 = arith.constant 0 : index
    %c0_83 = arith.constant 0 : index
    %145 = vector.load %arg16[%c0_82, %c0_83] : memref<1x32xf32, #tpu.memory_space<vmem>>, vector<1x32xf32>
    %146 = vector.broadcast %145 : vector<1x32xf32> to vector<16x32xf32>
    %147 = arith.addf %144, %146 : vector<16x32xf32>
    %cst_84 = arith.constant 0.000000e+00 : f32
    %148 = vector.shape_cast %11 : vector<16x1xi1> to vector<16x1xi1>
    %149 = vector.broadcast %148 : vector<16x1xi1> to vector<16x32xi1>
    %150 = vector.broadcast %cst_84 : f32 to vector<16x32xf32>
    %151 = arith.select %149, %150, %147 : vector<16x32xi1>, vector<16x32xf32>
    %c0_85 = arith.constant 0 : index
    %c0_86 = arith.constant 0 : index
    %c0_87 = arith.constant 0 : index
    %152 = vector.load %arg17[%c0_85, %c0_86, %c0_87] : memref<1x16x32xf32, #tpu.memory_space<vmem>>, vector<1x16x32xf32>
    %153 = vector.shape_cast %152 : vector<1x16x32xf32> to vector<16x32xf32>
    %154 = vector.shape_cast %151 : vector<16x32xf32> to vector<1x16x32xf32>
    tpu.vector_store %arg17[%c0_85, %c0_86, %c0_87], %154 {strides = array<i32>} : memref<1x16x32xf32, #tpu.memory_space<vmem>>, vector<1x16x32xf32>,
    return
  }
  func.func @transform_0(%arg0: i32) -> (i32, i32, i32) {
    %c0_i32 = arith.constant 0 : i32
    %c0_i32_0 = arith.constant 0 : i32
    %c0_i32_1 = arith.constant 0 : i32
    return %arg0, %c0_i32, %c0_i32_0 : i32, i32, i32
  }
  func.func @transform_1(%arg0: i32) -> (i32, i32) {
    %c0_i32 = arith.constant 0 : i32
    %c0_i32_0 = arith.constant 0 : i32
    %c0_i32_1 = arith.constant 0 : i32
    return %c0_i32, %c0_i32_0 : i32, i32
  }
  func.func @transform_2(%arg0: i32) -> (i32, i32, i32) {
    %c0_i32 = arith.constant 0 : i32
    %c0_i32_0 = arith.constant 0 : i32
    %c0_i32_1 = arith.constant 0 : i32
    return %arg0, %c0_i32, %c0_i32_0 : i32, i32, i32
  }
  func.func @transform_3(%arg0: i32) -> (i32, i32, i32) {
    %c0_i32 = arith.constant 0 : i32
    %c0_i32_0 = arith.constant 0 : i32
    %c0_i32_1 = arith.constant 0 : i32
    return %arg0, %c0_i32, %c0_i32_0 : i32, i32, i32
  }
  func.func @transform_4(%arg0: i32) -> (i32, i32) {
    %c0_i32 = arith.constant 0 : i32
    %c0_i32_0 = arith.constant 0 : i32
    %c0_i32_1 = arith.constant 0 : i32
    return %c0_i32, %c0_i32_0 : i32, i32
  }
  func.func @transform_5(%arg0: i32) -> (i32, i32) {
    %c0_i32 = arith.constant 0 : i32
    %c0_i32_0 = arith.constant 0 : i32
    %c0_i32_1 = arith.constant 0 : i32
    return %c0_i32, %c0_i32_0 : i32, i32
  }
  func.func @transform_6(%arg0: i32) -> (i32, i32) {
    %c0_i32 = arith.constant 0 : i32
    %c0_i32_0 = arith.constant 0 : i32
    %c0_i32_1 = arith.constant 0 : i32
    return %c0_i32, %c0_i32_0 : i32, i32
  }
  func.func @transform_7(%arg0: i32) -> (i32, i32) {
    %c0_i32 = arith.constant 0 : i32
    %c0_i32_0 = arith.constant 0 : i32
    %c0_i32_1 = arith.constant 0 : i32
    return %c0_i32, %c0_i32_0 : i32, i32
  }
  func.func @transform_8(%arg0: i32) -> (i32, i32) {
    %c0_i32 = arith.constant 0 : i32
    %c0_i32_0 = arith.constant 0 : i32
    %c0_i32_1 = arith.constant 0 : i32
    return %c0_i32, %c0_i32_0 : i32, i32
  }
  func.func @transform_9(%arg0: i32) -> (i32, i32) {
    %c0_i32 = arith.constant 0 : i32
    %c0_i32_0 = arith.constant 0 : i32
    %c0_i32_1 = arith.constant 0 : i32
    return %c0_i32, %c0_i32_0 : i32, i32
  }
  func.func @transform_10(%arg0: i32) -> (i32, i32) {
    %c0_i32 = arith.constant 0 : i32
    %c0_i32_0 = arith.constant 0 : i32
    %c0_i32_1 = arith.constant 0 : i32
    return %c0_i32, %c0_i32_0 : i32, i32
  }
  func.func @transform_11(%arg0: i32) -> (i32, i32) {
    %c0_i32 = arith.constant 0 : i32
    %c0_i32_0 = arith.constant 0 : i32
    %c0_i32_1 = arith.constant 0 : i32
    return %c0_i32, %c0_i32_0 : i32, i32
  }
  func.func @transform_12(%arg0: i32) -> (i32, i32) {
    %c0_i32 = arith.constant 0 : i32
    %c0_i32_0 = arith.constant 0 : i32
    %c0_i32_1 = arith.constant 0 : i32
    return %c0_i32, %c0_i32_0 : i32, i32
  }
  func.func @transform_13(%arg0: i32) -> (i32, i32) {
    %c0_i32 = arith.constant 0 : i32
    %c0_i32_0 = arith.constant 0 : i32
    %c0_i32_1 = arith.constant 0 : i32
    return %c0_i32, %c0_i32_0 : i32, i32
  }
  func.func @transform_14(%arg0: i32) -> (i32, i32) {
    %c0_i32 = arith.constant 0 : i32
    %c0_i32_0 = arith.constant 0 : i32
    %c0_i32_1 = arith.constant 0 : i32
    return %c0_i32, %c0_i32_0 : i32, i32
  }
  func.func @transform_15(%arg0: i32) -> (i32, i32) {
    %c0_i32 = arith.constant 0 : i32
    %c0_i32_0 = arith.constant 0 : i32
    %c0_i32_1 = arith.constant 0 : i32
    return %c0_i32, %c0_i32_0 : i32, i32
  }
  func.func @transform_16(%arg0: i32) -> (i32, i32, i32) {
    %c0_i32 = arith.constant 0 : i32
    %c0_i32_0 = arith.constant 0 : i32
    %c0_i32_1 = arith.constant 0 : i32
    return %arg0, %c0_i32, %c0_i32_0 : i32, i32, i32
  }
}

</mosaic_0001>

<bundles_post_ra>
// kernel: tpu_custom_call.1
= control target key start
LH: loop header
LB: loop body
LE: loop exit
PB: predicated region body
PF: predicated region fallthrough
CT: control target
= control target key end

     0   :  { %s10626_s0 = inlined_call_operand.hbm [shape: f32[2,16,32], index: 0, kind: input, shape index: {}]   ;;  %s10627_s1 = inlined_call_operand.hbm [shape: f32[16,32], index: 1, kind: input, shape index: {}]   ;;  %s10628_s2 = inlined_call_operand.hbm [shape: f32[2,1,16], index: 2, kind: input, shape index: {}]   ;;  %s10629_s3 = inlined_call_operand.hbm [shape: f32[2,16,1], index: 3, kind: input, shape index: {}]   ;;  %s10630_s4 = inlined_call_operand.hbm [shape: f32[32,96], index: 4, kind: input, shape index: {}]   ;;  %s10631_s5 = inlined_call_operand.hbm [shape: f32[1,96], index: 5, kind: input, shape index: {}]   ;;  %s10632_s6 = inlined_call_operand.hbm [shape: f32[32,32], index: 6, kind: input, shape index: {}]   ;;  %s10633_s7 = inlined_call_operand.hbm [shape: f32[1,32], index: 7, kind: input, shape index: {}]   ;;  %s10634_s8 = inlined_call_operand.hbm [shape: f32[1,32], index: 8, kind: input, shape index: {}]   ;;  %s10635_s9 = inlined_call_operand.hbm [shape: f32[1,32], index: 9, kind: input, shape index: {}]   ;;  %s10636_s10 = inlined_call_operand.hbm [shape: f32[288,64], index: 10, kind: input, shape index: {}]   ;;  %s10637_s11 = inlined_call_operand.hbm [shape: f32[1,64], index: 11, kind: input, shape index: {}]   ;;  %s10638_s12 = inlined_call_operand.hbm [shape: f32[64,32], index: 12, kind: input, shape index: {}]   ;;  %s10639_s13 = inlined_call_operand.hbm [shape: f32[1,32], index: 13, kind: input, shape index: {}]   ;;  %s10640_s14 = inlined_call_operand.hbm [shape: f32[1,32], index: 14, kind: input, shape index: {}]   ;;  %s10641_s15 = inlined_call_operand.hbm [shape: f32[1,32], index: 15, kind: input, shape index: {}]   ;;  %s10642_s16 = inlined_call_operand.hbm [shape: f32[2,16,32], index: 16, kind: output, shape index: {}]  }
   0x1   :  { %10733 = sst [smem:[#allocation62_spill]] %s10626_s0 }
   0x2   :  { %10734 = sst [smem:[#allocation63_spill]] %s10627_s1 }
   0x3   :  { %10735 = sst [smem:[#allocation64_spill]] %s10628_s2 }
   0x4   :  { %10736 = sst [smem:[#allocation65_spill]] %s10630_s4 }
   0x5   :  { %10737 = sst [smem:[#allocation66_spill]] %s10631_s5 }
   0x6   :  { %10738 = sst [smem:[#allocation67_spill]] %s10632_s6 }
   0x7   :  { %10739 = sst [smem:[#allocation68_spill]] %s10633_s7 }
   0x8   :  { %10740 = sst [smem:[#allocation69_spill]] %s10634_s8 }
   0x9   :  { %10741 = sst [smem:[#allocation70_spill]] %s10635_s9 }
   0xa   :  { %10742 = sst [smem:[#allocation71_spill]] %s10636_s10 }
   0xb   :  { %10743 = sst [smem:[#allocation72_spill]] %s10638_s12 }
   0xc   :  { %10744 = sst [smem:[#allocation73_spill]] %s10640_s14 }
   0xd   :  { %10745 = sst [smem:[#allocation74_spill]] %s10641_s15 }
   0xe   :  { %10746 = sst [smem:[#allocation75_spill]] %s10642_s16 }
   0xf   :  { %21 = vsyncpa [#allocation5], 0 }
  0x10   :  { %23 = vsyncpa [#allocation5 + $0x1], 0 }
  0x11   :  { %24 = vsyncpa [#allocation8], 0 }
  0x12   :  { %25 = vsyncpa [#allocation13], 0 }
  0x13   :  { %26 = vsyncpa [#allocation16], 0 }
  0x14   :  { %27 = vsyncpa [#allocation19], 0 }
  0x15   :  { %28 = vsyncpa [#allocation22], 0 }
  0x16   :  { %29 = vsyncpa [#allocation25], 0 }
  0x17   :  { %30 = vsyncpa [#allocation28], 0 }
  0x18   :  { %31 = vsyncpa [#allocation6], 0 }
  0x19   :  { %33 = vsyncpa [#allocation6 + $0x1], 0  ;;  %s9102_s21 = smov 0   ;;  %s9104_s22 = smov 0  }
  0x1a   :  { %s9106_s23 = smov 0   ;;  %s9108_s24 = smov 0  }
  0x1b LB: > { %10747 = sst [smem:[#allocation41_spill]] %s8973_s21  ;;  %s9123_s25 = sadd.s32 4294967295, %s8985_s24   ;;  %s8985_s24 = sphi %s9108_s24, %s10888_s24   ;;  %s8981_s23 = sphi %s9106_s23, %s10892_s23   ;;  %s8977_s22 = sphi %s9104_s22, %s10891_s22   ;;  %s8973_s21 = sphi %s9102_s21, %s10889_s21  }
  0x1c   : > { %10748 = sst [smem:[#allocation42_spill]] %s8977_s22  ;;  %s6559_s26 = sadd.s32 4294967294, %s8985_s24  }
  0x1d   : > { %10749 = sst [smem:[#allocation43_spill]] %s9123_s25  ;;  %s9127_s27 = sadd.s32 1, %s8985_s24  }
  0x1e   : > { %10750 = sst [smem:[#allocation44_spill]] %s9127_s27  ;;  %s46_s28 = sadd.s32 1, %s8981_s23 }
  0x1f   : > { %s43_s29 = ssub.s32 %s8985_s24, %s9127_s27  ;;  %p53_p0 = scmp.ne.s32.totalorder %s8981_s23, %s8977_s22 }
  0x20   : > { %p44_p1 = scmp.eq.s32.totalorder %s43_s29, 0  ;;  %p54_p2 = scmp.eq.s32.totalorder %s8985_s24, 0 }
  0x21   : > { %p59_p3 = scmp.ne.s32.totalorder %s8977_s22, %s8973_s21  ;;  %p10644_p4 = scmp.eq.s32.totalorder %s9123_s25, 0 }
  0x22   : > { %s9139_s30 = scalar_select %p44_p1, %s8981_s23, %s46_s28  }
  0x23   : > { %p9141_p5 = por %p54_p2, %p53_p0  ;;  %p9147_p6 = por %p10644_p4, %p59_p3 }
  0x24   : > { %10751 = sst [smem:[#allocation45_spill]] %s9139_s30  ;;  %p408_p7 = scmp.eq.s32.totalorder %s9123_s25, 1 }
  0x25   : > { %s10752_s0 = scalar_select %p9141_p5, 1, 0 }
  0x26   : > { %s10753_s17 = scalar_select %p9147_p6, 1, 0 }
  0x27   : > { %p414_p8 = scmp.eq.s32.totalorder %s6559_s26, 1  ;;  %p6560_p9 = scmp.ge.s32.totalorder %s8985_s24, 1 }
  0x28   : > { %10754 = sst [smem:[#allocation46_spill]] %s10753_s17  ;;  %p421_p10 = scmp.lt.s32.totalorder %s8985_s24, 3 }
  0x29   : > { %p9154_p11 = por %p408_p7, %p53_p0  ;;  %p9158_p12 = por %p414_p8, %p59_p3 }
  0x2a   : > { %p9162_p13 = pnand %p6560_p9, %p421_p10  ;;  %p8330_p4 = scmp.lt.s32.totalorder %s8985_s24, 2 }
  0x2b   : > { %s10755_s18 = scalar_select %p9154_p11, 1, 0 }
  0x2c   : > { %s10757_s19 = scalar_select %p9158_p12, 1, 0 }
  0x2d   : > { %10756 = sst [smem:[#allocation47_spill]] %s10755_s18  ;;  %p8263_p1 = pneg %p9162_p13 }
  0x2e   : > { %10758 = sst [smem:[#allocation48_spill]] %s10757_s19  ;;  %s587_s26 = sand.u32 1, %s8985_s24  }
  0x2f   : > { %s10759_s20 = scalar_select %p9162_p13, 1, 0 }
  0x30   : > { %p10761_p6 = scmp.eq.s32.totalorder %s9123_s25, 0  ;;  %s10658_s29 = sand.u32 1, %s8981_s23  }
  0x31   : > { %10760 = sst [smem:[#allocation49_spill]] %s10759_s20  ;;  %s10659_s30 = sshll.u32 %s8985_s24, 8 }
  0x32   : > { %p9173_p5 = pnand %p8263_p1, %p10761_p6  ;;  %s9181_s27 = sshll.u32 %s10658_s29, 4 }
  0x33   : > { %s10763_s16 = sld [smem:[#allocation62_spill]]  ;;  %s591_s17 = scalar_lea.vmem [#allocation4], %s9181_s27 }
  0x34   : > { %s10762_s28 = scalar_select %p9173_p5, 1, 0 }
  0x35   : > { %s598_s22 = sshll.u32 %s591_s17, 4  ;;  %p10764_p0 = scmp.ne.s32.totalorder %s10752_s0, 0  ;;  %s9197_s22 = int_to_ptr.vmem [resolvable:$true] %s598_s22 }
  0x36   : > { %s9199_s29 = scalar_lea.sflag [#allocation5], %s587_s26 }
  0x37   : > { %p9193_p3 = pnand %p8330_p4, %p10764_p0 }
  0x39   : > { %s9188_s18 = scalar_lea.hbm %s10763_s16, %s10659_s30  ;;  %p9205_p7 = pneg %p9193_p3 }
  0x3a   : > { %s10765_s25 = scalar_select %p9193_p3, 1, 0 }
  0x3b   : > { %s8429_s21 = scalar_lea.hbm %s9188_s18, 256  ;;  %s8434_s30 = scalar_lea.hbm %s10763_s16, 512 }
  0x3c   : > { %10766 = sst [smem:[#allocation50_spill]] %s10765_s25  ;;  %p8430_p6 = scmp.ne.s32.totalorder %s9188_s18, %s8429_s21 }
  0x3d   : > { %s10767_s19 = scalar_select %p9205_p7, 1, 0 }
  0x3e   : > { %p8432_p8 = pnand %p9205_p7, %p8430_p6  ;;  %p8435_p4 = scmp.lt.u32.totalorder %s9188_s18, %s10763_s16 }
  0x3f   : > { %p8436_p10 = scmp.lt.u32.totalorder %s8434_s30, %s8429_s21  ;;  %p8438_p0 = scmp.lt.u32.totalorder %s8429_s21, %s9188_s18 }
  0x40   : > { %p8433_p9 = pneg %p8432_p8 }
  0x41   : > { %p8437_p1 = por %p8436_p10, %p8435_p4 }
  0x43   : > { %p8439_p2 = por %p8438_p0, %p8437_p1 }
  0x45   : > { %p8440_p12 = pnand %p8439_p2, %p8433_p9 }
  0x47   : > { %8443 = shalt.err (!%p8440_p12)
}
  0x48   : > { %s8444_s26 = scalar_lea.vmem %s9197_s22, 256  ;;  %s8987_s0 = smov [#allocation4]  }
  0x49   : > { %p8445_p6 = scmp.ne.s32.totalorder %s9197_s22, %s8444_s26  ;;  %s8449_s17 = sshll.u32 %s8987_s0, 4  ;;  %s8450_s17 = int_to_ptr.vmem [resolvable:$false] %s8449_s17 }
  0x4a   : > { %s8451_s15 = scalar_lea.vmem %s8450_s17, 512  ;;  %p8452_p13 = scmp.lt.s32.totalorder %s9197_s22, %s8450_s17 }
  0x4b   : > { %p8447_p8 = pnand %p8445_p6, %p9205_p7  ;;  %p8453_p5 = scmp.lt.s32.totalorder %s8451_s15, %s8444_s26 }
  0x4d   : > { %p8448_p11 = pneg %p8447_p8  ;;  %p8454_p4 = por %p8453_p5, %p8452_p13 }
  0x4f   : > { %p8455_p10 = pnand %p8454_p4, %p8448_p11 }
  0x51   : > { %8458 = shalt.err (!%p8455_p10)
}
  0x52   : > { %s10681_s30 = smov 128   ;;  %s10683_s20 = smov 8  }
  0x53   : > { %8306 = dma.hbm_to_vmem [thread:$0]  (!%p9193_p3), %s9188_s18, 256, %s9197_s22, %s9199_s29, %s10681_s30, %s10681_s30, %s10683_s20  }
  0x54   : > { %s10768_s21 = sshll.u32 %s8985_s24, 8  ;;  %s629_s15 = scalar_lea.vmem [#allocation10], %s9181_s27 }
  0x55   : > { %s9237_s17 = scalar_lea.hbm %s10629_s3, %s10768_s21  ;;  %s9240_s16 = sshll.u32 %s629_s15, 4  ;;  %s9506_s16 = int_to_ptr.vmem [resolvable:$true] %s9240_s16 }
  0x56   : > { %s8990_s14 = smov [#allocation7]   ;;  %s10769_s1 = sld [smem:[#allocation63_spill]] }
  0x57   : > { %s433_s12 = sshll.u32 %s8990_s14, 4  ;;  %p10770_p11 = scmp.ne.s32.totalorder %s10762_s28, 0  ;;  %s434_s12 = int_to_ptr.vmem [resolvable:$true] %s433_s12 }
  0x59   : > { %p9250_p12 = pneg %p10770_p11 }
  0x5b   : > { %s10771_s22 = scalar_select %p9250_p12, 1, 0 }
  0x5c   : > { %s8459_s6 = scalar_lea.hbm %s10769_s1, 256 }
  0x5d   : > { %p8460_p5 = scmp.ne.s32.totalorder %s10769_s1, %s8459_s6  ;;  %p8466_p9 = scmp.lt.u32.totalorder %s8459_s6, %s10769_s1 }
  0x5f   : > { %p8462_p13 = pnand %p9250_p12, %p8460_p5 }
  0x61   : > { %p8463_p2 = pneg %p8462_p13 }
  0x63   : > { %p8468_p1 = pnand %p8466_p9, %p8463_p2 }
  0x65   : > { %8471 = shalt.err (!%p8468_p1)
}
  0x66   : > { %s8472_s8 = scalar_lea.vmem %s434_s12, 256  ;;  %p8480_p4 = scmp.lt.s32.totalorder %s434_s12, %s434_s12 }
  0x67   : > { %p8473_p0 = scmp.ne.s32.totalorder %s434_s12, %s8472_s8  ;;  %p8481_p10 = scmp.lt.s32.totalorder %s8472_s8, %s8472_s8 }
  0x69   : > { %p8475_p6 = pnand %p8473_p0, %p9250_p12  ;;  %p8482_p3 = por %p8481_p10, %p8480_p4 }
  0x6b   : > { %p8476_p8 = pneg %p8475_p6 }
  0x6d   : > { %p8483_p7 = pnand %p8482_p3, %p8476_p8 }
  0x6f   : > { %8486 = shalt.err (!%p8483_p7)
}
  0x70   : > { %8266 = dma.hbm_to_vmem [thread:$0]  (!%p10770_p11), %s10769_s1, 256, %s434_s12, [#allocation8], %s10681_s30, %s10681_s30, %s10683_s20  }
  0x71   : > { %s8991_s10 = smov [#allocation12]   ;;  %s8992_s18 = smov [#allocation15]  }
  0x72   : > { %s460_s25 = sshll.u32 %s8991_s10, 4  ;;  %s484_s21 = sshll.u32 %s8992_s18, 4  ;;  %s461_s25 = int_to_ptr.vmem [resolvable:$true] %s460_s25  ;;  %s485_s21 = int_to_ptr.vmem [resolvable:$true] %s484_s21 }
  0x73   : > { %s10772_s5 = sld [smem:[#allocation66_spill]] }
  0x79   : > { %s8487_s15 = scalar_lea.hbm %s10772_s5, 16 }
  0x7a   : > { %p8488_p3 = scmp.ne.s32.totalorder %s10772_s5, %s8487_s15  ;;  %p8494_p13 = scmp.lt.u32.totalorder %s8487_s15, %s10772_s5 }
  0x7c   : > { %p8490_p7 = pnand %p8488_p3, %p9250_p12 }
  0x7e   : > { %p8491_p5 = pneg %p8490_p7 }
  0x80   : > { %p8496_p2 = pnand %p8494_p13, %p8491_p5 }
  0x82   : > { %8499 = shalt.err (!%p8496_p2)
}
  0x83   : > { %s8500_s12 = scalar_lea.vmem %s461_s25, 16  ;;  %s8507_s6 = scalar_lea.vmem %s461_s25, 32 }
  0x84   : > { %p8501_p9 = scmp.ne.s32.totalorder %s461_s25, %s8500_s12  ;;  %p8508_p6 = scmp.lt.s32.totalorder %s461_s25, %s461_s25 }
  0x85   : > { %p8509_p8 = scmp.lt.s32.totalorder %s8507_s6, %s8500_s12 }
  0x86   : > { %p8503_p1 = pnand %p8501_p9, %p9250_p12 }
  0x87   : > { %p8510_p4 = por %p8509_p8, %p8508_p6 }
  0x88   : > { %p8504_p0 = pneg %p8503_p1 }
  0x8a   : > { %p8511_p10 = pnand %p8510_p4, %p8504_p0 }
  0x8c   : > { %8514 = shalt.err (!%p8511_p10)
}
  0x8d   : > { %8272 = dma.hbm_to_vmem [thread:$0]  (!%p10770_p11), %s10772_s5, 16, %s461_s25, [#allocation13]  }
  0x8e   : > { %s10773_s7 = sld [smem:[#allocation68_spill]] }
  0x94   : > { %s8515_s15 = scalar_lea.hbm %s10773_s7, 16 }
  0x95   : > { %p8516_p3 = scmp.ne.s32.totalorder %s10773_s7, %s8515_s15  ;;  %p8522_p13 = scmp.lt.u32.totalorder %s8515_s15, %s10773_s7 }
  0x97   : > { %p8518_p7 = pnand %p8516_p3, %p9250_p12 }
  0x99   : > { %p8519_p5 = pneg %p8518_p7 }
  0x9b   : > { %p8524_p2 = pnand %p8522_p13, %p8519_p5 }
  0x9d   : > { %8527 = shalt.err (!%p8524_p2)
}
  0x9e   : > { %s8528_s12 = scalar_lea.vmem %s485_s21, 16  ;;  %s8535_s25 = scalar_lea.vmem %s485_s21, 32 }
  0x9f   : > { %p8529_p9 = scmp.ne.s32.totalorder %s485_s21, %s8528_s12  ;;  %p8536_p6 = scmp.lt.s32.totalorder %s485_s21, %s485_s21 }
  0xa0   : > { %p8537_p8 = scmp.lt.s32.totalorder %s8535_s25, %s8528_s12 }
  0xa1   : > { %p8531_p1 = pnand %p8529_p9, %p9250_p12 }
  0xa2   : > { %p8538_p4 = por %p8537_p8, %p8536_p6 }
  0xa3   : > { %p8532_p0 = pneg %p8531_p1 }
  0xa5   : > { %p8539_p10 = pnand %p8538_p4, %p8532_p0 }
  0xa7   : > { %8542 = shalt.err (!%p8539_p10)
}
  0xa8   : > { %8278 = dma.hbm_to_vmem [thread:$0]  (!%p10770_p11), %s10773_s7, 16, %s485_s21, [#allocation16]  }
  0xa9   : > { %s8993_s18 = smov [#allocation18]   ;;  %s8994_s26 = smov [#allocation21]  }
  0xaa   : > { %s506_s0 = sshll.u32 %s8993_s18, 4  ;;  %s530_s15 = sshll.u32 %s8994_s26, 4  ;;  %s507_s0 = int_to_ptr.vmem [resolvable:$true] %s506_s0  ;;  %s531_s15 = int_to_ptr.vmem [resolvable:$true] %s530_s15 }
  0xab   : > { %s10774_s9 = sld [smem:[#allocation70_spill]] }
  0xb1   : > { %s8543_s8 = scalar_lea.hbm %s10774_s9, 16 }
  0xb2   : > { %p8544_p3 = scmp.ne.s32.totalorder %s10774_s9, %s8543_s8  ;;  %p8550_p13 = scmp.lt.u32.totalorder %s8543_s8, %s10774_s9 }
  0xb4   : > { %p8546_p7 = pnand %p8544_p3, %p9250_p12 }
  0xb6   : > { %p8547_p5 = pneg %p8546_p7 }
  0xb8   : > { %p8552_p2 = pnand %p8550_p13, %p8547_p5 }
  0xba   : > { %8555 = shalt.err (!%p8552_p2)
}
  0xbb   : > { %s8556_s21 = scalar_lea.vmem %s507_s0, 16  ;;  %s8563_s10 = scalar_lea.vmem %s507_s0, 32 }
  0xbc   : > { %p8557_p9 = scmp.ne.s32.totalorder %s507_s0, %s8556_s21  ;;  %p8564_p6 = scmp.lt.s32.totalorder %s507_s0, %s507_s0 }
  0xbd   : > { %p8565_p8 = scmp.lt.s32.totalorder %s8563_s10, %s8556_s21 }
  0xbe   : > { %p8559_p1 = pnand %p8557_p9, %p9250_p12 }
  0xbf   : > { %p8566_p4 = por %p8565_p8, %p8564_p6 }
  0xc0   : > { %p8560_p0 = pneg %p8559_p1 }
  0xc2   : > { %p8567_p10 = pnand %p8566_p4, %p8560_p0 }
  0xc4   : > { %8570 = shalt.err (!%p8567_p10)
}
  0xc5   : > { %8284 = dma.hbm_to_vmem [thread:$0]  (!%p10770_p11), %s10774_s9, 16, %s507_s0, [#allocation19]  }
  0xc6   : > { %s8571_s8 = scalar_lea.hbm %s10637_s11, 16 }
  0xc7   : > { %p8572_p3 = scmp.ne.s32.totalorder %s10637_s11, %s8571_s8  ;;  %p8578_p13 = scmp.lt.u32.totalorder %s8571_s8, %s10637_s11 }
  0xc9   : > { %p8574_p7 = pnand %p8572_p3, %p9250_p12 }
  0xcb   : > { %p8575_p5 = pneg %p8574_p7 }
  0xcd   : > { %p8580_p2 = pnand %p8578_p13, %p8575_p5 }
  0xcf   : > { %8583 = shalt.err (!%p8580_p2)
}
  0xd0   : > { %s8584_s21 = scalar_lea.vmem %s531_s15, 16  ;;  %s8591_s0 = scalar_lea.vmem %s531_s15, 32 }
  0xd1   : > { %p8585_p9 = scmp.ne.s32.totalorder %s531_s15, %s8584_s21  ;;  %p8592_p6 = scmp.lt.s32.totalorder %s531_s15, %s531_s15 }
  0xd2   : > { %p8593_p8 = scmp.lt.s32.totalorder %s8591_s0, %s8584_s21 }
  0xd3   : > { %p8587_p1 = pnand %p8585_p9, %p9250_p12 }
  0xd4   : > { %p8594_p4 = por %p8593_p8, %p8592_p6 }
  0xd5   : > { %p8588_p0 = pneg %p8587_p1 }
  0xd7   : > { %p8595_p10 = pnand %p8594_p4, %p8588_p0 }
  0xd9   : > { %8598 = shalt.err (!%p8595_p10)
}
  0xda   : > { %8290 = dma.hbm_to_vmem [thread:$0]  (!%p10770_p11), %s10637_s11, 16, %s531_s15, [#allocation22]  }
  0xdb   : > { %s8995_s26 = smov [#allocation24]   ;;  %s6578_s14 = sshll.u32 %s8985_s24, 4 }
  0xdc   : > { %s554_s27 = sshll.u32 %s8995_s26, 4  ;;  %s8599_s12 = scalar_lea.hbm %s10639_s13, 16  ;;  %s555_s27 = int_to_ptr.vmem [resolvable:$true] %s554_s27 }
  0xdd   : > { %p8600_p3 = scmp.ne.s32.totalorder %s10639_s13, %s8599_s12  ;;  %p8606_p13 = scmp.lt.u32.totalorder %s8599_s12, %s10639_s13 }
  0xdf   : > { %p8602_p7 = pnand %p8600_p3, %p9250_p12 }
  0xe1   : > { %p8603_p5 = pneg %p8602_p7 }
  0xe3   : > { %p8608_p2 = pnand %p8606_p13, %p8603_p5 }
  0xe5   : > { %8611 = shalt.err (!%p8608_p2)
}
  0xe6   : > { %s8612_s15 = scalar_lea.vmem %s555_s27, 16  ;;  %s8619_s10 = scalar_lea.vmem %s555_s27, 32 }
  0xe7   : > { %p8613_p9 = scmp.ne.s32.totalorder %s555_s27, %s8612_s15  ;;  %p8620_p6 = scmp.lt.s32.totalorder %s555_s27, %s555_s27 }
  0xe8   : > { %p8621_p8 = scmp.lt.s32.totalorder %s8619_s10, %s8612_s15 }
  0xe9   : > { %p8615_p1 = pnand %p8613_p9, %p9250_p12 }
  0xea   : > { %p8622_p4 = por %p8621_p8, %p8620_p6 }
  0xeb   : > { %p8616_p0 = pneg %p8615_p1 }
  0xed   : > { %p8623_p10 = pnand %p8622_p4, %p8616_p0 }
  0xef   : > { %8626 = shalt.err (!%p8623_p10)
}
  0xf0   : > { %8296 = dma.hbm_to_vmem [thread:$0]  (!%p10770_p11), %s10639_s13, 16, %s555_s27, [#allocation25]  }
  0xf1   : > { %s10775_s2 = sld [smem:[#allocation64_spill]]  ;;  %s10776_s25 = sand.u32 1, %s8981_s23  }
  0xf2   : > { %s611_s6 = scalar_lea.vmem [#allocation9], %s10776_s25  ;;  %p10777_p7 = scmp.ne.s32.totalorder %s10767_s19, 0 }
  0xf3   : > { %s618_s21 = sshll.u32 %s611_s6, 4  ;;  %s619_s21 = int_to_ptr.vmem [resolvable:$true] %s618_s21 }
  0xf7   : > { %s9363_s12 = scalar_lea.hbm %s10775_s2, %s6578_s14  ;;  %s8632_s10 = scalar_lea.hbm %s10775_s2, 32 }
  0xf8   : > { %s8627_s0 = scalar_lea.hbm %s9363_s12, 16  ;;  %p8633_p2 = scmp.lt.u32.totalorder %s9363_s12, %s10775_s2 }
  0xf9   : > { %p8628_p3 = scmp.ne.s32.totalorder %s9363_s12, %s8627_s0  ;;  %p8634_p9 = scmp.lt.u32.totalorder %s8632_s10, %s8627_s0 }
  0xfa   : > { %p8636_p0 = scmp.lt.u32.totalorder %s8627_s0, %s9363_s12 }
  0xfb   : > { %p8630_p5 = pnand %p8628_p3, %p10777_p7  ;;  %p8635_p1 = por %p8634_p9, %p8633_p2 }
  0xfd   : > { %p8631_p13 = pneg %p8630_p5  ;;  %p8637_p6 = por %p8636_p0, %p8635_p1 }
  0xff   : > { %p8638_p8 = pnand %p8637_p6, %p8631_p13 }
 0x101   : > { %8641 = shalt.err (!%p8638_p8)
}
 0x102   : > { %s8642_s26 = scalar_lea.vmem %s619_s21, 16  ;;  %s8996_s8 = smov [#allocation9]  }
 0x103   : > { %p8643_p4 = scmp.ne.s32.totalorder %s619_s21, %s8642_s26  ;;  %s8647_s4 = sshll.u32 %s8996_s8, 4  ;;  %s8648_s4 = int_to_ptr.vmem [resolvable:$false] %s8647_s4 }
 0x104   : > { %s8649_s25 = scalar_lea.vmem %s8648_s4, 32  ;;  %p8650_p5 = scmp.lt.s32.totalorder %s619_s21, %s8648_s4 }
 0x105   : > { %p8645_p10 = pnand %p8643_p4, %p10777_p7  ;;  %p8651_p11 = scmp.lt.s32.totalorder %s8649_s25, %s8642_s26 }
 0x107   : > { %p8646_p3 = pneg %p8645_p10  ;;  %p8652_p12 = por %p8651_p11, %p8650_p5 }
 0x109   : > { %p8653_p2 = pnand %p8652_p12, %p8646_p3 }
 0x10b   : > { %8656 = shalt.err (!%p8653_p2)
}
 0x10c   : > { %s10778_s6 = sld [smem:[#allocation50_spill]]  ;;  %s8997_s0 = smov [#allocation11]  }
 0x10d   : > { %s446_s15 = sshll.u32 %s8997_s0, 4  ;;  %s8998_s27 = smov [#allocation14]   ;;  %s447_s15 = int_to_ptr.vmem [resolvable:$true] %s446_s15 }
 0x10e   : > { %s470_s10 = sshll.u32 %s8998_s27, 4  ;;  %s10780_s8 = sld [smem:[#allocation65_spill]]  ;;  %s471_s10 = int_to_ptr.vmem [resolvable:$true] %s470_s10 }
 0x10f   : > { %p10781_p12 = scmp.ne.s32.totalorder %s10771_s22, 0 }
 0x112   : > { %p10779_p9 = scmp.ne.s32.totalorder %s10778_s6, 0 }
 0x114   : > { %8309 = dma.hbm_to_vmem [thread:$0]  (!%p10779_p9), %s9363_s12, 16, %s619_s21, %s9199_s29  }
 0x115   : > { %s8657_s30 = scalar_lea.hbm %s10780_s8, 512 }
 0x116   : > { %p8658_p11 = scmp.ne.s32.totalorder %s10780_s8, %s8657_s30  ;;  %p8664_p0 = scmp.lt.u32.totalorder %s8657_s30, %s10780_s8 }
 0x118   : > { %p8660_p13 = pnand %p8658_p11, %p10781_p12 }
 0x11a   : > { %p8661_p1 = pneg %p8660_p13 }
 0x11c   : > { %p8666_p6 = pnand %p8664_p0, %p8661_p1 }
 0x11e   : > { %8669 = shalt.err (!%p8666_p6)
}
 0x11f   : > { %s8670_s12 = scalar_lea.vmem %s447_s15, 512  ;;  %p8678_p3 = scmp.lt.s32.totalorder %s447_s15, %s447_s15 }
 0x120   : > { %p8671_p8 = scmp.ne.s32.totalorder %s447_s15, %s8670_s12  ;;  %p8679_p5 = scmp.lt.s32.totalorder %s8670_s12, %s8670_s12 }
 0x122   : > { %p8673_p4 = pnand %p8671_p8, %p10781_p12  ;;  %p8680_p2 = por %p8679_p5, %p8678_p3 }
 0x124   : > { %p8674_p10 = pneg %p8673_p4 }
 0x126   : > { %p8681_p9 = pnand %p8680_p2, %p8674_p10 }
 0x128   : > { %8684 = shalt.err (!%p8681_p9)
}
 0x129   : > { %p10782_p11 = scmp.ne.s32.totalorder %s10762_s28, 0  ;;  %s10783_s21 = smov 8  }
 0x12a   : > { %s10784_s0 = smov 128   ;;  %s10785_s14 = sld [smem:[#allocation67_spill]] }
 0x12b   : > { %8269 = dma.hbm_to_vmem [thread:$0]  (!%p10782_p11), %s10780_s8, 512, %s447_s15, [#allocation8], %s10784_s0, %s10784_s0, %s10783_s21  }
 0x130   : > { %s8685_s4 = scalar_lea.hbm %s10785_s14, 512 }
 0x131   : > { %p8686_p13 = scmp.ne.s32.totalorder %s10785_s14, %s8685_s4  ;;  %p8692_p0 = scmp.lt.u32.totalorder %s8685_s4, %s10785_s14 }
 0x133   : > { %p8688_p9 = pnand %p8686_p13, %p10781_p12 }
 0x135   : > { %p8689_p1 = pneg %p8688_p9 }
 0x137   : > { %p8694_p6 = pnand %p8692_p0, %p8689_p1 }
 0x139   : > { %8697 = shalt.err (!%p8694_p6)
}
 0x13a   : > { %s8698_s20 = scalar_lea.vmem %s471_s10, 512  ;;  %p8706_p3 = scmp.lt.s32.totalorder %s471_s10, %s471_s10 }
 0x13b   : > { %p8699_p8 = scmp.ne.s32.totalorder %s471_s10, %s8698_s20  ;;  %p8707_p5 = scmp.lt.s32.totalorder %s8698_s20, %s8698_s20 }
 0x13d   : > { %p8701_p4 = pnand %p8699_p8, %p10781_p12  ;;  %p8708_p2 = por %p8707_p5, %p8706_p3 }
 0x13f   : > { %p8702_p10 = pneg %p8701_p4 }
 0x141   : > { %p8709_p7 = pnand %p8708_p2, %p8702_p10 }
 0x143   : > { %8712 = shalt.err (!%p8709_p7)
}
 0x144   : > { %8275 = dma.hbm_to_vmem [thread:$0]  (!%p10782_p11), %s10785_s14, 512, %s471_s10, [#allocation13], %s10784_s0, %s10784_s0, %s10783_s21  }
 0x145   : > { %s8999_s30 = smov [#allocation17]   ;;  %s9000_s18 = smov [#allocation20]  }
 0x146   : > { %s495_s27 = sshll.u32 %s8999_s30, 4  ;;  %s516_s4 = sshll.u32 %s9000_s18, 4  ;;  %s496_s27 = int_to_ptr.vmem [resolvable:$true] %s495_s27  ;;  %s517_s4 = int_to_ptr.vmem [resolvable:$true] %s516_s4 }
 0x147   : > { %s10786_s12 = sld [smem:[#allocation69_spill]] }
 0x14d   : > { %s8713_s20 = scalar_lea.hbm %s10786_s12, 16 }
 0x14e   : > { %p8714_p7 = scmp.ne.s32.totalorder %s10786_s12, %s8713_s20  ;;  %p8720_p1 = scmp.lt.u32.totalorder %s8713_s20, %s10786_s12 }
 0x150   : > { %p8716_p13 = pnand %p8714_p7, %p10781_p12 }
 0x152   : > { %p8717_p9 = pneg %p8716_p13 }
 0x154   : > { %p8722_p0 = pnand %p8720_p1, %p8717_p9 }
 0x156   : > { %8725 = shalt.err (!%p8722_p0)
}
 0x157   : > { %s8726_s10 = scalar_lea.vmem %s496_s27, 16  ;;  %s8733_s15 = scalar_lea.vmem %s496_s27, 32 }
 0x158   : > { %p8727_p6 = scmp.ne.s32.totalorder %s496_s27, %s8726_s10  ;;  %p8734_p10 = scmp.lt.s32.totalorder %s496_s27, %s496_s27 }
 0x159   : > { %p8735_p3 = scmp.lt.s32.totalorder %s8733_s15, %s8726_s10 }
 0x15a   : > { %p8729_p8 = pnand %p8727_p6, %p10781_p12 }
 0x15b   : > { %p8736_p5 = por %p8735_p3, %p8734_p10 }
 0x15c   : > { %p8730_p4 = pneg %p8729_p8 }
 0x15e   : > { %p8737_p2 = pnand %p8736_p5, %p8730_p4 }
 0x160   : > { %8740 = shalt.err (!%p8737_p2)
}
 0x161   : > { %8281 = dma.hbm_to_vmem [thread:$0]  (!%p10782_p11), %s10786_s12, 16, %s496_s27, [#allocation16]  }
 0x162   : > { %s10787_s18 = sld [smem:[#allocation71_spill]] }
 0x168   : > { %s8741_s26 = scalar_lea.hbm %s10787_s18, 4608 }
 0x169   : > { %p8742_p7 = scmp.ne.s32.totalorder %s10787_s18, %s8741_s26  ;;  %p8748_p1 = scmp.lt.u32.totalorder %s8741_s26, %s10787_s18 }
 0x16b   : > { %p8744_p13 = pnand %p8742_p7, %p10781_p12 }
 0x16d   : > { %p8745_p9 = pneg %p8744_p13 }
 0x16f   : > { %p8750_p0 = pnand %p8748_p1, %p8745_p9 }
 0x171   : > { %8753 = shalt.err (!%p8750_p0)
}
 0x172   : > { %s8754_s15 = scalar_lea.vmem %s517_s4, 4608  ;;  %p8762_p10 = scmp.lt.s32.totalorder %s517_s4, %s517_s4 }
 0x173   : > { %p8755_p6 = scmp.ne.s32.totalorder %s517_s4, %s8754_s15  ;;  %p8763_p3 = scmp.lt.s32.totalorder %s8754_s15, %s8754_s15 }
 0x175   : > { %p8757_p8 = pnand %p8755_p6, %p10781_p12  ;;  %p8764_p5 = por %p8763_p3, %p8762_p10 }
 0x177   : > { %p8758_p4 = pneg %p8757_p8 }
 0x179   : > { %p8765_p2 = pnand %p8764_p5, %p8758_p4 }
 0x17b   : > { %8768 = shalt.err (!%p8765_p2)
}
 0x17c   : > { %8287 = dma.hbm_to_vmem [thread:$0]  (!%p10782_p11), %s10787_s18, 4608, %s517_s4, [#allocation19], %s10784_s0, %s10784_s0, %s10783_s21  }
 0x17d   : > { %s9001_s5 = smov [#allocation23]   ;;  %s9002_s30 = smov [#allocation26]  }
 0x17e   : > { %s540_s7 = sshll.u32 %s9001_s5, 4  ;;  %s565_s26 = sshll.u32 %s9002_s30, 4  ;;  %s541_s7 = int_to_ptr.vmem [resolvable:$true] %s540_s7  ;;  %s566_s26 = int_to_ptr.vmem [resolvable:$true] %s565_s26 }
 0x17f   : > { %s10788_s1 = sld [smem:[#allocation72_spill]] }
 0x185   : > { %s8769_s10 = scalar_lea.hbm %s10788_s1, 1024 }
 0x186   : > { %p8770_p7 = scmp.ne.s32.totalorder %s10788_s1, %s8769_s10  ;;  %p8776_p1 = scmp.lt.u32.totalorder %s8769_s10, %s10788_s1 }
 0x188   : > { %p8772_p13 = pnand %p8770_p7, %p10781_p12 }
 0x18a   : > { %p8773_p9 = pneg %p8772_p13 }
 0x18c   : > { %p8778_p0 = pnand %p8776_p1, %p8773_p9 }
 0x18e   : > { %8781 = shalt.err (!%p8778_p0)
}
 0x18f   : > { %s8782_s4 = scalar_lea.vmem %s541_s7, 1024  ;;  %p8790_p10 = scmp.lt.s32.totalorder %s541_s7, %s541_s7 }
 0x190   : > { %p8783_p6 = scmp.ne.s32.totalorder %s541_s7, %s8782_s4  ;;  %p8791_p3 = scmp.lt.s32.totalorder %s8782_s4, %s8782_s4 }
 0x192   : > { %p8785_p8 = pnand %p8783_p6, %p10781_p12  ;;  %p8792_p5 = por %p8791_p3, %p8790_p10 }
 0x194   : > { %p8786_p4 = pneg %p8785_p8 }
 0x196   : > { %p8793_p2 = pnand %p8792_p5, %p8786_p4 }
 0x198   : > { %8796 = shalt.err (!%p8793_p2)
}
 0x199   : > { %8293 = dma.hbm_to_vmem [thread:$0]  (!%p10782_p11), %s10788_s1, 1024, %s541_s7, [#allocation22], %s10784_s0, %s10784_s0, %s10783_s21  }
 0x19a   : > { %s10789_s30 = sld [smem:[#allocation73_spill]] }
 0x1a0   : > { %s8797_s25 = scalar_lea.hbm %s10789_s30, 16 }
 0x1a1   : > { %p8798_p7 = scmp.ne.s32.totalorder %s10789_s30, %s8797_s25  ;;  %p8804_p1 = scmp.lt.u32.totalorder %s8797_s25, %s10789_s30 }
 0x1a3   : > { %p8800_p13 = pnand %p8798_p7, %p10781_p12 }
 0x1a5   : > { %p8801_p9 = pneg %p8800_p13 }
 0x1a7   : > { %p8806_p0 = pnand %p8804_p1, %p8801_p9 }
 0x1a9   : > { %8809 = shalt.err (!%p8806_p0)
}
 0x1aa   : > { %s8810_s4 = scalar_lea.vmem %s566_s26, 16  ;;  %s8817_s7 = scalar_lea.vmem %s566_s26, 32 }
 0x1ab   : > { %p8811_p6 = scmp.ne.s32.totalorder %s566_s26, %s8810_s4  ;;  %p8818_p10 = scmp.lt.s32.totalorder %s566_s26, %s566_s26 }
 0x1ac   : > { %p8819_p3 = scmp.lt.s32.totalorder %s8817_s7, %s8810_s4 }
 0x1ad   : > { %p8813_p8 = pnand %p8811_p6, %p10781_p12 }
 0x1ae   : > { %p8820_p5 = por %p8819_p3, %p8818_p10 }
 0x1af   : > { %p8814_p4 = pneg %p8813_p8 }
 0x1b1   : > { %p8821_p2 = pnand %p8820_p5, %p8814_p4 }
 0x1b3   : > { %8824 = shalt.err (!%p8821_p2)
}
 0x1b4   : > { %8299 = dma.hbm_to_vmem [thread:$0]  (!%p10782_p11), %s10789_s30, 16, %s566_s26, [#allocation25]  }
 0x1b5   : > { %s9003_s2 = smov [#allocation27]   ;;  %s10790_s10 = sld [smem:[#allocation74_spill]] }
 0x1b6   : > { %s576_s5 = sshll.u32 %s9003_s2, 4  ;;  %s577_s5 = int_to_ptr.vmem [resolvable:$true] %s576_s5 }
 0x1bb   : > { %s8825_s15 = scalar_lea.hbm %s10790_s10, 16 }
 0x1bc   : > { %p8826_p7 = scmp.ne.s32.totalorder %s10790_s10, %s8825_s15  ;;  %p8832_p1 = scmp.lt.u32.totalorder %s8825_s15, %s10790_s10 }
 0x1be   : > { %p8828_p13 = pnand %p8826_p7, %p10781_p12 }
 0x1c0   : > { %p8829_p9 = pneg %p8828_p13 }
 0x1c2   : > { %p8834_p0 = pnand %p8832_p1, %p8829_p9 }
 0x1c4   : > { %8837 = shalt.err (!%p8834_p0)
}
 0x1c5   : > { %s8838_s26 = scalar_lea.vmem %s577_s5, 16  ;;  %s8845_s8 = scalar_lea.vmem %s577_s5, 32 }
 0x1c6   : > { %p8839_p6 = scmp.ne.s32.totalorder %s577_s5, %s8838_s26  ;;  %p8846_p10 = scmp.lt.s32.totalorder %s577_s5, %s577_s5 }
 0x1c7   : > { %p8847_p3 = scmp.lt.s32.totalorder %s8845_s8, %s8838_s26 }
 0x1c8   : > { %p8841_p8 = pnand %p8839_p6, %p10781_p12 }
 0x1c9   : > { %p8848_p5 = por %p8847_p3, %p8846_p10 }
 0x1ca   : > { %p8842_p4 = pneg %p8841_p8 }
 0x1cc   : > { %p8849_p2 = pnand %p8848_p5, %p8842_p4 }
 0x1ce   : > { %8852 = shalt.err (!%p8849_p2)
}
 0x1cf   : > { %8302 = dma.hbm_to_vmem [thread:$0]  (!%p10782_p11), %s10790_s10, 16, %s577_s5, [#allocation28]  }
 0x1d0   : > { %s8853_s22 = scalar_lea.hbm %s9237_s17, 256  ;;  %p10791_p7 = scmp.ne.s32.totalorder %s10767_s19, 0 }
 0x1d1   : > { %p8854_p12 = scmp.ne.s32.totalorder %s9237_s17, %s8853_s22  ;;  %s8858_s27 = scalar_lea.hbm %s10629_s3, 512 }
 0x1d2   : > { %p8859_p1 = scmp.lt.u32.totalorder %s9237_s17, %s10629_s3  ;;  %p8860_p0 = scmp.lt.u32.totalorder %s8858_s27, %s8853_s22 }
 0x1d3   : > { %p8856_p13 = pnand %p8854_p12, %p10791_p7  ;;  %p8862_p8 = scmp.lt.u32.totalorder %s8853_s22, %s9237_s17 }
 0x1d4   : > { %p8861_p6 = por %p8860_p0, %p8859_p1 }
 0x1d5   : > { %p8857_p9 = pneg %p8856_p13 }
 0x1d6   : > { %p8863_p4 = por %p8862_p8, %p8861_p6 }
 0x1d8   : > { %p8864_p10 = pnand %p8863_p4, %p8857_p9 }
 0x1da   : > { %8867 = shalt.err (!%p8864_p10)
}
 0x1db   : > { %s8868_s5 = scalar_lea.vmem %s9506_s16, 256  ;;  %s9004_s7 = smov [#allocation10]  }
 0x1dc   : > { %p8869_p11 = scmp.ne.s32.totalorder %s9506_s16, %s8868_s5  ;;  %s8873_s9 = sshll.u32 %s9004_s7, 4  ;;  %s8874_s9 = int_to_ptr.vmem [resolvable:$false] %s8873_s9 }
 0x1dd   : > { %s8875_s26 = scalar_lea.vmem %s8874_s9, 512  ;;  %p8876_p2 = scmp.lt.s32.totalorder %s9506_s16, %s8874_s9 }
 0x1de   : > { %p8871_p3 = pnand %p8869_p11, %p10791_p7  ;;  %p8877_p12 = scmp.lt.s32.totalorder %s8875_s26, %s8868_s5 }
 0x1e0   : > { %p8872_p5 = pneg %p8871_p3  ;;  %p8878_p13 = por %p8877_p12, %p8876_p2 }
 0x1e2   : > { %p8879_p1 = pnand %p8878_p13, %p8872_p5 }
 0x1e4   : > { %8882 = shalt.err (!%p8879_p1)
}
 0x1e5   : > { %p10792_p9 = scmp.ne.s32.totalorder %s10778_s6, 0  ;;  %s10793_s19 = sld [smem:[#allocation49_spill]] }
 0x1e7   : > { %8312 = dma.hbm_to_vmem [thread:$0]  (!%p10792_p9), %s9237_s17, 256, %s9506_s16, %s9199_s29, %s10784_s0, %s10784_s0, %s10783_s21  }
 0x1eb   : > { %p10794_p7 = scmp.ne.s32.totalorder %s10793_s19, 0 }
 0x1ed   : > { %648 = sbr.rel (%p10794_p7) target bundleno = 3670 (0xe56), region = 84 }
 0x1f4   : > { %s10795_s8 = sld [smem:[#allocation43_spill]]  ;;  %s10796_s2 = sld [smem:[#allocation42_spill]] }
 0x1f5   : > { %s10797_s25 = sld [smem:[#allocation46_spill]] }
 0x1fa   : > { %s650_s22 = sand.u32 1, %s10795_s8   ;;  %s9555_s20 = sand.u32 1, %s10796_s2  }
 0x1fb   : > { %s9558_s15 = sshll.u32 %s9555_s20, 4  ;;  %s651_s6 = scalar_lea.sflag [#allocation5], %s650_s22 }
 0x1fc   : > { %s654_s27 = scalar_lea.vmem [#allocation4], %s9558_s15  ;;  %p10798_p0 = scmp.ne.s32.totalorder %s10797_s25, 0 }
 0x1fe   : > { %8928 = dma.done.wait (%p10798_p0), %s651_s6, 256  }
 0x1ff   : > { %8930 = vsyncadd (%p10798_p0), %s651_s6, 4294967040  ;;  %p10799_p6 = scmp.eq.s32.totalorder %s10795_s8, 0 }
 0x201   : > { %8932 = dma.done.wait (%p10799_p6), [#allocation8], 256   ;;  %p10800_p8 = pmov %p10799_p6 }
 0x202   : > { %s666_s16 = scalar_lea.vmem [#allocation9], %s9555_s20 }
 0x203   : > { %8934 = vsyncadd (%p10800_p8), [#allocation8], 4294967040 }
 0x204   : > { %8936 = dma.done.wait (%p10798_p0), %s651_s6, 272  }
 0x205   : > { %8938 = vsyncadd (%p10798_p0), %s651_s6, 4294967024  ;;  %s675_s29 = scalar_lea.vmem [#allocation10], %s9558_s15  ;;  %p10801_p4 = pmov %p10799_p6 }
 0x207   : > { %8940 = dma.done.wait (%p10801_p4), [#allocation8], 512   ;;  %p10802_p10 = pmov %p10801_p4 }
 0x208   : > { %p10803_p11 = pmov %p10801_p4 }
 0x209   : > { %8942 = vsyncadd (%p10802_p10), [#allocation8], 4294966784 }
 0x20a   : > { %8944 = dma.done.wait (%p10803_p11), [#allocation13], 528   ;;  %p10804_p3 = pmov %p10801_p4 }
 0x20c   : > { %8946 = vsyncadd (%p10804_p3), [#allocation13], 4294966768  ;;  %p10805_p5 = pmov %p10804_p3 }
 0x20d   : > { %p10806_p2 = pmov %p10804_p3 }
 0x20e   : > { %8948 = dma.done.wait (%p10805_p5), [#allocation16], 32  }
 0x20f   : > { %8950 = vsyncadd (%p10806_p2), [#allocation16], 4294967264  ;;  %p10807_p12 = pmov %p10806_p2 }
 0x210   : > { %p10808_p13 = pmov %p10806_p2 }
 0x211   : > { %8952 = dma.done.wait (%p10807_p12), [#allocation19], 4624  }
 0x212   : > { %8954 = vsyncadd (%p10808_p13), [#allocation19], 4294962672  ;;  %p10809_p1 = pmov %p10806_p2 }
 0x214   : > { %8956 = dma.done.wait (%p10809_p1), [#allocation22], 1040   ;;  %p10810_p9 = pmov %p10809_p1 }
 0x215   : > { %p10811_p7 = pmov %p10809_p1 }
 0x216   : > { %8958 = vsyncadd (%p10810_p9), [#allocation22], 4294966256 }
 0x217   : > { %8960 = dma.done.wait (%p10811_p7), [#allocation25], 32   ;;  %p10812_p0 = pmov %p10809_p1 }
 0x219   : > { %8962 = vsyncadd (%p10812_p0), [#allocation25], 4294967264  ;;  %p10813_p6 = pmov %p10812_p0 }
 0x21a   : > { %p10814_p8 = pmov %p10812_p0 }
 0x21b   : > { %8964 = dma.done.wait (%p10813_p6), [#allocation28], 16  }
 0x21c   : > { %8966 = vsyncadd (%p10814_p8), [#allocation28], 4294967280  ;;  %v793_v0 = vld [vmem:[#allocation11] sm:$0xff]  ;;  %v794_v1 = vld [vmem:[#allocation11 + $0x8] sm:$0xff]  ;;  %vm804_vm0 = vcmask 261120   ;;  %vm1345_vm1 = vcmask 130048  }
 0x21d   : > { %v795_v2 = vld [vmem:[#allocation11 + $0x10] sm:$0xff]  ;;  %v812_v3 = vand.u32 4294901760, %v793_v0  ;;  %v815_v4 = vand.u32 4294901760, %v794_v1  ;;  %v796_v5 = vld [vmem:[#allocation11 + $0x18] sm:$0xff]  ;;  %v6599_v50 = vld [vmem:[#allocation12] ss:$0 sm:$0xff] }
 0x21e   : > { %v818_v6 = vand.u32 4294901760, %v795_v2  ;;  %v781_v7 = vld [vmem:[%s654_s27] sm:$0xff]  ;;  %v821_v9 = vand.u32 4294901760, %v796_v5  ;;  %v782_v11 = vld [vmem:[%s654_s27 + $0x8] sm:$0xff]  ;;  %s9005_s17 = smov 80   ;;  %s9006_s21 = smov 96  }
 0x21f   : > { %v783_v8 = vld [vmem:[#allocation7] sm:$0xff]  ;;  %v784_v12 = vld [vmem:[#allocation7 + $0x8] sm:$0xff]  ;;  %v9609_v13 = vpack.c.bf16 %v815_v4, %v812_v3  ;;  %v902_v15 = vsub.f32 %v793_v0, %v812_v3  ;;  %v909_v16 = vsub.f32 %v794_v1, %v815_v4  ;;  %s9007_s0 = smov 112   ;;  %s9009_s4 = smov 64   ;;  %vm3470_vm4 = vcmask 261248  }
 0x220   : > { %v9605_v10 = vadd.f32 %v783_v8, %v781_v7  ;;  %v9611_v14 = vadd.f32 %v784_v12, %v782_v11  ;;  %v9613_v17 = vpack.c.bf16 %v821_v9, %v818_v6  ;;  %v916_v19 = vsub.f32 %v795_v2, %v818_v6  ;;  %s9010_s28 = smov 48   ;;  %s9011_s5 = smov 16  }
 0x221   : > { %v923_v20 = vsub.f32 %v796_v5, %v821_v9  ;;  %7588 = vmatprep.subr.bf16.mxu0 %v9609_v13  ;;  %v903_v23 = vand.u32 4294901760, %v902_v15  ;;  %v910_v24 = vand.u32 4294901760, %v909_v16  ;;  %v7603_v46 = vpack.c.bf16 %v909_v16, %v902_v15  ;;  %s9013_s7 = smov 32   ;;  %s10879_s9 = sld [smem:[#allocation47_spill]] }
 0x222   : > { %v806_v18 = vsel %vm804_vm0, %v9605_v10, 0  ;;  %v809_v22 = vsel %vm804_vm0, %v9611_v14, 0  ;;  %7590 = vmatpush3.bf16.msra.mxu0 %v9609_v13  ;;  %v917_v26 = vand.u32 4294901760, %v916_v19  ;;  %vm4079_vm7 = vcmask 257024   ;;  %s6614_s26 = sshll.u32 %s10795_s8, 8  ;;  %s780_s19 = scalar_lea.vmem [#allocation29], %s9558_s15 }
 0x223   : > { %v880_v21 = vand.u32 4294901760, %v806_v18  ;;  %v890_v25 = vand.u32 4294901760, %v809_v22  ;;  %v924_v27 = vand.u32 4294901760, %v923_v20  ;;  %7592 = vmatprep.subr.bf16.mxu0 %v9613_v17  ;;  %v904_v29 = vsub.f32 %v902_v15, %v903_v23  ;;  %s6325_s2 = sshll.u32 %s780_s19, 4  ;;  %s10881_s6 = sld [smem:[#allocation75_spill]]  ;;  %s10579_s2 = int_to_ptr.vmem [resolvable:$true] %s6325_s2 }
 0x224   : > { %v911_v30 = vsub.f32 %v909_v16, %v910_v24  ;;  %v918_v32 = vsub.f32 %v916_v19, %v917_v26  ;;  %v7607_v47 = vpack.c.bf16 %v923_v20, %v916_v19  ;;  %v7619_v48 = vpack.c.bf16 %v910_v24, %v903_v23  ;;  %s6312_s8 = scalar_lea.sflag [#allocation6], %s9555_s20  ;;  %s8883_s15 = scalar_lea.vmem %s10579_s2, 256 }
 0x225   : > { %v881_v28 = vsub.f32 %v806_v18, %v880_v21  ;;  %v891_v31 = vsub.f32 %v809_v22, %v890_v25  ;;  %v925_v33 = vsub.f32 %v923_v20, %v924_v27  ;;  %v905_v35 = vand.u32 4294901760, %v904_v29  ;;  %p8884_p4 = scmp.ne.s32.totalorder %s10579_s2, %s8883_s15 }
 0x226   : > { %v912_v36 = vand.u32 4294901760, %v911_v30  ;;  %7594 = vmatpush3.bf16.msra.mxu0 %v9613_v17  ;;  %v919_v38 = vand.u32 4294901760, %v918_v32  ;;  %v7623_v49 = vpack.c.bf16 %v924_v27, %v917_v26  ;;  %vm4151_vm10 = vcmask 523264  }
 0x227   : > { %v882_v34 = vand.u32 4294901760, %v881_v28  ;;  %v892_v37 = vand.u32 4294901760, %v891_v31  ;;  %v926_v39 = vand.u32 4294901760, %v925_v33  ;;  %vm4154_vm11 = vcmask 785408   ;;  %p10883_p10 = scmp.ne.s32.totalorder %s10879_s9, 0 }
 0x228   : > { %v7595_v41 = vpack.c.bf16 %v912_v36, %v905_v35 }
 0x229   : > { %v883_v40 = vsub.f32 %v881_v28, %v882_v34  ;;  %v893_v42 = vsub.f32 %v891_v31, %v892_v37  ;;  %v7599_v45 = vpack.c.bf16 %v926_v39, %v919_v38  ;;  %s10577_s27 = scalar_lea.hbm %s10881_s6, %s6614_s26  ;;  %p8885_p11 = pnand %p8884_p4, %p10883_p10 }
 0x22a   : > { %7596 = vmatprep.subr.bf16.mxu0 %v7595_v41 }
 0x22b   : > { %v884_v43 = vand.u32 4294901760, %v883_v40  ;;  %v894_v44 = vand.u32 4294901760, %v893_v42  ;;  %p8886_p3 = pneg %p8885_p11 }
 0x22d   : > { %7115 = vmatprep.mubr.f32.mxu0 %v884_v43 }
 0x22e   : > { %7116 = vmatmul.mubr.f32.vlgmr.msra.gmra.mrb[0].mxu0 %v894_v44 }
 0x22f   : > { %7598 = vmatpush3.bf16.msra.mxu0 %v7595_v41  ;;  %7126 = vmatprep.mubr.f32.mxu0 %v880_v21 }
 0x230   : > { %7600 = vmatprep.subr.bf16.mxu0 %v7599_v45 }
 0x233   : > { %7602 = vmatpush3.bf16.msra.mxu0 %v7599_v45 }
 0x234   : > { %7604 = vmatprep.subr.bf16.mxu0 %v7603_v46 }
 0x236   : > { %7127 = vmatmul.mubr.f32.vlgmr.msra.gmra.mrb[0].mxu0 %v890_v25 }
 0x237   : > { %7606 = vmatpush3.bf16.msra.mxu0 %v7603_v46  ;;  %7137 = vmatprep.mubr.f32.mxu0 %v881_v28 }
 0x238   : > { %7608 = vmatprep.subr.bf16.mxu0 %v7607_v47 }
 0x23b   : > { %7610 = vmatpush3.bf16.msra.mxu0 %v7607_v47 }
 0x23c   : > { %7612 = vmatprep.subr.bf16.mxu0 %v9609_v13 }
 0x23e   : > { %7138 = vmatmul.mubr.f32.vlgmr.msra.gmra.mrb[0].mxu0 %v891_v31 }
 0x23f   : > { %7614 = vmatpush3.bf16.msra.mxu0 %v9609_v13  ;;  %7148 = vmatprep.mubr.f32.mxu0 %v882_v34 }
 0x240   : > { %7616 = vmatprep.subr.bf16.mxu0 %v9613_v17 }
 0x243   : > { %7618 = vmatpush3.bf16.msra.mxu0 %v9613_v17 }
 0x244   : > { %7620 = vmatprep.subr.bf16.mxu0 %v7619_v48 }
 0x246   : > { %7149 = vmatmul.mubr.f32.vlgmr.msra.gmra.mrb[0].mxu0 %v892_v37 }
 0x247   : > { %7622 = vmatpush3.bf16.msra.mxu0 %v7619_v48  ;;  %7159 = vmatprep.mubr.f32.mxu0 %v880_v21 }
 0x248   : > { %7624 = vmatprep.subr.bf16.mxu0 %v7623_v49 }
 0x24b   : > { %7626 = vmatpush3.bf16.msra.mxu0 %v7623_v49 }
 0x24c   : > { %7628 = vmatprep.subr.bf16.mxu0 %v9609_v13 }
 0x24e   : > { %7160 = vmatmul.mubr.f32.vlgmr.msra.gmra.mrb[0].mxu0 %v890_v25 }
 0x24f   : > { %7630 = vmatpush3.bf16.msra.mxu0 %v9609_v13  ;;  %7170 = vmatprep.mubr.f32.mxu0 %v880_v21 }
 0x250   : > { %7632 = vmatprep.subr.bf16.mxu0 %v9613_v17 }
 0x253   : > { %7634 = vmatpush3.bf16.msra.mxu0 %v9613_v17 }
 0x256   : > { %7171 = vmatmul.mubr.f32.vlgmr.msra.gmra.mrb[0].mxu0 %v890_v25 }
 0x329   : > { %v7172_v51 = vpop.f32.mrb[0].mxu0 }
 0x32a   : > { %v9631_v52 = vadd.f32 %v7172_v51, %v6599_v50  ;;  %v1329_v53 = vpop.f32.mrb[1].mxu0 }
 0x32b   : > { %v9633_v54 = vadd.f32 %v6599_v50, %v1329_v53 }
 0x32c   : > { %2410 = vrot.lane.b32.xlu1 %v9631_v52, %s9005_s17  ;;  %v1348_v61 = vsel %vm1345_vm1, %v9631_v52, 0 }
 0x32d   : > { %1341 = vrot.lane.b32.xlu0 %v9633_v54, %s9006_s21  ;;  %v1346_v55 = vsel %vm1345_vm1, %v9633_v54, 0  ;;  %v9650_v63 = vand.u32 4294901760, %v1348_v61 }
 0x32e   : > { %v9640_v56 = vand.u32 4294901760, %v1346_v55 }
 0x32f   : > { %v1432_v4 = vsub.f32 %v1348_v61, %v9650_v63 }
 0x330   : > { %2408 = vrot.lane.b32.xlu1 %v9633_v54, %s9005_s17  ;;  %v1422_v57 = vsub.f32 %v1346_v55, %v9640_v56 }
 0x331   : > { %1343 = vrot.lane.b32.xlu0 %v9631_v52, %s9006_s21  ;;  %v1433_v11 = vand.u32 4294901760, %v1432_v4 }
 0x332   : > { %v1423_v58 = vand.u32 4294901760, %v1422_v57 }
 0x333   : > { %v1434_v16 = vsub.f32 %v1432_v4, %v1433_v11 }
 0x334   : > { %2406 = vrot.lane.b32.xlu1 %v9631_v52, %s9007_s0  ;;  %v1424_v59 = vsub.f32 %v1422_v57, %v1423_v58 }
 0x335   : > { %2404 = vrot.lane.b32.xlu0 %v9633_v54, %s9007_s0  ;;  %v1435_v19 = vand.u32 4294901760, %v1434_v16 }
 0x336   : > { %v1425_v60 = vand.u32 4294901760, %v1424_v59  ;;  %v787_v59 = vld [vmem:[%s666_s16] sm:$0x1]  ;;  %s9014_s16 = smov [#allocation29]  }
 0x337   : > { %vm788_vm2 = vcmp.gt.f32.partialorder %v787_v59, 0.5 }
 0x338   : > { %7177 = vmatprep.mubr.f32.mxu1 %v1425_v60 }
 0x39e   : > { %v2411_v22 = vpop.permute.xlu1 %2410 }
 0x39f   : > { %v1342_v62 = vpop.permute.xlu0 %1341  ;;  %v2418_v27 = vsel %vm1345_vm1, %v2411_v22, 0 }
 0x3a0   : > { %v1350_v0 = vsel %vm1345_vm1, %v1342_v62, 0  ;;  %v2424_v30 = vand.u32 4294901760, %v2418_v27 }
 0x3a1   : > { %v1355_v1 = vand.u32 4294901760, %v1350_v0 }
 0x3a2   : > { %v2409_v23 = vpop.permute.xlu1 %2408  ;;  %v2516_v34 = vsub.f32 %v2418_v27, %v2424_v30 }
 0x3a3   : > { %v1443_v2 = vsub.f32 %v1350_v0, %v1355_v1  ;;  %v1344_v3 = vpop.permute.xlu0 %1343  ;;  %v2416_v25 = vsel %vm1345_vm1, %v2409_v23, 0 }
 0x3a4   : > { %v1352_v5 = vsel %vm1345_vm1, %v1344_v3, 0  ;;  %v2421_v28 = vand.u32 4294901760, %v2416_v25  ;;  %v2517_v38 = vand.u32 4294901760, %v2516_v34 }
 0x3a5   : > { %v1444_v6 = vand.u32 4294901760, %v1443_v2  ;;  %v1358_v7 = vand.u32 4294901760, %v1352_v5 }
 0x3a6   : > { %v2509_v32 = vsub.f32 %v2416_v25, %v2421_v28  ;;  %v2407_v33 = vpop.permute.xlu1 %2406  ;;  %v7683_v41 = vpack.c.bf16 %v2424_v30, %v2421_v28  ;;  %v2518_v43 = vsub.f32 %v2516_v34, %v2517_v38 }
 0x3a7   : > { %v7635_v8 = vpack.c.bf16 %v1358_v7, %v1355_v1  ;;  %v1450_v9 = vsub.f32 %v1352_v5, %v1358_v7  ;;  %v1445_v12 = vsub.f32 %v1443_v2, %v1444_v6  ;;  %v2405_v26 = vpop.permute.xlu0 %2404  ;;  %v2414_v35 = vsel %vm1345_vm1, %v2407_v33, 0 }
 0x3a8   : > { %v2412_v29 = vsel %vm1345_vm1, %v2405_v26, 0  ;;  %v2510_v37 = vand.u32 4294901760, %v2509_v32  ;;  %v2497_v39 = vand.u32 4294901760, %v2414_v35  ;;  %v2519_v48 = vand.u32 4294901760, %v2518_v43 }
 0x3a9   : > { %v1451_v13 = vand.u32 4294901760, %v1450_v9  ;;  %7636 = vmatprep.subr.bf16.mxu1 %v7635_v8  ;;  %v1446_v17 = vand.u32 4294901760, %v1445_v12  ;;  %v7643_v21 = vpack.c.bf16 %v1450_v9, %v1443_v2  ;;  %v2487_v31 = vand.u32 4294901760, %v2412_v29 }
 0x3aa   : > { %7638 = vmatpush3.bf16.xpose.msra.mxu1 %v7635_v8  ;;  %v2511_v42 = vsub.f32 %v2509_v32, %v2510_v37  ;;  %v2498_v44 = vsub.f32 %v2414_v35, %v2497_v39  ;;  %v7691_v55 = vpack.c.bf16 %v2516_v34, %v2509_v32 }
 0x3ab   : > { %v1452_v15 = vsub.f32 %v1450_v9, %v1451_v13  ;;  %v7651_v24 = vpack.c.bf16 %v1451_v13, %v1444_v6  ;;  %v2488_v36 = vsub.f32 %v2412_v29, %v2487_v31 }
 0x3ac   : > { %v2512_v46 = vand.u32 4294901760, %v2511_v42  ;;  %v2499_v47 = vand.u32 4294901760, %v2498_v44 }
 0x3ad   : > { %v1453_v18 = vand.u32 4294901760, %v1452_v15  ;;  %v2489_v40 = vand.u32 4294901760, %v2488_v36 }
 0x3ae   : > { %v7687_v50 = vpack.c.bf16 %v2519_v48, %v2512_v46  ;;  %v2500_v51 = vsub.f32 %v2498_v44, %v2499_v47 }
 0x3af   : > { %v7639_v20 = vpack.c.bf16 %v1453_v18, %v1446_v17  ;;  %v2490_v45 = vsub.f32 %v2488_v36, %v2489_v40 }
 0x3b0   : > { %v2501_v53 = vand.u32 4294901760, %v2500_v51 }
 0x3b1   : > { %7178 = vmatmul.mubr.f32.vlgmr.msra.gmra.mrb[0].mxu1 %v1435_v19  ;;  %7640 = vmatprep.subr.bf16.mxu1 %v7639_v20  ;;  %v2491_v49 = vand.u32 4294901760, %v2490_v45 }
 0x3b2   : > { %7642 = vmatpush3.bf16.xpose.msra.mxu1 %v7639_v20  ;;  %7184 = vmatprep.mubr.f32.mxu1 %v9640_v56 }
 0x3b3   : > { %7644 = vmatprep.subr.bf16.mxu1 %v7643_v21 }
 0x3b9   : > { %7185 = vmatmul.mubr.f32.vlgmr.msra.gmra.mrb[0].mxu1 %v9650_v63 }
 0x3ba   : > { %7646 = vmatpush3.bf16.xpose.msra.mxu1 %v7643_v21  ;;  %7191 = vmatprep.mubr.f32.mxu1 %v1422_v57  ;;  %v9008_v57 = vmov 0  }
 0x3bb   : > { %7648 = vmatprep.subr.bf16.mxu1 %v7635_v8  ;;  %8404 = vset.pattern.permute.xlu0 %v9008_v57  ;;  %v1858_v62 = vsel %vm788_vm2, 1, %v9008_v57 }
 0x3bc   : > { %8403 = vset.pattern.permute.xlu1 %v9008_v57 }
 0x3c1   : > { %7192 = vmatmul.mubr.f32.vlgmr.msra.gmra.mrb[0].mxu1 %v1432_v4 }
 0x3c2   : > { %7650 = vmatpush3.bf16.xpose.msra.mxu1 %v7635_v8  ;;  %7198 = vmatprep.mubr.f32.mxu1 %v1423_v58  ;;  %v1859_v58 = vlaneseq }
 0x3c3   : > { %7652 = vmatprep.subr.bf16.mxu1 %v7651_v24 }
 0x3c4   : > { %v1860_v60 = vshrl.u32 %v1859_v58, 7 }
 0x3c6   : > { %v1861_v61 = vsub.s32 0, %v1860_v60 }
 0x3c9   : > { %7199 = vmatmul.mubr.f32.vlgmr.msra.gmra.mrb[0].mxu1 %v1433_v11 }
 0x3ca   : > { %7654 = vmatpush3.bf16.xpose.msra.mxu1 %v7651_v24  ;;  %7205 = vmatprep.mubr.f32.mxu1 %v9640_v56 }
 0x3cb   : > { %7656 = vmatprep.subr.bf16.mxu1 %v7635_v8 }
 0x3d1   : > { %7206 = vmatmul.mubr.f32.vlgmr.msra.gmra.mrb[0].mxu1 %v9650_v63 }
 0x3d2   : > { %7658 = vmatpush3.bf16.xpose.msra.mxu1 %v7635_v8  ;;  %7212 = vmatprep.mubr.f32.mxu1 %v9640_v56  ;;  %v7699_v56 = vpack.c.bf16 %v2517_v38, %v2510_v37 }
 0x3d3   : > { %7684 = vmatprep.subr.bf16.mxu1 %v7683_v41 }
 0x3d9   : > { %7213 = vmatmul.mubr.f32.vlgmr.msra.gmra.mrb[0].mxu1 %v9650_v63  ;;  %v1862_v63 = vrot.slane %v1858_v62, %v1861_v61 }
 0x3da   : > { %7686 = vmatpush3.bf16.xpose.msra.mxu1 %v7683_v41  ;;  %7261 = vmatprep.mubr.f32.mxu1 %v2491_v49 }
 0x3db   : > { %7688 = vmatprep.subr.bf16.mxu1 %v7687_v50  ;;  %vm1863_vm3 = vcmp.eq.s32.totalorder %v1862_v63, 1 }
 0x3e1   : > { %7262 = vmatmul.mubr.f32.vlgmr.msra.gmra.mrb[2].mxu1 %v2501_v53 }
 0x3e2   : > { %7690 = vmatpush3.bf16.xpose.msra.mxu1 %v7687_v50  ;;  %7268 = vmatprep.mubr.f32.mxu1 %v2487_v31 }
 0x3e3   : > { %7692 = vmatprep.subr.bf16.mxu1 %v7691_v55 }
 0x3e9   : > { %7269 = vmatmul.mubr.f32.vlgmr.msra.gmra.mrb[2].mxu1 %v2497_v39 }
 0x3ea   : > { %7694 = vmatpush3.bf16.xpose.msra.mxu1 %v7691_v55  ;;  %7275 = vmatprep.mubr.f32.mxu1 %v2488_v36 }
 0x3eb   : > { %7696 = vmatprep.subr.bf16.mxu1 %v7683_v41 }
 0x3f1   : > { %7276 = vmatmul.mubr.f32.vlgmr.msra.gmra.mrb[2].mxu1 %v2498_v44 }
 0x3f2   : > { %7698 = vmatpush3.bf16.xpose.msra.mxu1 %v7683_v41  ;;  %7282 = vmatprep.mubr.f32.mxu1 %v2489_v40 }
 0x3f3   : > { %7700 = vmatprep.subr.bf16.mxu1 %v7699_v56 }
 0x3f9   : > { %7283 = vmatmul.mubr.f32.vlgmr.msra.gmra.mrb[2].mxu1 %v2499_v47 }
 0x3fa   : > { %7702 = vmatpush3.bf16.xpose.msra.mxu1 %v7699_v56  ;;  %7289 = vmatprep.mubr.f32.mxu1 %v2487_v31 }
 0x3fb   : > { %7704 = vmatprep.subr.bf16.mxu1 %v7683_v41 }
 0x401   : > { %7290 = vmatmul.mubr.f32.vlgmr.msra.gmra.mrb[2].mxu1 %v2497_v39 }
 0x402   : > { %7706 = vmatpush3.bf16.xpose.msra.mxu1 %v7683_v41  ;;  %7296 = vmatprep.mubr.f32.mxu1 %v2487_v31 }
 0x409   : > { %7297 = vmatmul.mubr.f32.vlgmr.msra.gmra.mrb[2].mxu1 %v2497_v39 }
 0x4ac   : > { %v7214_v0 = vpop.f32.mrb[0].mxu1 }
 0x4ad   : > { %v1857_v1 = vmul.f32 0.25, %v7214_v0  ;;  %v1846_v2 = vpop.f32.mrb[1].mxu1 }
 0x4ae   : > { %v1856_v3 = vmul.f32 0.25, %v1846_v2 }
 0x4af   : > { %v1865_v4 = vsel %vm1863_vm3, -inf, %v1857_v1 }
 0x4b0   : > { %v1869_v5 = vsel %vm1345_vm1, %v1865_v4, -inf  ;;  %v1864_v6 = vsel %vm1863_vm3, -inf, %v1856_v3 }
 0x4b1   : > { %1870 = vmax.xlane.f32.xlu1 %v1869_v5  ;;  %v1866_v7 = vsel %vm1345_vm1, %v1864_v6, -inf }
 0x4b2   : > { %1867 = vmax.xlane.f32.xlu0 %v1866_v7 }
 0x4dc   : > { %v7298_v8 = vpop.f32.mrb[2].mxu1 }
 0x4dd   : > { %v2912_v9 = vpop.f32.mrb[3].mxu1  ;;  %v2923_v11 = vmul.f32 0.25, %v7298_v8 }
 0x4de   : > { %v2922_v12 = vmul.f32 0.25, %v2912_v9 }
 0x4df   : > { %v2925_v16 = vsel %vm1863_vm3, -inf, %v2923_v11 }
 0x4e0   : > { %v2924_v13 = vsel %vm1863_vm3, -inf, %v2922_v12  ;;  %v2929_v17 = vsel %vm1345_vm1, %v2925_v16, -inf }
 0x4e1   : > { %v2926_v15 = vsel %vm1345_vm1, %v2924_v13, -inf }
 0x4e2   : > { %2927 = vmax.xlane.f32.xlu0 %v2926_v15 }
 0x4e6   : > { %2930 = vmax.xlane.f32.xlu0 %v2929_v17 }
 0x53e   : > { %v1871_v18 = vpop.xlane.xlu1 %1870 }
 0x53f   : > { %v1873_v19 = vsub.f32 %v1865_v4, %v1871_v18  ;;  %v1868_v20 = vpop.xlane.xlu0 %1867 }
 0x540   : > { %v1872_v21 = vsub.f32 %v1864_v6, %v1868_v20 }
 0x541   : > { %v1876_v22 = vmul.f32 1.442695, %v1873_v19 }
 0x542   : > { %v1874_v23 = vmul.f32 1.442695, %v1872_v21 }
 0x543   : > { %8405 = vpow2.f32 %v1876_v22 }
 0x544   : > { %8407 = vpow2.f32 %v1874_v23 }
 0x54d   : > { %v8406_v24 = vpop.eup %8405 }
 0x54e   : > { %v8408_v25 = vpop.eup %8407  ;;  %v1881_v26 = vsel %vm1345_vm1, %v8406_v24, 0.0 }
 0x54f   : > { %1882 = vadd.xlane.f32.xlu0 %v1881_v26  ;;  %v1878_v27 = vsel %vm1345_vm1, %v8408_v25, 0.0 }
 0x550   : > { %1879 = vadd.xlane.f32.xlu1 %v1878_v27 }
 0x561   : > { %1888 = vrot.lane.b32.xlu1 %v9633_v54, %s9009_s4 }
 0x565   : > { %1890 = vrot.lane.b32.xlu0 %v9631_v52, %s9009_s4 }
 0x56f   : > { %v2928_v28 = vpop.xlane.xlu0 %2927 }
 0x570   : > { %v2932_v29 = vsub.f32 %v2924_v13, %v2928_v28 }
 0x572   : > { %v2934_v30 = vmul.f32 1.442695, %v2932_v29 }
 0x573   : > { %v2931_v31 = vpop.xlane.xlu0 %2930 }
 0x574   : > { %v2933_v32 = vsub.f32 %v2925_v16, %v2931_v31  ;;  %8409 = vpow2.f32 %v2934_v30 }
 0x576   : > { %v2936_v33 = vmul.f32 1.442695, %v2933_v32 }
 0x578   : > { %8411 = vpow2.f32 %v2936_v33 }
 0x57e   : > { %v9684_v34 = vpop.eup %8409 }
 0x57f   : > { %v2938_v37 = vsel %vm1345_vm1, %v9684_v34, 0.0 }
 0x582   : > { %v9686_v35 = vpop.eup %8411 }
 0x583   : > { %v2941_v36 = vsel %vm1345_vm1, %v9686_v35, 0.0 }
 0x584   : > { %2942 = vadd.xlane.f32.xlu0 %v2941_v36 }
 0x585   : > { %2939 = vadd.xlane.f32.xlu1 %v2938_v37 }
 0x596   : > { %2948 = vrot.lane.b32.xlu1 %v9633_v54, %s9010_s28 }
 0x59a   : > { %2950 = vrot.lane.b32.xlu0 %v9631_v52, %s9010_s28 }
 0x5dc   : > { %v1883_v38 = vpop.xlane.xlu0 %1882 }
 0x5dd   : > { %8413 = vrcp.f32 %v1883_v38  ;;  %v1880_v39 = vpop.xlane.xlu1 %1879 }
 0x5de   : > { %8415 = vrcp.f32 %v1880_v39 }
 0x5e0   : > { %v1891_v40 = vpop.permute.xlu0 %1890 }
 0x5e1   : > { %v1904_v41 = vand.u32 4294901760, %v1891_v40  ;;  %v1889_v42 = vpop.permute.xlu1 %1888 }
 0x5e2   : > { %v1901_v43 = vand.u32 4294901760, %v1889_v42 }
 0x5e3   : > { %v1996_v44 = vsub.f32 %v1891_v40, %v1904_v41 }
 0x5e4   : > { %v7659_v45 = vpack.c.bf16 %v1904_v41, %v1901_v43  ;;  %v1989_v46 = vsub.f32 %v1889_v42, %v1901_v43 }
 0x5e5   : > { %v1997_v47 = vand.u32 4294901760, %v1996_v44 }
 0x5e6   : > { %v1990_v48 = vand.u32 4294901760, %v1989_v46  ;;  %7660 = vmatprep.subr.bf16.mxu0 %v7659_v45  ;;  %v7667_v7 = vpack.c.bf16 %v1996_v44, %v1989_v46 }
 0x5e7   : > { %v8414_v49 = vpop.eup %8413  ;;  %v1998_v50 = vsub.f32 %v1996_v44, %v1997_v47  ;;  %7662 = vmatpush3.bf16.msra.mxu0 %v7659_v45 }
 0x5e8   : > { %v8416_v54 = vpop.eup %8415  ;;  %v1887_v51 = vmul.f32 %v8414_v49, %v8406_v24  ;;  %v1991_v52 = vsub.f32 %v1989_v46, %v1990_v48  ;;  %v7675_v8 = vpack.c.bf16 %v1997_v47, %v1990_v48  ;;  %v3475_v47 = vld [vmem:[#allocation14] sm:$0xff]  ;;  %v3476_v48 = vld [vmem:[#allocation14 + $0x8] sm:$0xff]  ;;  %v3477_v49 = vld [vmem:[#allocation14 + $0x10] sm:$0xff] }
 0x5e9   : > { %v1885_v53 = vmul.f32 %v8416_v54, %v8408_v25  ;;  %v1999_v55 = vand.u32 4294901760, %v1998_v50  ;;  %v3493_v50 = vand.u32 4294901760, %v3475_v47  ;;  %v3496_v54 = vand.u32 4294901760, %v3476_v48 }
 0x5ea   : > { %v1992_v56 = vand.u32 4294901760, %v1991_v52  ;;  %v1898_v58 = vsel %vm1345_vm1, %v1887_v51, 0  ;;  %v3478_v51 = vld [vmem:[#allocation14 + $0x18] sm:$0xff]  ;;  %v3499_v52 = vand.u32 4294901760, %v3477_v49 }
 0x5eb   : > { %v1895_v59 = vsel %vm1345_vm1, %v1885_v53, 0  ;;  %v1977_v60 = vand.u32 4294901760, %v1898_v58  ;;  %v3502_v53 = vand.u32 4294901760, %v3478_v51 }
 0x5ec   : > { %v7663_v61 = vpack.c.bf16 %v1999_v55, %v1992_v56  ;;  %v1967_v62 = vand.u32 4294901760, %v1895_v59  ;;  %v9702_v55 = vpack.c.bf16 %v3496_v54, %v3493_v50 }
 0x5ed   : > { %v1978_v63 = vsub.f32 %v1898_v58, %v1977_v60  ;;  %v9704_v56 = vpack.c.bf16 %v3502_v53, %v3499_v52 }
 0x5ee   : > { %7664 = vmatprep.subr.bf16.mxu0 %v7663_v61  ;;  %v1968_v0 = vsub.f32 %v1895_v59, %v1967_v62 }
 0x5ef   : > { %v1979_v1 = vand.u32 4294901760, %v1978_v63 }
 0x5f0   : > { %v1969_v2 = vand.u32 4294901760, %v1968_v0 }
 0x5f1   : > { %v1980_v3 = vsub.f32 %v1978_v63, %v1979_v1 }
 0x5f2   : > { %v1970_v4 = vsub.f32 %v1968_v0, %v1969_v2 }
 0x5f3   : > { %v1981_v6 = vand.u32 4294901760, %v1980_v3  ;;  %v3604_v3 = vsub.f32 %v3478_v51, %v3502_v53 }
 0x5f4   : > { %v1971_v5 = vand.u32 4294901760, %v1970_v4 }
 0x5f6   : > { %7219 = vmatprep.mubr.f32.mxu0 %v1971_v5 }
 0x5f7   : > { %7220 = vmatmul.mubr.f32.vlgmr.msra.gmra.mrb[2].mxu0 %v1981_v6 }
 0x5f8   : > { %7666 = vmatpush3.bf16.msra.mxu0 %v7663_v61  ;;  %7226 = vmatprep.mubr.f32.mxu0 %v1967_v62  ;;  %v3590_v61 = vsub.f32 %v3476_v48, %v3496_v54 }
 0x5f9   : > { %7668 = vmatprep.subr.bf16.mxu0 %v7667_v7 }
 0x5ff   : > { %7227 = vmatmul.mubr.f32.vlgmr.msra.gmra.mrb[2].mxu0 %v1977_v60 }
 0x600   : > { %7670 = vmatpush3.bf16.msra.mxu0 %v7667_v7  ;;  %7233 = vmatprep.mubr.f32.mxu0 %v1968_v0  ;;  %v3605_v7 = vand.u32 4294901760, %v3604_v3 }
 0x601   : > { %7672 = vmatprep.subr.bf16.mxu0 %v7659_v45 }
 0x607   : > { %7234 = vmatmul.mubr.f32.vlgmr.msra.gmra.mrb[2].mxu0 %v1978_v63  ;;  %v3591_v63 = vand.u32 4294901760, %v3590_v61 }
 0x608   : > { %7674 = vmatpush3.bf16.msra.mxu0 %v7659_v45  ;;  %7240 = vmatprep.mubr.f32.mxu0 %v1969_v2  ;;  %v3597_v2 = vsub.f32 %v3477_v49, %v3499_v52 }
 0x609   : > { %7676 = vmatprep.subr.bf16.mxu0 %v7675_v8 }
 0x60a   : > { %v3598_v6 = vand.u32 4294901760, %v3597_v2 }
 0x60f   : > { %7241 = vmatmul.mubr.f32.vlgmr.msra.gmra.mrb[2].mxu0 %v1979_v1  ;;  %v3592_v1 = vsub.f32 %v3590_v61, %v3591_v63 }
 0x610   : > { %7678 = vmatpush3.bf16.msra.mxu0 %v7675_v8  ;;  %7247 = vmatprep.mubr.f32.mxu0 %v1967_v62 }
 0x611   : > { %7680 = vmatprep.subr.bf16.mxu0 %v7659_v45  ;;  %v2943_v9 = vpop.xlane.xlu0 %2942  ;;  %v3593_v5 = vand.u32 4294901760, %v3592_v1 }
 0x612   : > { %8417 = vrcp.f32 %v2943_v9  ;;  %v2940_v11 = vpop.xlane.xlu1 %2939  ;;  %v3599_v9 = vsub.f32 %v3597_v2, %v3598_v6 }
 0x613   : > { %8419 = vrcp.f32 %v2940_v11  ;;  %v3606_v11 = vsub.f32 %v3604_v3, %v3605_v7 }
 0x615   : > { %v2951_v12 = vpop.permute.xlu0 %2950 }
 0x616   : > { %v2964_v13 = vand.u32 4294901760, %v2951_v12  ;;  %v2949_v15 = vpop.permute.xlu1 %2948 }
 0x617   : > { %v2961_v16 = vand.u32 4294901760, %v2949_v15  ;;  %7248 = vmatmul.mubr.f32.vlgmr.msra.gmra.mrb[2].mxu0 %v1977_v60 }
 0x618   : > { %v3056_v17 = vsub.f32 %v2951_v12, %v2964_v13  ;;  %7682 = vmatpush3.bf16.msra.mxu0 %v7659_v45  ;;  %7254 = vmatprep.mubr.f32.mxu0 %v1967_v62  ;;  %v3600_v12 = vand.u32 4294901760, %v3599_v9 }
 0x619   : > { %v7707_v18 = vpack.c.bf16 %v2964_v13, %v2961_v16  ;;  %v3049_v19 = vsub.f32 %v2949_v15, %v2961_v16  ;;  %v3607_v13 = vand.u32 4294901760, %v3606_v11 }
 0x61a   : > { %v3057_v20 = vand.u32 4294901760, %v3056_v17 }
 0x61b   : > { %v3050_v21 = vand.u32 4294901760, %v3049_v19  ;;  %7708 = vmatprep.subr.bf16.mxu0 %v7707_v18  ;;  %v7715_v43 = vpack.c.bf16 %v3056_v17, %v3049_v19  ;;  %v7743_v15 = vpack.c.bf16 %v3607_v13, %v3600_v12 }
 0x61c   : > { %v8418_v22 = vpop.eup %8417  ;;  %v3058_v23 = vsub.f32 %v3056_v17, %v3057_v20  ;;  %v7751_v17 = vpack.c.bf16 %v3604_v3, %v3597_v2  ;;  %v9753_v2 = vld [vmem:[#allocation20 + $0x98] sm:$0xff] }
 0x61d   : > { %v8420_v24 = vpop.eup %8419  ;;  %v2947_v25 = vmul.f32 %v8418_v22, %v9686_v35  ;;  %v3051_v26 = vsub.f32 %v3049_v19, %v3050_v21  ;;  %v7723_v44 = vpack.c.bf16 %v3057_v20, %v3050_v21  ;;  %v7767_v19 = vpack.c.bf16 %v3605_v7, %v3598_v6  ;;  %v9758_v6 = vld [vmem:[#allocation20 + $0x10] sm:$0xff]  ;;  %v9760_v7 = vld [vmem:[#allocation20 + $0x18] sm:$0xff] }
 0x61e   : > { %v2945_v27 = vmul.f32 %v8420_v24, %v9684_v34  ;;  %v3059_v28 = vand.u32 4294901760, %v3058_v23  ;;  %v4219_v12 = vand.u32 4294901760, %v9758_v6 }
 0x61f   : > { %7255 = vmatmul.mubr.f32.vlgmr.msra.gmra.mrb[2].mxu0 %v1977_v60  ;;  %v3052_v29 = vand.u32 4294901760, %v3051_v26  ;;  %v2958_v30 = vsel %vm1345_vm1, %v2947_v25, 0  ;;  %v3583_v60 = vsub.f32 %v3475_v47, %v3493_v50 }
 0x620   : > { %7710 = vmatpush3.bf16.msra.mxu0 %v7707_v18  ;;  %v2955_v31 = vsel %vm1345_vm1, %v2945_v27, 0  ;;  %v3037_v32 = vand.u32 4294901760, %v2958_v30 }
 0x621   : > { %v7711_v33 = vpack.c.bf16 %v3059_v28, %v3052_v29  ;;  %v3027_v36 = vand.u32 4294901760, %v2955_v31  ;;  %v3584_v62 = vand.u32 4294901760, %v3583_v60  ;;  %v7747_v16 = vpack.c.bf16 %v3590_v61, %v3583_v60  ;;  %v9744_v61 = vld [vmem:[#allocation20] sm:$0xff] }
 0x622   : > { %v3038_v37 = vsub.f32 %v2958_v30, %v3037_v32  ;;  %v4213_v1 = vand.u32 4294901760, %v9744_v61 }
 0x623   : > { %7712 = vmatprep.subr.bf16.mxu0 %v7711_v33  ;;  %v3028_v38 = vsub.f32 %v2955_v31, %v3027_v36  ;;  %v3585_v0 = vsub.f32 %v3583_v60, %v3584_v62  ;;  %v9742_v60 = vld [vmem:[#allocation20 + $0x88] sm:$0xff] }
 0x624   : > { %v3039_v39 = vand.u32 4294901760, %v3038_v37  ;;  %v9775_v11 = vsub.f32 %v9744_v61, %v4213_v1 }
 0x625   : > { %v3029_v40 = vand.u32 4294901760, %v3028_v38  ;;  %v3586_v4 = vand.u32 4294901760, %v3585_v0  ;;  %v9748_v0 = vld [vmem:[#allocation20 + $0x8] sm:$0xff] }
 0x626   : > { %v3040_v35 = vsub.f32 %v3038_v37, %v3039_v39  ;;  %v4216_v3 = vand.u32 4294901760, %v9748_v0 }
 0x627   : > { %v3030_v41 = vsub.f32 %v3028_v38, %v3029_v40  ;;  %v7739_v8 = vpack.c.bf16 %v3593_v5, %v3586_v4  ;;  %v4270_v5 = vand.u32 4294901760, %v9753_v2 }
 0x628   : > { %v3041_v34 = vand.u32 4294901760, %v3040_v35  ;;  %v9781_v13 = vsub.f32 %v9748_v0, %v4216_v3 }
 0x629   : > { %v3031_v42 = vand.u32 4294901760, %v3030_v41 }
 0x62b   : > { %7303 = vmatprep.mubr.f32.mxu0 %v3031_v42 }
 0x62c   : > { %7304 = vmatmul.mubr.f32.vlgmr.msra.gmra.mrb[4].mxu0 %v3041_v34 }
 0x62d   : > { %7714 = vmatpush3.bf16.msra.mxu0 %v7711_v33  ;;  %7310 = vmatprep.mubr.f32.mxu0 %v3027_v36 }
 0x62e   : > { %7716 = vmatprep.subr.bf16.mxu0 %v7715_v43 }
 0x634   : > { %7311 = vmatmul.mubr.f32.vlgmr.msra.gmra.mrb[4].mxu0 %v3037_v32 }
 0x635   : > { %7718 = vmatpush3.bf16.msra.mxu0 %v7715_v43  ;;  %7317 = vmatprep.mubr.f32.mxu0 %v3028_v38  ;;  %v6600_v38 = vld [vmem:[#allocation15] ss:$0 sm:$0xff] }
 0x636   : > { %7720 = vmatprep.subr.bf16.mxu0 %v7707_v18 }
 0x63c   : > { %7318 = vmatmul.mubr.f32.vlgmr.msra.gmra.mrb[4].mxu0 %v3038_v37 }
 0x63d   : > { %7722 = vmatpush3.bf16.msra.mxu0 %v7707_v18  ;;  %7324 = vmatprep.mubr.f32.mxu0 %v3029_v40 }
 0x63e   : > { %7724 = vmatprep.subr.bf16.mxu0 %v7723_v44 }
 0x644   : > { %7325 = vmatmul.mubr.f32.vlgmr.msra.gmra.mrb[4].mxu0 %v3039_v39 }
 0x645   : > { %7726 = vmatpush3.bf16.msra.mxu0 %v7723_v44  ;;  %7331 = vmatprep.mubr.f32.mxu0 %v3027_v36 }
 0x646   : > { %7728 = vmatprep.subr.bf16.mxu0 %v7707_v18 }
 0x64c   : > { %7332 = vmatmul.mubr.f32.vlgmr.msra.gmra.mrb[4].mxu0 %v3037_v32 }
 0x64d   : > { %7730 = vmatpush3.bf16.msra.mxu0 %v7707_v18  ;;  %7338 = vmatprep.mubr.f32.mxu0 %v3027_v36  ;;  %v7763_v18 = vpack.c.bf16 %v3591_v63, %v3584_v62  ;;  %v4264_v63 = vand.u32 4294901760, %v9742_v60 }
 0x64e   : > { %7732 = vmatprep.subr.bf16.mxu0 %v9702_v55 }
 0x64f   : > { %v9770_v9 = vsub.f32 %v9742_v60, %v4264_v63 }
 0x654   : > { %7339 = vmatmul.mubr.f32.vlgmr.msra.gmra.mrb[4].mxu0 %v3037_v32 }
 0x655   : > { %7734 = vmatpush3.bf16.msra.mxu0 %v9702_v55 }
 0x656   : > { %7736 = vmatprep.subr.bf16.mxu0 %v9704_v56 }
 0x659   : > { %7738 = vmatpush3.bf16.msra.mxu0 %v9704_v56 }
 0x65a   : > { %7740 = vmatprep.subr.bf16.mxu0 %v7739_v8 }
 0x6f2   : > { %v7256_v45 = vpop.f32.mrb[2].mxu0 }
 0x6f3   : > { %2403 = vst.msk [vmem:[#allocation2 + $0x8] sm:$0xff] %vm1345_vm1, %v7256_v45  ;;  %v2392_v46 = vpop.f32.mrb[3].mxu0  ;;  %v789_v45 = vld [vmem:[%s675_s29] sm:$0xff] }
 0x6f4   : > { %2402 = vst.msk [vmem:[#allocation2] sm:$0xff] %vm1345_vm1, %v2392_v46  ;;  %vm791_vm5 = vcmp.gt.f32.partialorder %v789_v45, 0.5 }
 0x6f5   : > { %v4067_v46 = vsel %vm791_vm5, 1, %v9008_v57 }
 0x727   : > { %v7340_v58 = vpop.f32.mrb[4].mxu0 }
 0x728   : > { %v3452_v59 = vpop.f32.mrb[5].mxu0 }
 0x729   : > { %3464 = vrot.lane.b32.xlu1 %v3452_v59, %s9011_s5  ;;  %v9740_v59 = vld [vmem:[#allocation20 + $0x80] sm:$0xff] }
 0x72a   : > { %v4261_v62 = vand.u32 4294901760, %v9740_v59 }
 0x72d   : > { %3466 = vrot.lane.b32.xlu1 %v7340_v58, %s9011_s5  ;;  %v9012_v58 = vmov 0.0  }
 0x72e   : > { %4081 = vst.msk [vmem:[#allocation3 + $0x14] sm:$0xf] %vm4079_vm7, %v9012_v58  ;;  %4080 = vst.msk [vmem:[#allocation3] sm:$0xf] %vm4079_vm7, %v9012_v58 }
 0x79b   : > { %v3465_v20 = vpop.permute.xlu1 %3464 }
 0x79c   : > { %3471 = vst.msk [vmem:[#allocation2] sm:$0xff] %vm3470_vm4, %v3465_v20  ;;  %v10702_v20 = vand.u32 4294901760, %v9775_v11 }
 0x79f   : > { %v3467_v21 = vpop.permute.xlu1 %3466 }
 0x7a0   : > { %3472 = vst.msk [vmem:[#allocation2 + $0x8] sm:$0xff] %vm3470_vm4, %v3467_v21  ;;  %v9800_v21 = vsub.f32 %v9758_v6, %v4219_v12 }
 0x7a3   : > { %v3473_v22 = vld [vmem:[#allocation2] sm:$0xff] }
 0x7a4   : > { %v3487_v23 = vsel %vm804_vm0, %v3473_v22, 0  ;;  %v10701_v22 = vand.u32 4294901760, %v9781_v13 }
 0x7a5   : > { %v3561_v24 = vand.u32 4294901760, %v3487_v23 }
 0x7a7   : > { %v3562_v25 = vsub.f32 %v3487_v23, %v3561_v24  ;;  %v3474_v26 = vld [vmem:[#allocation2 + $0x8] sm:$0xff] }
 0x7a8   : > { %v3490_v27 = vsel %vm804_vm0, %v3474_v26, 0 }
 0x7a9   : > { %v3563_v28 = vand.u32 4294901760, %v3562_v25  ;;  %v3571_v29 = vand.u32 4294901760, %v3490_v27 }
 0x7ab   : > { %v3564_v30 = vsub.f32 %v3562_v25, %v3563_v28  ;;  %v3572_v31 = vsub.f32 %v3490_v27, %v3571_v29 }
 0x7ad   : > { %v3565_v32 = vand.u32 4294901760, %v3564_v30  ;;  %v3573_v33 = vand.u32 4294901760, %v3572_v31  ;;  %v4350_v30 = vsub.f32 %v9781_v13, %v10701_v22 }
 0x7af   : > { %7349 = vmatprep.mubr.f32.mxu0 %v3565_v32  ;;  %v3574_v36 = vsub.f32 %v3572_v31, %v3573_v33 }
 0x7b1   : > { %v3575_v37 = vand.u32 4294901760, %v3574_v36 }
 0x7b3   : > { %7350 = vmatmul.mubr.f32.vlgmr.msra.gmra.mrb[6].mxu0 %v3575_v37 }
 0x7b4   : > { %7742 = vmatpush3.bf16.msra.mxu0 %v7739_v8  ;;  %7360 = vmatprep.mubr.f32.mxu0 %v3561_v24  ;;  %v9765_v8 = vsub.f32 %v9740_v59, %v4261_v62 }
 0x7b5   : > { %7744 = vmatprep.subr.bf16.mxu0 %v7743_v15 }
 0x7b8   : > { %7746 = vmatpush3.bf16.msra.mxu0 %v7743_v15 }
 0x7b9   : > { %7748 = vmatprep.subr.bf16.mxu0 %v7747_v16 }
 0x7bb   : > { %7361 = vmatmul.mubr.f32.vlgmr.msra.gmra.mrb[6].mxu0 %v3571_v29 }
 0x7bc   : > { %7750 = vmatpush3.bf16.msra.mxu0 %v7747_v16  ;;  %7371 = vmatprep.mubr.f32.mxu0 %v3562_v25  ;;  %v9791_v16 = vsub.f32 %v9753_v2, %v4270_v5 }
 0x7bd   : > { %7752 = vmatprep.subr.bf16.mxu0 %v7751_v17 }
 0x7c0   : > { %7754 = vmatpush3.bf16.msra.mxu0 %v7751_v17  ;;  %v4222_v17 = vand.u32 4294901760, %v9760_v7 }
 0x7c1   : > { %7756 = vmatprep.subr.bf16.mxu0 %v9702_v55 }
 0x7c2   : > { %v9808_v25 = vsub.f32 %v9760_v7, %v4222_v17 }
 0x7c3   : > { %7372 = vmatmul.mubr.f32.vlgmr.msra.gmra.mrb[6].mxu0 %v3572_v31 }
 0x7c4   : > { %7758 = vmatpush3.bf16.msra.mxu0 %v9702_v55  ;;  %7382 = vmatprep.mubr.f32.mxu0 %v3563_v28  ;;  %v4343_v28 = vsub.f32 %v9775_v11, %v10702_v20  ;;  %v10077_v20 = vld [vmem:[#allocation20 + $0xe8] sm:$0xff] }
 0x7c5   : > { %7760 = vmatprep.subr.bf16.mxu0 %v9704_v56 }
 0x7c8   : > { %7762 = vmatpush3.bf16.msra.mxu0 %v9704_v56 }
 0x7c9   : > { %7764 = vmatprep.subr.bf16.mxu0 %v7763_v18 }
 0x7cb   : > { %7383 = vmatmul.mubr.f32.vlgmr.msra.gmra.mrb[6].mxu0 %v3573_v33  ;;  %v10687_v33 = vand.u32 4294901760, %v9808_v25 }
 0x7cc   : > { %7766 = vmatpush3.bf16.msra.mxu0 %v7763_v18  ;;  %7393 = vmatprep.mubr.f32.mxu0 %v3561_v24  ;;  %v10705_v18 = vand.u32 4294901760, %v9765_v8 }
 0x7cd   : > { %7768 = vmatprep.subr.bf16.mxu0 %v7767_v19 }
 0x7ce   : > { %v4455_v26 = vsub.f32 %v9765_v8, %v10705_v18 }
 0x7d0   : > { %7770 = vmatpush3.bf16.msra.mxu0 %v7767_v19  ;;  %v10704_v19 = vand.u32 4294901760, %v9770_v9  ;;  %v4456_v36 = vand.u32 4294901760, %v4455_v26  ;;  %v9842_v26 = vld [vmem:[#allocation20 + $0x20] sm:$0xff] }
 0x7d1   : > { %7772 = vmatprep.subr.bf16.mxu0 %v9702_v55 }
 0x7d2   : > { %v4462_v27 = vsub.f32 %v9770_v9, %v10704_v19 }
 0x7d3   : > { %7394 = vmatmul.mubr.f32.vlgmr.msra.gmra.mrb[6].mxu0 %v3571_v29 }
 0x7d4   : > { %7774 = vmatpush3.bf16.msra.mxu0 %v9702_v55  ;;  %7404 = vmatprep.mubr.f32.mxu0 %v3561_v24  ;;  %v790_v55 = vld [vmem:[%s675_s29 + $0x8] sm:$0xff]  ;;  %v10691_v24 = vand.u32 4294901760, %v9791_v16  ;;  %v4463_v37 = vand.u32 4294901760, %v4462_v27  ;;  %v9844_v27 = vld [vmem:[#allocation20 + $0x28] sm:$0xff]  ;;  %s8887_s29 = sshll.u32 %s9014_s16, 4  ;;  %s8888_s29 = int_to_ptr.vmem [resolvable:$false] %s8887_s29 }
 0x7d5   : > { %7776 = vmatprep.subr.bf16.mxu0 %v9704_v56  ;;  %vm792_vm6 = vcmp.gt.f32.partialorder %v790_v55, 0.5  ;;  %v9838_v55 = vld [vmem:[#allocation20 + $0xa8] sm:$0xff]  ;;  %s8889_s17 = scalar_lea.vmem %s8888_s29, 512  ;;  %p8890_p5 = scmp.lt.s32.totalorder %s10579_s2, %s8888_s29 }
 0x7d6   : > { %v4476_v32 = vsub.f32 %v9791_v16, %v10691_v24  ;;  %v4276_v58 = vand.u32 4294901760, %v9838_v55  ;;  %p8891_p2 = scmp.lt.s32.totalorder %s8889_s17, %s8883_s15 }
 0x7d8   : > { %7778 = vmatpush3.bf16.msra.mxu0 %v9704_v56  ;;  %v4068_v56 = vsel %vm792_vm6, 1, %v9008_v57  ;;  %v9751_v57 = vld [vmem:[#allocation20 + $0x90] sm:$0xff]  ;;  %p8892_p12 = por %p8891_p2, %p8890_p5 }
 0x7d9   : > { %v4267_v4 = vand.u32 4294901760, %v9751_v57 }
 0x7da   : > { %p8893_p13 = pnand %p8892_p12, %p8886_p3 }
 0x7db   : > { %7405 = vmatmul.mubr.f32.vlgmr.msra.gmra.mrb[6].mxu0 %v3571_v29  ;;  %v9786_v15 = vsub.f32 %v9751_v57, %v4267_v4  ;;  %v10688_v29 = vand.u32 4294901760, %v9800_v21  ;;  %v9968_v57 = vpack.c.bf16 %v4222_v17, %v4219_v12  ;;  %v9982_v12 = vld [vmem:[#allocation20 + $0x48] sm:$0xff] }
 0x7dd   : > { %v10698_v23 = vand.u32 4294901760, %v9786_v15 }
 0x7df   : > { %v4469_v31 = vsub.f32 %v9786_v15, %v10698_v23 }
 0x8ae   : > { %v7406_v39 = vpop.f32.mrb[6].mxu0 }
 0x8af   : > { %v8117_v40 = vadd.f32 %v7406_v39, %v6600_v38  ;;  %v4010_v35 = vpop.f32.mrb[7].mxu0  ;;  %v4357_v39 = vsub.f32 %v9800_v21, %v10688_v29  ;;  %v9900_v29 = vpack.c.bf16 %v4264_v63, %v4261_v62 }
 0x8b0   : > { %v8118_v41 = vadd.f32 %v6600_v38, %v4010_v35  ;;  %v4344_v38 = vand.u32 4294901760, %v4343_v28  ;;  %v4470_v35 = vand.u32 4294901760, %v4469_v31  ;;  %v4225_v28 = vand.u32 4294901760, %v9842_v26 }
 0x8b1   : > { %v4021_v42 = vadd.f32 %v8117_v40, %v9611_v14  ;;  %v4351_v40 = vand.u32 4294901760, %v4350_v30  ;;  %v4228_v30 = vand.u32 4294901760, %v9844_v27  ;;  %7780 = vmatprep.subr.bf16.mxu0 %v9900_v29 }
 0x8b2   : > { %v4020_v34 = vadd.f32 %v8118_v41, %v9605_v10  ;;  %v4477_v41 = vand.u32 4294901760, %v4476_v32 }
 0x8b3   : > { %v4025_v43 = vsel %vm804_vm0, %v4021_v42, 0.0 }
 0x8b4   : > { %4026 = vadd.xlane.f32.xlu1 %v4025_v43  ;;  %v4022_v44 = vsel %vm804_vm0, %v4020_v34, 0.0  ;;  %v4358_v43 = vand.u32 4294901760, %v4357_v39  ;;  %v7815_v45 = vpack.c.bf16 %v4477_v41, %v4470_v35  ;;  %v9865_v39 = vsub.f32 %v9842_v26, %v4225_v28 }
 0x8b5   : > { %4023 = vadd.xlane.f32.xlu0 %v4022_v44  ;;  %v7813_v44 = vpack.c.bf16 %v4351_v40, %v4344_v38  ;;  %v6601_v38 = vld [vmem:[#allocation17] ss:$0 sm:$0xff]  ;;  %v9870_v40 = vsub.f32 %v9844_v27, %v4228_v30 }
 0x8c5   : > { %4070 = vperm.xlu1 %8403, %v4067_v46  }
 0x941   : > { %v4027_v47 = vpop.xlane.xlu1 %4026 }
 0x942   : > { %v4030_v48 = vmul.f32 0.03125, %v4027_v47  ;;  %v4024_v49 = vpop.xlane.xlu0 %4023 }
 0x943   : > { %v4029_v50 = vmul.f32 0.03125, %v4024_v49 }
 0x944   : > { %v9727_v14 = vsub.f32 %v4021_v42, %v4030_v48  ;;  %v4364_v42 = vsub.f32 %v9808_v25, %v10687_v33  ;;  %v6602_v33 = vld [vmem:[#allocation18] ss:$0 sm:$0xff] }
 0x945   : > { %v9729_v10 = vsub.f32 %v4020_v34, %v4029_v50  ;;  %v7811_v34 = vpack.c.bf16 %v4463_v37, %v4456_v36  ;;  %v9850_v32 = vpop.permute.xlu1 %4070  ;;  %v9860_v37 = vsub.f32 %v9838_v55, %v4276_v58 }
 0x946   : > { %v4034_v54 = vmul.f32 %v9727_v14, %v9727_v14  ;;  %v4365_v46 = vand.u32 4294901760, %v4364_v42  ;;  %10816 = vst [vmem:[#allocation52_spill] sm:$0xff] %v9850_v32  ;;  %v9875_v42 = vld [vmem:[#allocation20 + $0xb0] sm:$0xff]  ;;  %vm4075_vm9 = vcmp.eq.s32.totalorder %v9850_v32, 1 }
 0x947   : > { %v4033_v52 = vmul.f32 %v9729_v10, %v9729_v10  ;;  %7812 = vmatprep.subr.bf16.mxu1 %v7811_v34  ;;  %v10689_v41 = vand.u32 4294901760, %v9860_v37  ;;  %v9877_v34 = vld [vmem:[#allocation20 + $0xb8] sm:$0xff] }
 0x948   : > { %v4038_v51 = vsel %vm804_vm0, %v4034_v54, 0.0  ;;  %7814 = vmatpush3.bf16.msra.mxu1 %v7813_v44  ;;  %v7817_v47 = vpack.c.bf16 %v4365_v46, %v4358_v43  ;;  %v10693_v44 = vand.u32 4294901760, %v9865_v39  ;;  %v4279_v46 = vand.u32 4294901760, %v9875_v42 }
 0x949   : > { %4039 = vadd.xlane.f32.xlu0 %v4038_v51  ;;  %v4035_v53 = vsel %vm804_vm0, %v4033_v52, 0.0  ;;  %7816 = vmatprep.subr.bf16.mxu1 %v7815_v45  ;;  %v10692_v45 = vand.u32 4294901760, %v9870_v40 }
 0x94a   : > { %v9917_v60 = vsub.f32 %v9875_v42, %v4279_v46 }
 0x94c   : > { %7818 = vmatpush3.bf16.msra.mxu1 %v7817_v47  ;;  %v4282_v47 = vand.u32 4294901760, %v9877_v34 }
 0x94d   : > { %4036 = vadd.xlane.f32.xlu0 %v4035_v53  ;;  %v9836_v53 = vld [vmem:[#allocation20 + $0xa0] sm:$0xff] }
 0x94e   : > { %v9923_v0 = vsub.f32 %v9877_v34, %v4282_v47 }
 0x963   : > { %4073 = vperm.xlu0 %8404, %v4068_v56   ;;  %v4273_v56 = vand.u32 4294901760, %v9836_v53 }
 0x965   : > { %v9855_v36 = vsub.f32 %v9836_v53, %v4273_v56 }
 0x967   : > { %v10690_v35 = vand.u32 4294901760, %v9855_v36 }
 0x9d6   : > { %v4040_v48 = vpop.xlane.xlu0 %4039 }
 0x9d7   : > { %v4042_v49 = vmul.f32 0.03125, %v4040_v48  ;;  %v9884_v48 = vld [vmem:[#allocation20 + $0x30] sm:$0xff] }
 0x9d9   : > { %v4044_v50 = vadd.f32 1e-05, %v4042_v49 }
 0x9da   : > { %v4037_v54 = vpop.xlane.xlu0 %4036 }
 0x9db   : > { %8421 = vrsqrt.f32 %v4044_v50  ;;  %v4041_v51 = vmul.f32 0.03125, %v4037_v54  ;;  %v4483_v50 = vsub.f32 %v9855_v36, %v10690_v35  ;;  %v4490_v54 = vsub.f32 %v9860_v37, %v10689_v41 }
 0x9dc   : > { %v4378_v41 = vsub.f32 %v9870_v40, %v10692_v45 }
 0x9dd   : > { %v4043_v52 = vadd.f32 1e-05, %v4041_v51  ;;  %v9893_v51 = vld [vmem:[#allocation20 + $0x38] sm:$0xff]  ;;  %v4484_v59 = vand.u32 4294901760, %v4483_v50  ;;  %v4491_v24 = vand.u32 4294901760, %v4490_v54  ;;  %v10697_v54 = vand.u32 4294901760, %v9917_v60 }
 0x9de   : > { %v4379_v63 = vand.u32 4294901760, %v4378_v41 }
 0x9df   : > { %8423 = vrsqrt.f32 %v4043_v52  ;;  %v4231_v52 = vand.u32 4294901760, %v9884_v48  ;;  %v7819_v50 = vpack.c.bf16 %v4491_v24, %v4484_v59 }
 0x9e1   : > { %v9933_v41 = vsub.f32 %v9884_v48, %v4231_v52  ;;  %7820 = vmatprep.subr.bf16.mxu1 %v7819_v50 }
 0x9e2   : > { %v9848_v31 = vpop.permute.xlu0 %4073 }
 0x9e3   : > { %10815 = vst [vmem:[#allocation51_spill] sm:$0xff] %v9848_v31  ;;  %vm4076_vm8 = vcmp.eq.s32.totalorder %v9848_v31, 1  ;;  %v10695_v2 = vand.u32 4294901760, %v9933_v41 }
 0x9e5   : > { %v8422_v43 = vpop.eup %8421  ;;  %v4385_v6 = vsub.f32 %v9933_v41, %v10695_v2 }
 0x9e6   : > { %v4048_v49 = vmul.f32 %v8422_v43, %v9727_v14  ;;  %v9906_v14 = vpack.c.bf16 %v4216_v3, %v4213_v1  ;;  %v4371_v43 = vsub.f32 %v9865_v39, %v10693_v44  ;;  %v4234_v1 = vand.u32 4294901760, %v9893_v51 }
 0x9e7   : > { %v10696_v44 = vand.u32 4294901760, %v9923_v0  ;;  %v4386_v55 = vand.u32 4294901760, %v4385_v6 }
 0x9e8   : > { %v4057_v35 = vmul.f32 %v6601_v38, %v4048_v49  ;;  %v4372_v62 = vand.u32 4294901760, %v4371_v43  ;;  %7782 = vmatpush3.bf16.msra.mxu0 %v9906_v14  ;;  %v9938_v43 = vsub.f32 %v9893_v51, %v4234_v1 }
 0x9e9   : > { %v8424_v61 = vpop.eup %8423 }
 0x9ea   : > { %v4066_v3 = vadd.f32 %v6602_v33, %v4057_v35  ;;  %v4047_v49 = vmul.f32 %v8424_v61, %v9729_v10  ;;  %v7821_v45 = vpack.c.bf16 %v4379_v63, %v4372_v62  ;;  %v9940_v35 = vld [vmem:[#allocation20 + $0xc0] sm:$0xff]  ;;  %v9942_v10 = vld [vmem:[#allocation20 + $0xc8] sm:$0xff]  ;;  %v9952_v61 = vpack.c.bf16 %v4270_v5, %v4267_v4 }
 0x9eb   : > { %v4497_v62 = vsub.f32 %v9917_v60, %v10697_v54  ;;  %v9957_v63 = vld [vmem:[#allocation20 + $0x40] sm:$0xff]  ;;  %v10694_v4 = vand.u32 4294901760, %v9938_v43  ;;  %v4240_v54 = vand.u32 4294901760, %v9982_v12 }
 0x9ec   : > { %v9946_v24 = vsel %vm4076_vm8, 0.0, %v4066_v3  ;;  %v4056_v59 = vmul.f32 %v6601_v38, %v4047_v49  ;;  %7822 = vmatpush3.bf16.msra.mxu1 %v7821_v45  ;;  %v4504_v38 = vsub.f32 %v9923_v0, %v10696_v44  ;;  %7784 = vmatprep.subr.bf16.mxu0 %v9952_v61  ;;  %v4285_v45 = vand.u32 4294901760, %v9940_v35 }
 0x9ed   : > { %10817 = vst [vmem:[#allocation53_spill] sm:$0xff] %v9946_v24  ;;  %4083 = vst.msk [vmem:[#allocation3 + $0xc] sm:$0xff] %vm804_vm0, %v9946_v24  ;;  %v4498_v3 = vand.u32 4294901760, %v4497_v62  ;;  %v4288_v49 = vand.u32 4294901760, %v9942_v10  ;;  %7786 = vmatpush3.bf16.msra.mxu0 %v9968_v57  ;;  %v4392_v7 = vsub.f32 %v9938_v43, %v10694_v4  ;;  %v10712_v17 = vand.u32 4294901760, %v9957_v63  ;;  %v10005_v4 = vld [vmem:[#allocation20 + $0xd0] sm:$0xff] }
 0x9ee   : > { %v4065_v5 = vadd.f32 %v6602_v33, %v4056_v59  ;;  %v4505_v50 = vand.u32 4294901760, %v4504_v38  ;;  %v9993_v59 = vpack.c.bf16 %v4276_v58, %v4273_v56  ;;  %v9998_v62 = vsub.f32 %v9940_v35, %v4285_v45 }
 0x9ef   : > { %v10003_v38 = vsub.f32 %v9942_v10, %v4288_v49  ;;  %v4393_v56 = vand.u32 4294901760, %v4392_v7  ;;  %v10015_v58 = vpack.c.bf16 %v4228_v30, %v4225_v28  ;;  %v10707_v27 = vand.u32 4294901760, %v10005_v4 }
 0x9f0   : > { %v9987_v33 = vsel %vm4075_vm9, 0.0, %v4065_v5  ;;  %v10007_v5 = vld [vmem:[#allocation20 + $0xd8] sm:$0xff]  ;;  %v7823_v53 = vpack.c.bf16 %v4505_v50, %v4498_v3  ;;  %7788 = vmatprep.subr.bf16.mxu0 %v9993_v59  ;;  %v10700_v2 = vand.u32 4294901760, %v9998_v62  ;;  %v10024_v3 = vsub.f32 %v9957_v63, %v10712_v17  ;;  %v10026_v50 = vld [vmem:[#allocation20 + $0x50] sm:$0xff] }
 0x9f1   : > { %10818 = vst [vmem:[#allocation54_spill] sm:$0xff] %v9987_v33  ;;  %4082 = vst.msk [vmem:[#allocation3 + $0x4] sm:$0xff] %vm804_vm0, %v9987_v33  ;;  %v10699_v44 = vand.u32 4294901760, %v10003_v38  ;;  %v7825_v26 = vpack.c.bf16 %v4393_v56, %v4386_v55  ;;  %7790 = vmatpush3.bf16.msra.mxu0 %v10015_v58  ;;  %v10706_v28 = vand.u32 4294901760, %v10007_v5  ;;  %v10041_v55 = vld [vmem:[#allocation20 + $0x58] sm:$0xff]  ;;  %v10048_v56 = vpack.c.bf16 %v4282_v47, %v4279_v46  ;;  %v10065_v46 = vld [vmem:[#allocation20 + $0xe0] sm:$0xff] }
 0x9f2   : > { %7824 = vmatprep.subr.bf16.mxu1 %v7823_v53  ;;  %v4511_v6 = vsub.f32 %v9998_v62, %v10700_v2  ;;  %v10703_v23 = vand.u32 4294901760, %v10024_v3  ;;  %v10039_v53 = vsub.f32 %v9982_v12, %v4240_v54  ;;  %v10711_v2 = vand.u32 4294901760, %v10026_v50  ;;  %v4177_v33 = vld [vmem:[#allocation20 + $0x70] sm:$0xff] }
 0x9f3   : > { %v4518_v7 = vsub.f32 %v10003_v38, %v10699_v44  ;;  %7826 = vmatpush3.bf16.msra.mxu1 %v7825_v26  ;;  %v10053_v44 = vsub.f32 %v10005_v4, %v10707_v27  ;;  %v10058_v12 = vsub.f32 %v10007_v5, %v10706_v28  ;;  %7792 = vmatprep.subr.bf16.mxu0 %v10048_v56 }
 0x9f4   : > { %v4097_v30 = vld [vmem:[#allocation3 + $0xe] sm:$0xff]  ;;  %v4399_v42 = vsub.f32 %v10024_v3, %v10703_v23  ;;  %v10710_v34 = vand.u32 4294901760, %v10039_v53  ;;  %v10085_v48 = vsub.f32 %v10026_v50, %v10711_v2 }
 0x9f5   : > { %4137 = vrot.lane.b32.xlu0 %v4097_v30, %s9009_s4  ;;  %v4512_v30 = vand.u32 4294901760, %v4511_v6  ;;  %v4519_v26 = vand.u32 4294901760, %v4518_v7  ;;  %v10709_v47 = vand.u32 4294901760, %v10053_v44  ;;  %v10708_v22 = vand.u32 4294901760, %v10058_v12  ;;  %v4099_v23 = vld [vmem:[#allocation3 + $0xf] sm:$0xff] }
 0x9f6   : > { %v10074_v6 = vpack.c.bf16 %v4234_v1, %v4231_v52  ;;  %v4246_v7 = vand.u32 4294901760, %v10041_v55  ;;  %v4400_v28 = vand.u32 4294901760, %v4399_v42  ;;  %v4406_v27 = vsub.f32 %v10039_v53, %v10710_v34 }
 0x9f7   : > { %v7827_v18 = vpack.c.bf16 %v4519_v26, %v4512_v30  ;;  %v4525_v51 = vsub.f32 %v10053_v44, %v10709_v47  ;;  %v4532_v52 = vsub.f32 %v10058_v12, %v10708_v22  ;;  %v4297_v30 = vand.u32 4294901760, %v10065_v46  ;;  %v10108_v22 = vld [vmem:[#allocation20 + $0x60] sm:$0xff] }
 0x9f8   : > { %v4094_v19 = vld [vmem:[#allocation3 + $0x5] sm:$0xff]  ;;  %v10096_v1 = vsub.f32 %v10041_v55, %v4246_v7  ;;  %v4407_v26 = vand.u32 4294901760, %v4406_v27  ;;  %7794 = vmatpush3.bf16.msra.mxu0 %v10074_v6  ;;  %v4300_v42 = vand.u32 4294901760, %v10077_v20  ;;  %v4176_v27 = vld [vmem:[#allocation20 + $0x68] sm:$0xff] }
 0x9f9   : > { %4145 = vrot.lane.b32.xlu0 %v4099_v23, %s9006_s21  ;;  %4127 = vrot.lane.b32.xlu1 %v4094_v19, %s9013_s7  ;;  %v10713_v23 = vand.u32 4294901760, %v10085_v48  ;;  %v10105_v19 = vpack.c.bf16 %v4288_v49, %v4285_v45  ;;  %v4526_v55 = vand.u32 4294901760, %v4525_v51  ;;  %v4533_v47 = vand.u32 4294901760, %v4532_v52  ;;  %v4086_v2 = vld [vmem:[#allocation3 + $0x1] sm:$0xff] }
 0x9fa   : > { %7828 = vmatprep.subr.bf16.mxu1 %v7827_v18  ;;  %v10715_v34 = vand.u32 4294901760, %v10096_v1  ;;  %v10112_v18 = vsub.f32 %v10065_v46, %v4297_v30  ;;  %v7829_v17 = vpack.c.bf16 %v4407_v26, %v4400_v28  ;;  %v10119_v10 = vsub.f32 %v10077_v20, %v4300_v42  ;;  %v4193_v26 = vld [vmem:[#allocation20 + $0xf0] sm:$0xff] }
 0x9fb   : > { %v4413_v35 = vsub.f32 %v10085_v48, %v10713_v23  ;;  %7796 = vmatprep.subr.bf16.mxu0 %v10105_v19  ;;  %v10819_v45 = vand.u32 4294901760, %v9957_v63  ;;  %v7831_v46 = vpack.c.bf16 %v4533_v47, %v4526_v55  ;;  %v4249_v52 = vand.u32 4294901760, %v10108_v22  ;;  %v4194_v23 = vld [vmem:[#allocation20 + $0xf8] sm:$0xff] }
 0x9fc   : > { %v4420_v28 = vsub.f32 %v10096_v1, %v10715_v34  ;;  %v10718_v51 = vand.u32 4294901760, %v10112_v18  ;;  %7830 = vmatpush3.bf16.msra.mxu1 %v7829_v17  ;;  %v10720_v31 = vand.u32 4294901760, %v10119_v10  ;;  %v10821_v55 = vand.u32 4294901760, %v10005_v4 }
 0x9fd   : > { %v10123_v49 = vpack.c.bf16 %v4240_v54, %v10819_v45  ;;  %4103 = vrot.lane.b32.xlu1 %v4086_v2, %s9013_s7  ;;  %v4414_v20 = vand.u32 4294901760, %v4413_v35  ;;  %v4252_v54 = vand.u32 4294901760, %v4176_v27  ;;  %7832 = vmatprep.subr.bf16.mxu1 %v7831_v46  ;;  %v10137_v47 = vsub.f32 %v10108_v22, %v4249_v52  ;;  %v4096_v35 = vld [vmem:[#allocation3 + $0x6] sm:$0xff] }
 0x9fe   : > { %v4421_v63 = vand.u32 4294901760, %v4420_v28  ;;  %v4539_v2 = vsub.f32 %v10112_v18, %v10718_v51  ;;  %v10822_v45 = vand.u32 4294901760, %v10007_v5  ;;  %v4546_v34 = vsub.f32 %v10119_v10, %v10720_v31  ;;  %v4178_v51 = vld [vmem:[#allocation20 + $0x78] sm:$0xff] }
 0x9ff   : > { %10820 = vst [vmem:[#allocation55_spill] sm:$0xff] %v10123_v49  ;;  %7798 = vmatpush3.bf16.msra.mxu0 %v10123_v49  ;;  %v10148_v46 = vsub.f32 %v4176_v27, %v4252_v54  ;;  %v4303_v28 = vand.u32 4294901760, %v4193_v26  ;;  %v4306_v32 = vand.u32 4294901760, %v4194_v23  ;;  %v10723_v4 = vand.u32 4294901760, %v10137_v47 }
 0xa00   : > { %v10143_v17 = vpack.c.bf16 %v10822_v45, %v10821_v55  ;;  %v7833_v22 = vpack.c.bf16 %v4421_v63, %v4414_v20  ;;  %v4540_v24 = vand.u32 4294901760, %v4539_v2  ;;  %v10823_v5 = vand.u32 4294901760, %v10026_v50  ;;  %v4088_v50 = vld [vmem:[#allocation3 + $0x2] sm:$0xff] }
 0xa01   : > { %4135 = vrot.lane.b32.xlu1 %v4096_v35, %s9009_s4  ;;  %v4547_v45 = vand.u32 4294901760, %v4546_v34  ;;  %v10724_v27 = vand.u32 4294901760, %v10148_v46  ;;  %v10158_v31 = vsub.f32 %v4193_v26, %v4303_v28  ;;  %v10160_v49 = vsub.f32 %v4194_v23, %v4306_v32 }
 0xa02   : > { %7800 = vmatprep.subr.bf16.mxu0 %v10143_v17  ;;  %v10155_v55 = vpack.c.bf16 %v4246_v7, %v10823_v5  ;;  %7834 = vmatpush3.bf16.msra.mxu1 %v7833_v22  ;;  %v4427_v20 = vsub.f32 %v10137_v47, %v10723_v4  ;;  %v4255_v63 = vand.u32 4294901760, %v4177_v33  ;;  %v4258_v2 = vand.u32 4294901760, %v4178_v51 }
 0xa03   : > { %v10166_v35 = vpack.c.bf16 %v4300_v42, %v4297_v30  ;;  %v7835_v7 = vpack.c.bf16 %v4547_v45, %v4540_v24  ;;  %v4434_v34 = vsub.f32 %v10148_v46, %v10724_v27  ;;  %v4552_v23 = vand.u32 4294901760, %v10158_v31 }
 0xa04   : > { %10824 = vst [vmem:[#allocation56_spill] sm:$0xff] %v10155_v55  ;;  %7802 = vmatpush3.bf16.msra.mxu0 %v10155_v55  ;;  %v4559_v26 = vand.u32 4294901760, %v10160_v49  ;;  %v4428_v22 = vand.u32 4294901760, %v4427_v20  ;;  %v10174_v5 = vsub.f32 %v4177_v33, %v4255_v63  ;;  %v10176_v4 = vsub.f32 %v4178_v51, %v4258_v2  ;;  %v4098_v51 = vld [vmem:[#allocation3 + $0x7] sm:$0xff] }
 0xa05   : > { %10825 = vst [vmem:[#allocation57_spill] sm:$0xff] %v10166_v35  ;;  %4111 = vrot.lane.b32.xlu1 %v4088_v50, %s9009_s4  ;;  %7804 = vmatprep.subr.bf16.mxu0 %v10166_v35  ;;  %v10179_v30 = vpack.c.bf16 %v4252_v54, %v4249_v52  ;;  %v4435_v24 = vand.u32 4294901760, %v4434_v34  ;;  %v4553_v42 = vsub.f32 %v10158_v31, %v4552_v23 }
 0xa06   : > { %7836 = vmatprep.subr.bf16.mxu1 %v7835_v7  ;;  %v4560_v45 = vsub.f32 %v10160_v49, %v4559_v26  ;;  %v4440_v27 = vand.u32 4294901760, %v10174_v5  ;;  %v4447_v55 = vand.u32 4294901760, %v10176_v4  ;;  %v10186_v33 = vpack.c.bf16 %v4306_v32, %v4303_v28 }
 0xa07   : > { %10826 = vst [vmem:[#allocation58_spill] sm:$0xff] %v10179_v30  ;;  %v7837_v20 = vpack.c.bf16 %v4435_v24, %v4428_v22  ;;  %v4554_v50 = vand.u32 4294901760, %v4553_v42  ;;  %v10188_v52 = vpack.c.bf16 %v4258_v2, %v4255_v63  ;;  %v7843_v32 = vpack.c.bf16 %v9770_v9, %v9765_v8  ;;  %v4090_v22 = vld [vmem:[#allocation3 + $0x3] sm:$0xff]  ;;  %v4095_v2 = vld [vmem:[#allocation3 + $0xd] sm:$0xff] }
 0xa08   : > { %7806 = vmatpush3.bf16.msra.mxu0 %v10179_v30  ;;  %v4561_v35 = vand.u32 4294901760, %v4560_v45  ;;  %v4441_v54 = vsub.f32 %v10174_v5, %v4440_v27  ;;  %v4448_v7 = vsub.f32 %v10176_v4, %v4447_v55  ;;  %v4087_v42 = vld [vmem:[#allocation3 + $0x9] sm:$0xff] }
 0xa09   : > { %4143 = vrot.lane.b32.xlu1 %v4098_v51, %s9006_s21  ;;  %7808 = vmatprep.subr.bf16.mxu0 %v10186_v33  ;;  %v4089_v51 = vld [vmem:[#allocation3 + $0xa] sm:$0xff] }
 0xa0a   : > { %7838 = vmatpush3.bf16.msra.mxu1 %v7837_v20  ;;  %v7839_v34 = vpack.c.bf16 %v4561_v35, %v4554_v50  ;;  %v4442_v28 = vand.u32 4294901760, %v4441_v54  ;;  %v4449_v30 = vand.u32 4294901760, %v4448_v7  ;;  %v4091_v54 = vld [vmem:[#allocation3 + $0xb] sm:$0xff] }
 0xa0b   : > { %v4092_v50 = vld [vmem:[#allocation3 + $0x4] sm:$0xff] }
 0xa0c   : > { %7810 = vmatpush3.bf16.msra.mxu0 %v10188_v52  ;;  %7840 = vmatprep.subr.bf16.mxu1 %v7839_v34  ;;  %v7841_v63 = vpack.c.bf16 %v4449_v30, %v4442_v28  ;;  %v4084_v30 = vld [vmem:[#allocation3] sm:$0xff] }
 0xa0d   : > { %7844 = vmatprep.subr.bf16.mxu0 %v7843_v32  ;;  %4119 = vrot.lane.b32.xlu1 %v4090_v22, %s9006_s21 }
 0xa0e   : > { %7842 = vmatpush3.bf16.msra.mxu1 %v7841_v63 }
 0xa0f   : > { %7876 = vmatprep.subr.bf16.mxu1 %v9900_v29 }
 0xa11   : > { %4129 = vrot.lane.b32.xlu1 %v4095_v2, %s9013_s7  ;;  %v10227_v2 = vpack.c.bf16 %v4559_v26, %v4552_v23 }
 0xa13   : > { %10827 = vst [vmem:[#allocation59_spill] sm:$0xff] %v10227_v2 }
 0xa15   : > { %4105 = vrot.lane.b32.xlu1 %v4087_v42, %s9013_s7  ;;  %v10229_v42 = vpack.c.bf16 %v4447_v55, %v4440_v27 }
 0xa17   : > { %10828 = vst [vmem:[#allocation60_spill] sm:$0xff] %v10229_v42 }
 0xa19   : > { %4113 = vrot.lane.b32.xlu1 %v4089_v51, %s9009_s4 }
 0xa1d   : > { %4121 = vrot.lane.b32.xlu1 %v4091_v54, %s9006_s21 }
 0xa67   : > { %v4138_v27 = vpop.permute.xlu0 %4137 }
 0xa6b   : > { %v4128_v51 = vpop.permute.xlu1 %4127 }
 0xa6c   : > { %v4157_v32 = vsel %vm804_vm0, %v4092_v50, %v4128_v51  ;;  %v4146_v51 = vpop.permute.xlu0 %4145 }
 0xa6f   : > { %v4104_v54 = vpop.permute.xlu1 %4103 }
 0xa70   : > { %v4149_v55 = vsel %vm804_vm0, %v4084_v30, %v4104_v54 }
 0xa73   : > { %v4136_v7 = vpop.permute.xlu1 %4135 }
 0xa74   : > { %v4159_v28 = vsel %vm4151_vm10, %v4157_v32, %v4136_v7 }
 0xa77   : > { %v4112_v34 = vpop.permute.xlu1 %4111 }
 0xa78   : > { %v4152_v23 = vsel %vm4151_vm10, %v4149_v55, %v4112_v34 }
 0xa7b   : > { %v4144_v20 = vpop.permute.xlu1 %4143 }
 0xa7c   : > { %v4161_v22 = vsel %vm4154_vm11, %v4159_v28, %v4144_v20  ;;  %v4093_v28 = vld [vmem:[#allocation3 + $0xc] sm:$0xff] }
 0xa7d   : > { %v10234_v63 = vand.u32 4294901760, %v4161_v22 }
 0xa7f   : > { %v10239_v26 = vsub.f32 %v4161_v22, %v10234_v63  ;;  %4564 = vmatprep.mubr.f32.mxu1 %v10234_v63  ;;  %v4120_v45 = vpop.permute.xlu1 %4119 }
 0xa80   : > { %v4155_v50 = vsel %vm4154_vm11, %v4152_v23, %v4120_v45 }
 0xa81   : > { %v10243_v7 = vand.u32 4294901760, %v4155_v50  ;;  %v4310_v20 = vand.u32 4294901760, %v10239_v26 }
 0xa83   : > { %v10247_v32 = vsub.f32 %v4155_v50, %v10243_v7  ;;  %4566 = vmatmul.mubr.f32.vlgmr.msra.gmra.mrb[4].mxu1 %v10243_v7  ;;  %v4130_v30 = vpop.permute.xlu1 %4129  ;;  %v4311_v34 = vsub.f32 %v10239_v26, %v4310_v20 }
 0xa84   : > { %7878 = vmatpush3.bf16.msra.mxu1 %v9906_v14  ;;  %v4158_v22 = vsel %vm804_vm0, %v4093_v28, %v4130_v30  ;;  %v7845_v30 = vpack.c.bf16 %v9781_v13, %v9775_v11 }
 0xa85   : > { %v4316_v45 = vand.u32 4294901760, %v10247_v32  ;;  %v4160_v54 = vsel %vm4151_vm10, %v4158_v22, %v4138_v27  ;;  %7880 = vmatprep.subr.bf16.mxu1 %v9952_v61  ;;  %v4312_v55 = vand.u32 4294901760, %v4311_v34  ;;  %v7847_v34 = vpack.c.bf16 %v9791_v16, %v9786_v15 }
 0xa86   : > { %v4162_v23 = vsel %vm4154_vm11, %v4160_v54, %v4146_v51  ;;  %v7849_v54 = vpack.c.bf16 %v9808_v25, %v9800_v21 }
 0xa87   : > { %v4317_v50 = vsub.f32 %v10247_v32, %v4316_v45  ;;  %v10258_v24 = vand.u32 4294901760, %v4162_v23  ;;  %4313 = vmatprep.mubr.f32.mxu0 %v4312_v55  ;;  %v4106_v35 = vpop.permute.xlu1 %4105  ;;  %v10274_v55 = vld [vmem:[#allocation3 + $0x8] sm:$0xff] }
 0xa88   : > { %7882 = vmatpush3.bf16.msra.mxu1 %v9968_v57 }
 0xa89   : > { %10829 = vst [vmem:[#allocation61_spill] sm:$0xff] %v10258_v24  ;;  %v10264_v28 = vsub.f32 %v4162_v23, %v10258_v24  ;;  %4571 = vmatprep.mubr.f32.mxu1 %v10258_v24  ;;  %7884 = vmatprep.subr.bf16.mxu1 %v9993_v59  ;;  %v4318_v27 = vand.u32 4294901760, %v4317_v50  ;;  %v4150_v50 = vsel %vm804_vm0, %v10274_v55, %v4106_v35 }
 0xa8b   : > { %4319 = vmatmul.mubr.f32.vlgmr.msra.gmra.mrb[8].mxu0 %v4318_v27  ;;  %v4114_v22 = vpop.permute.xlu1 %4113  ;;  %v4325_v51 = vand.u32 4294901760, %v10264_v28 }
 0xa8c   : > { %7846 = vmatpush3.bf16.msra.mxu0 %v7845_v30  ;;  %7886 = vmatpush3.bf16.msra.mxu1 %v10015_v58  ;;  %v4153_v27 = vsel %vm4151_vm10, %v4150_v50, %v4114_v22  ;;  %v10831_v22 = vpack.c.bf16 %v9870_v40, %v9865_v39  ;;  %v10834_v50 = vpack.c.bf16 %v9938_v43, %v9933_v41 }
 0xa8d   : > { %7848 = vmatprep.subr.bf16.mxu0 %v7847_v34  ;;  %7888 = vmatprep.subr.bf16.mxu1 %v10048_v56  ;;  %v4326_v23 = vsub.f32 %v10264_v28, %v4325_v51  ;;  %v10830_v34 = vpack.c.bf16 %v9860_v37, %v9855_v36 }
 0xa8f   : > { %v4122_v42 = vpop.permute.xlu1 %4121  ;;  %v4327_v2 = vand.u32 4294901760, %v4326_v23 }
 0xa90   : > { %7850 = vmatpush3.bf16.msra.mxu0 %v7849_v54  ;;  %7890 = vmatpush3.bf16.msra.mxu1 %v10074_v6  ;;  %v4156_v30 = vsel %vm4154_vm11, %v4153_v27, %v4122_v42  ;;  %v10832_v54 = vld [vmem:[#allocation55_spill] sm:$0xff]  ;;  %v10835_v27 = vld [vmem:[#allocation56_spill] sm:$0xff] }
 0xa91   : > { %v10283_v24 = vand.u32 4294901760, %v4156_v30  ;;  %4328 = vmatprep.mubr.f32.mxu0 %v4327_v2  ;;  %7852 = vmatprep.subr.bf16.mxu0 %v10830_v34  ;;  %v10833_v2 = vpack.c.bf16 %v9923_v0, %v9917_v60  ;;  %v10837_v34 = vld [vmem:[#allocation57_spill] sm:$0xff] }
 0xa92   : > { %7892 = vmatprep.subr.bf16.mxu1 %v10105_v19 }
 0xa93   : > { %v4330_v35 = vsub.f32 %v4156_v30, %v10283_v24  ;;  %4573 = vmatmul.mubr.f32.gmra.mrb[6].mxu1 %v10283_v24  ;;  %v10836_v30 = vpack.c.bf16 %v10003_v38, %v9998_v62 }
 0xa94   : > { %7854 = vmatpush3.bf16.msra.mxu0 %v10831_v22  ;;  %7894 = vmatpush3.bf16.msra.mxu1 %v10832_v54  ;;  %v10838_v22 = vpack.c.bf16 %v10039_v53, %v10024_v3 }
 0xa95   : > { %4824 = vmatprep.mubr.f32.mxu1 %v4310_v20  ;;  %7856 = vmatprep.subr.bf16.mxu0 %v10833_v2  ;;  %v4331_v42 = vand.u32 4294901760, %v4330_v35  ;;  %v10839_v2 = vld [vmem:[#allocation58_spill] sm:$0xff] }
 0xa96   : > { %7896 = vmatprep.subr.bf16.mxu1 %v10143_v17 }
 0xa97   : > { %v4332_v23 = vsub.f32 %v4330_v35, %v4331_v42 }
 0xa98   : > { %7858 = vmatpush3.bf16.msra.mxu0 %v10834_v50  ;;  %7898 = vmatpush3.bf16.msra.mxu1 %v10835_v27  ;;  %v10840_v50 = vpack.c.bf16 %v10058_v12, %v10053_v44 }
 0xa99   : > { %7860 = vmatprep.subr.bf16.mxu0 %v10836_v30  ;;  %7900 = vmatprep.subr.bf16.mxu1 %v10837_v34  ;;  %v4333_v20 = vand.u32 4294901760, %v4332_v23  ;;  %v10841_v30 = vpack.c.bf16 %v10096_v1, %v10085_v48  ;;  %v10842_v23 = vpack.c.bf16 %v10119_v10, %v10112_v18 }
 0xa9b   : > { %4334 = vmatmul.mubr.f32.gmra.mrb[10].mxu0 %v4333_v20  ;;  %v10844_v20 = vpack.c.bf16 %v10160_v49, %v10158_v31 }
 0xa9c   : > { %7862 = vmatpush3.bf16.msra.mxu0 %v10838_v22  ;;  %7902 = vmatpush3.bf16.msra.mxu1 %v10839_v2  ;;  %v10845_v22 = vand.u32 4294901760, %v9765_v8  ;;  %v10850_v8 = vand.u32 4294901760, %v9786_v15  ;;  %v10854_v15 = vand.u32 4294901760, %v9855_v36  ;;  %v10859_v36 = vand.u32 4294901760, %v9923_v0  ;;  %v4196_v0 = vld [vmem:[#allocation20 + $0x108] sm:$0xff] }
 0xa9d   : > { %4708 = vmatprep.mubr.f32.mxu0 %v10239_v26  ;;  %7864 = vmatprep.subr.bf16.mxu0 %v10840_v50  ;;  %v10843_v26 = vpack.c.bf16 %v10148_v46, %v10137_v47  ;;  %v10846_v50 = vand.u32 4294901760, %v9770_v9  ;;  %v10851_v9 = vand.u32 4294901760, %v9791_v16  ;;  %v10855_v16 = vand.u32 4294901760, %v9860_v37 }
 0xa9e   : > { %7904 = vmatprep.subr.bf16.mxu1 %v10186_v33 }
 0xaa0   : > { %7866 = vmatpush3.bf16.msra.mxu0 %v10841_v30  ;;  %7906 = vmatpush3.bf16.msra.mxu1 %v10188_v52  ;;  %v7907_v30 = vpack.c.bf16 %v10846_v50, %v10845_v22 }
 0xaa1   : > { %7868 = vmatprep.subr.bf16.mxu0 %v10842_v23  ;;  %7940 = vmatprep.subr.bf16.mxu1 %v9900_v29  ;;  %v10847_v29 = vpack.c.bf16 %v10176_v4, %v10174_v5  ;;  %v10861_v4 = vand.u32 4294901760, %v9938_v43  ;;  %v10866_v43 = vand.u32 4294901760, %v10053_v44  ;;  %v10870_v44 = vand.u32 4294901760, %v10112_v18 }
 0xaa2   : > { %v10873_v18 = vand.u32 4294901760, %v10148_v46 }
 0xaa3   : > { %4828 = vmatmul.mubr.f32.vlgmr.msra.gmra.mrb[8].mxu1 %v4316_v45  ;;  %v10849_v45 = vand.u32 4294901760, %v9781_v13  ;;  %v10853_v13 = vand.u32 4294901760, %v9808_v25 }
 0xaa4   : > { %7870 = vmatpush3.bf16.msra.mxu0 %v10843_v26  ;;  %4835 = vmatprep.mubr.f32.mxu1 %v4325_v51  ;;  %v4100_v51 = vld [vmem:[#allocation3 + $0x10] sm:$0xff] }
 0xaa5   : > { %7942 = vmatpush3.bf16.msra.mxu1 %v9906_v14  ;;  %7872 = vmatprep.subr.bf16.mxu0 %v10844_v20  ;;  %v10848_v14 = vand.u32 4294901760, %v9775_v11  ;;  %v10852_v11 = vand.u32 4294901760, %v9800_v21  ;;  %v10857_v21 = vand.u32 4294901760, %v9870_v40  ;;  %v10863_v40 = vand.u32 4294901760, %v10003_v38 }
 0xaa6   : > { %7944 = vmatprep.subr.bf16.mxu1 %v9952_v61  ;;  %v7911_v61 = vpack.c.bf16 %v10851_v9, %v10850_v8  ;;  %v4210_v23 = vsel %vm804_vm0, %v4100_v51, 0  ;;  %v5665_v51 = vld [vmem:[#allocation23 + $0x28] sm:$0xff] }
 0xaa7   : > { %4839 = vmatmul.mubr.f32.gmra.mrb[10].mxu1 %v4331_v42  ;;  %v7909_v31 = vpack.c.bf16 %v10849_v45, %v10848_v14  ;;  %v7913_v49 = vpack.c.bf16 %v10853_v13, %v10852_v11  ;;  %v10416_v22 = vand.u32 4294901760, %v4210_v23  ;;  %v10875_v45 = vld [vmem:[#allocation59_spill] sm:$0xff]  ;;  %v10876_v11 = vld [vmem:[#allocation60_spill] sm:$0xff] }
 0xaa8   : > { %7874 = vmatpush3.bf16.msra.mxu0 %v10847_v29  ;;  %5116 = vmatprep.mubr.f32.mxu1 %v10234_v63 }
 0xaa9   : > { %7946 = vmatpush3.bf16.msra.mxu1 %v9968_v57  ;;  %7908 = vmatprep.subr.bf16.mxu0 %v7907_v30  ;;  %v7915_v57 = vpack.c.bf16 %v10855_v16, %v10854_v15  ;;  %v5210_v46 = vsub.f32 %v4210_v23, %v10416_v22 }
 0xaaa   : > { %7948 = vmatprep.subr.bf16.mxu1 %v9993_v59  ;;  %v10856_v59 = vand.u32 4294901760, %v9865_v39  ;;  %v10862_v39 = vand.u32 4294901760, %v9998_v62  ;;  %v10867_v62 = vand.u32 4294901760, %v10058_v12  ;;  %v10871_v12 = vand.u32 4294901760, %v10119_v10 }
 0xaab   : > { %4711 = vmatmul.mubr.f32.vlgmr.msra.gmra.mrb[12].mxu0 %v10247_v32 }
 0xaac   : > { %4717 = vmatprep.mubr.f32.mxu0 %v10264_v28  ;;  %7910 = vmatpush3.bf16.msra.mxu0 %v7909_v31  ;;  %v7917_v25 = vpack.c.bf16 %v10857_v21, %v10856_v59  ;;  %v7927_v32 = vpack.c.bf16 %v10867_v62, %v10866_v43  ;;  %v5134_v28 = vand.u32 4294901760, %v4196_v0 }
 0xaad   : > { %7950 = vmatpush3.bf16.msra.mxu1 %v10015_v58  ;;  %7912 = vmatprep.subr.bf16.mxu0 %v7911_v61  ;;  %v10858_v58 = vand.u32 4294901760, %v9917_v60  ;;  %v4195_v60 = vld [vmem:[#allocation20 + $0x100] sm:$0xff] }
 0xaae   : > { %7952 = vmatprep.subr.bf16.mxu1 %v10048_v56  ;;  %v10860_v56 = vand.u32 4294901760, %v9933_v41  ;;  %v10865_v41 = vand.u32 4294901760, %v10039_v53  ;;  %v5131_v38 = vand.u32 4294901760, %v4195_v60  ;;  %v10868_v53 = vand.u32 4294901760, %v10085_v48 }
 0xaaf   : > { %4720 = vmatmul.mubr.f32.gmra.mrb[14].mxu0 %v4330_v35  ;;  %v7919_v37 = vpack.c.bf16 %v10859_v36, %v10858_v58  ;;  %v4198_v35 = vld [vmem:[#allocation20 + $0x118] sm:$0xff] }
 0xab0   : > { %7914 = vmatpush3.bf16.msra.mxu0 %v7913_v49  ;;  %5005 = vmatprep.mubr.f32.mxu0 %v10234_v63  ;;  %v7921_v5 = vpack.c.bf16 %v10861_v4, %v10860_v56  ;;  %v5140_v26 = vand.u32 4294901760, %v4198_v35  ;;  %v10405_v20 = vsub.f32 %v4195_v60, %v5131_v38  ;;  %v5211_v49 = vand.u32 4294901760, %v5210_v46 }
 0xab1   : > { %7954 = vmatpush3.bf16.msra.mxu1 %v10074_v6  ;;  %7916 = vmatprep.subr.bf16.mxu0 %v7915_v57  ;;  %v7923_v6 = vpack.c.bf16 %v10863_v40, %v10862_v39 }
 0xab2   : > { %7956 = vmatprep.subr.bf16.mxu1 %v10105_v19  ;;  %v10864_v19 = vand.u32 4294901760, %v10024_v3  ;;  %v4207_v3 = vsel %vm804_vm0, %v10274_v55, 0  ;;  %v10407_v55 = vsub.f32 %v4196_v0, %v5134_v28  ;;  %v5242_v29 = vsub.f32 %v4198_v35, %v5140_v26  ;;  %v10441_v35 = vld [vmem:[#allocation21] ss:$0 sm:$0xff] }
 0xab3   : > { %v10409_v48 = vand.u32 4294901760, %v4207_v3 }
 0xab4   : > { %7918 = vmatpush3.bf16.msra.mxu0 %v7917_v25  ;;  %v7925_v63 = vpack.c.bf16 %v10865_v41, %v10864_v19  ;;  %v5229_v50 = vand.u32 4294901760, %v10407_v55  ;;  %v5243_v9 = vand.u32 4294901760, %v5242_v29  ;;  %v5212_v25 = vsub.f32 %v5210_v46, %v5211_v49  ;;  %v5660_v19 = vld [vmem:[#allocation23] sm:$0xff]  ;;  %v5661_v41 = vld [vmem:[#allocation23 + $0x8] sm:$0xff] }
 0xab5   : > { %7958 = vmatpush3.bf16.msra.mxu1 %v10832_v54  ;;  %7920 = vmatprep.subr.bf16.mxu0 %v7919_v37  ;;  %v10869_v54 = vand.u32 4294901760, %v10096_v1  ;;  %v10872_v1 = vand.u32 4294901760, %v10137_v47  ;;  %v5200_v14 = vsub.f32 %v4207_v3, %v10409_v48  ;;  %v7971_v47 = vpack.c.bf16 %v5134_v28, %v5131_v38  ;;  %v5664_v28 = vld [vmem:[#allocation23 + $0x20] sm:$0xff] }
 0xab6   : > { %7960 = vmatprep.subr.bf16.mxu1 %v10143_v17  ;;  %v4197_v17 = vld [vmem:[#allocation20 + $0x110] sm:$0xff]  ;;  %v5230_v31 = vsub.f32 %v10407_v55, %v5229_v50  ;;  %v5244_v59 = vsub.f32 %v5242_v29, %v5243_v9  ;;  %v5213_v4 = vand.u32 4294901760, %v5212_v25  ;;  %v5682_v43 = vand.u32 4294901760, %v5660_v19 }
 0xab7   : > { %v7929_v42 = vpack.c.bf16 %v10869_v54, %v10868_v53  ;;  %v7933_v10 = vpack.c.bf16 %v10873_v18, %v10872_v1  ;;  %v5201_v61 = vand.u32 4294901760, %v5200_v14  ;;  %v5685_v62 = vand.u32 4294901760, %v5661_v41 }
 0xab8   : > { %7922 = vmatpush3.bf16.msra.mxu0 %v7921_v5  ;;  %v5231_v16 = vand.u32 4294901760, %v5230_v31  ;;  %v5245_v37 = vand.u32 4294901760, %v5244_v59  ;;  %v10445_v23 = vsub.f32 %v5660_v19, %v5682_v43 }
 0xab9   : > { %7962 = vmatpush3.bf16.msra.mxu1 %v10835_v27  ;;  %7924 = vmatprep.subr.bf16.mxu0 %v7923_v6  ;;  %v7931_v27 = vpack.c.bf16 %v10871_v12, %v10870_v44  ;;  %v5202_v21 = vsub.f32 %v5200_v14, %v5201_v61  ;;  %v10443_v54 = vpack.c.bf16 %v5685_v62, %v5682_v43  ;;  %v5697_v44 = vand.u32 4294901760, %v5665_v51  ;;  %v5666_v12 = vld [vmem:[#allocation23 + $0x30] sm:$0xff] }
 0xaba   : > { %7964 = vmatprep.subr.bf16.mxu1 %v10837_v34  ;;  %v5137_v34 = vand.u32 4294901760, %v4197_v17 }
 0xabb   : > { %v5203_v56 = vand.u32 4294901760, %v5202_v21 }
 0xabc   : > { %7926 = vmatpush3.bf16.msra.mxu0 %v7925_v63  ;;  %v5235_v30 = vsub.f32 %v4197_v17, %v5137_v34  ;;  %v7975_v13 = vpack.c.bf16 %v5140_v26, %v5137_v34  ;;  %v5662_v63 = vld [vmem:[#allocation23 + $0x10] sm:$0xff] }
 0xabd   : > { %7966 = vmatpush3.bf16.msra.mxu1 %v10839_v2  ;;  %7928 = vmatprep.subr.bf16.mxu0 %v7927_v32  ;;  %v5222_v2 = vand.u32 4294901760, %v10405_v20  ;;  %v5663_v32 = vld [vmem:[#allocation23 + $0x18] sm:$0xff]  ;;  %v5688_v38 = vand.u32 4294901760, %v5662_v63 }
 0xabe   : > { %7968 = vmatprep.subr.bf16.mxu1 %v10186_v33  ;;  %v10874_v33 = vld [vmem:[#allocation61_spill] sm:$0xff]  ;;  %v5236_v8 = vand.u32 4294901760, %v5235_v30  ;;  %v7991_v39 = vpack.c.bf16 %v5242_v29, %v5235_v30  ;;  %v5691_v3 = vand.u32 4294901760, %v5663_v32 }
 0xac0   : > { %7930 = vmatpush3.bf16.msra.mxu0 %v7929_v42  ;;  %v5237_v57 = vsub.f32 %v5235_v30, %v5236_v8  ;;  %v8007_v40 = vpack.c.bf16 %v5243_v9, %v5236_v8  ;;  %v5694_v42 = vand.u32 4294901760, %v5664_v28  ;;  %v10447_v26 = vpack.c.bf16 %v5691_v3, %v5688_v38 }
 0xac1   : > { %7970 = vmatpush3.bf16.msra.mxu1 %v10188_v52  ;;  %7932 = vmatprep.subr.bf16.mxu0 %v7931_v27  ;;  %v5223_v52 = vsub.f32 %v10405_v20, %v5222_v2  ;;  %v5667_v27 = vld [vmem:[#allocation23 + $0x38] sm:$0xff]  ;;  %v10455_v1 = vsub.f32 %v5663_v32, %v5691_v3 }
 0xac2   : > { %v5238_v36 = vand.u32 4294901760, %v5237_v57  ;;  %8020 = vmatprep.subr.bf16.mxu1 %v10443_v54 }
 0xac3   : > { %v5224_v15 = vand.u32 4294901760, %v5223_v52  ;;  %v5804_v52 = vsub.f32 %v5664_v28, %v5694_v42 }
 0xac4   : > { %5118 = vmatmul.mubr.f32.vlgmr.msra.gmra.mrb[12].mxu1 %v10243_v7  ;;  %7934 = vmatpush3.bf16.msra.mxu0 %v7933_v10  ;;  %v7983_v5 = vpack.c.bf16 %v5245_v37, %v5238_v36  ;;  %v5700_v10 = vand.u32 4294901760, %v5666_v12 }
 0xac5   : > { %5123 = vmatprep.mubr.f32.mxu1 %v10874_v33  ;;  %7936 = vmatprep.subr.bf16.mxu0 %v10875_v45  ;;  %v7979_v58 = vpack.c.bf16 %v5231_v16, %v5224_v15  ;;  %v5805_v16 = vand.u32 4294901760, %v5804_v52 }
 0xac6   : > { %8022 = vmatpush3.bf16.msra.mxu1 %v10443_v54 }
 0xac7   : > { %8024 = vmatprep.subr.bf16.mxu1 %v10447_v26  ;;  %v5806_v25 = vsub.f32 %v5804_v52, %v5805_v16 }
 0xac8   : > { %5125 = vmatmul.mubr.f32.gmra.mrb[14].mxu1 %v10283_v24  ;;  %7938 = vmatpush3.bf16.msra.mxu0 %v10876_v11 }
 0xac9   : > { %7972 = vmatprep.subr.bf16.mxu0 %v7971_v47 }
 0xaca   : > { %8026 = vmatpush3.bf16.msra.mxu1 %v10447_v26 }
 0xacb   : > { %5007 = vmatmul.mubr.f32.vlgmr.msra.gmra.mrb[16].mxu0 %v10243_v7  ;;  %v7987_v7 = vpack.c.bf16 %v10407_v55, %v10405_v20  ;;  %v10449_v20 = vsub.f32 %v5661_v41, %v5685_v62  ;;  %v5777_v55 = vand.u32 4294901760, %v10445_v23 }
 0xacc   : > { %5012 = vmatprep.mubr.f32.mxu0 %v10874_v33  ;;  %7974 = vmatpush3.bf16.msra.mxu0 %v7971_v47 }
 0xacd   : > { %7976 = vmatprep.subr.bf16.mxu0 %v7975_v13  ;;  %v5778_v30 = vsub.f32 %v10445_v23, %v5777_v55  ;;  %v10493_v43 = vpack.c.bf16 %v10449_v20, %v10445_v23 }
 0xacf   : > { %5014 = vmatmul.mubr.f32.gmra.mrb[18].mxu0 %v10283_v24  ;;  %v8003_v24 = vpack.c.bf16 %v5229_v50, %v5222_v2  ;;  %v5784_v2 = vand.u32 4294901760, %v10449_v20  ;;  %v10461_v50 = vpack.c.bf16 %v5697_v44, %v5694_v42  ;;  %v5779_v9 = vand.u32 4294901760, %v5778_v30 }
 0xad0   : > { %7978 = vmatpush3.bf16.msra.mxu0 %v7975_v13  ;;  %7415 = vmatprep.mubr.f32.mxu0 %v5203_v56 }
 0xad1   : > { %7980 = vmatprep.subr.bf16.mxu0 %v7979_v58  ;;  %8028 = vmatprep.subr.bf16.mxu1 %v10461_v50 }
 0xad2   : > { %8030 = vmatpush3.bf16.msra.mxu1 %v10461_v50 }
 0xad3   : > { %7416 = vmatmul.mubr.f32.vlgmr.msra.gmra.mrb[20].mxu0 %v5213_v4  ;;  %v5807_v4 = vand.u32 4294901760, %v5806_v25 }
 0xad4   : > { %7982 = vmatpush3.bf16.msra.mxu0 %v7979_v58  ;;  %7426 = vmatprep.mubr.f32.mxu0 %v10409_v48  ;;  %v5818_v58 = vsub.f32 %v5666_v12, %v5700_v10 }
 0xad5   : > { %7984 = vmatprep.subr.bf16.mxu0 %v7983_v5 }
 0xad8   : > { %7986 = vmatpush3.bf16.msra.mxu0 %v7983_v5  ;;  %v5819_v5 = vand.u32 4294901760, %v5818_v58 }
 0xad9   : > { %7988 = vmatprep.subr.bf16.mxu0 %v7987_v7 }
 0xadb   : > { %7427 = vmatmul.mubr.f32.vlgmr.msra.gmra.mrb[20].mxu0 %v10416_v22 }
 0xadc   : > { %7990 = vmatpush3.bf16.msra.mxu0 %v7987_v7  ;;  %7437 = vmatprep.mubr.f32.mxu0 %v5200_v14  ;;  %v5798_v14 = vand.u32 4294901760, %v10455_v1 }
 0xadd   : > { %7992 = vmatprep.subr.bf16.mxu0 %v7991_v39 }
 0xade   : > { %v5799_v45 = vsub.f32 %v10455_v1, %v5798_v14 }
 0xae0   : > { %7994 = vmatpush3.bf16.msra.mxu0 %v7991_v39  ;;  %v5800_v15 = vand.u32 4294901760, %v5799_v45 }
 0xae1   : > { %7996 = vmatprep.subr.bf16.mxu0 %v7971_v47 }
 0xae3   : > { %7438 = vmatmul.mubr.f32.vlgmr.msra.gmra.mrb[20].mxu0 %v5210_v46  ;;  %v5785_v46 = vsub.f32 %v10449_v20, %v5784_v2 }
 0xae4   : > { %7998 = vmatpush3.bf16.msra.mxu0 %v7971_v47  ;;  %7448 = vmatprep.mubr.f32.mxu0 %v5201_v61  ;;  %v5811_v61 = vsub.f32 %v5665_v51, %v5697_v44 }
 0xae5   : > { %8000 = vmatprep.subr.bf16.mxu0 %v7975_v13 }
 0xae6   : > { %v5812_v59 = vand.u32 4294901760, %v5811_v61  ;;  %v10502_v51 = vpack.c.bf16 %v5811_v61, %v5804_v52  ;;  %v10510_v52 = vpack.c.bf16 %v5784_v2, %v5777_v55 }
 0xae8   : > { %8002 = vmatpush3.bf16.msra.mxu0 %v7975_v13  ;;  %v5813_v37 = vsub.f32 %v5811_v61, %v5812_v59  ;;  %v10518_v61 = vpack.c.bf16 %v5812_v59, %v5805_v16 }
 0xae9   : > { %8004 = vmatprep.subr.bf16.mxu0 %v8003_v24 }
 0xaea   : > { %v5814_v39 = vand.u32 4294901760, %v5813_v37 }
 0xaeb   : > { %7449 = vmatmul.mubr.f32.vlgmr.msra.gmra.mrb[20].mxu0 %v5211_v49 }
 0xaec   : > { %8006 = vmatpush3.bf16.msra.mxu0 %v8003_v24  ;;  %7459 = vmatprep.mubr.f32.mxu0 %v10409_v48  ;;  %v5820_v24 = vsub.f32 %v5818_v58, %v5819_v5 }
 0xaed   : > { %8008 = vmatprep.subr.bf16.mxu0 %v8007_v40 }
 0xaee   : > { %v5821_v19 = vand.u32 4294901760, %v5820_v24 }
 0xaf0   : > { %8010 = vmatpush3.bf16.msra.mxu0 %v8007_v40 }
 0xaf1   : > { %8012 = vmatprep.subr.bf16.mxu0 %v7971_v47 }
 0xaf3   : > { %7460 = vmatmul.mubr.f32.vlgmr.msra.gmra.mrb[20].mxu0 %v10416_v22 }
 0xaf4   : > { %8014 = vmatpush3.bf16.msra.mxu0 %v7971_v47  ;;  %7470 = vmatprep.mubr.f32.mxu0 %v10409_v48  ;;  %v10453_v48 = vsub.f32 %v5662_v63, %v5688_v38 }
 0xaf5   : > { %8016 = vmatprep.subr.bf16.mxu0 %v7975_v13 }
 0xaf6   : > { %v5791_v29 = vand.u32 4294901760, %v10453_v48  ;;  %v10499_v32 = vpack.c.bf16 %v10455_v1, %v10453_v48 }
 0xaf8   : > { %8018 = vmatpush3.bf16.msra.mxu0 %v7975_v13  ;;  %v5792_v33 = vsub.f32 %v10453_v48, %v5791_v29  ;;  %v5786_v13 = vand.u32 4294901760, %v5785_v46 }
 0xafa   : > { %v5793_v49 = vand.u32 4294901760, %v5792_v33  ;;  %v10485_v56 = vpack.c.bf16 %v5786_v13, %v5779_v9  ;;  %v10516_v9 = vpack.c.bf16 %v5798_v14, %v5791_v29 }
 0xafb   : > { %7471 = vmatmul.mubr.f32.vlgmr.msra.gmra.mrb[20].mxu0 %v10416_v22  ;;  %v5703_v22 = vand.u32 4294901760, %v5667_v27 }
 0xafc   : > { %v10481_v21 = vpack.c.bf16 %v5800_v15, %v5793_v49 }
 0xafd   : > { %v10478_v8 = vpack.c.bf16 %v5703_v22, %v5700_v10  ;;  %v5825_v36 = vsub.f32 %v5667_v27, %v5703_v22 }
 0xaff   : > { %8032 = vmatprep.subr.bf16.mxu1 %v10478_v8  ;;  %v5826_v7 = vand.u32 4294901760, %v5825_v36  ;;  %v10504_v42 = vpack.c.bf16 %v5825_v36, %v5818_v58 }
 0xb00   : > { %8034 = vmatpush3.bf16.msra.mxu1 %v10478_v8 }
 0xb01   : > { %v5827_v40 = vsub.f32 %v5825_v36, %v5826_v7  ;;  %8036 = vmatprep.subr.bf16.mxu1 %v10485_v56  ;;  %v10520_v49 = vpack.c.bf16 %v5826_v7, %v5819_v5 }
 0xb03   : > { %v5828_v41 = vand.u32 4294901760, %v5827_v40 }
 0xb05   : > { %v10495_v62 = vpack.c.bf16 %v5828_v41, %v5821_v19 }
 0xb56   : > { %v6853_v6 = vpop.f32.mrb[4].mxu1 }
 0xb57   : > { %v6854_v60 = vpop.f32.mrb[5].mxu1 }
 0xb58   : > { %v6855_v0 = vadd.f32 %v6854_v60, %v6853_v6  ;;  %v10488_v60 = vpack.c.bf16 %v5814_v39, %v5807_v4 }
 0xb5e   : > { %v6815_v17 = vpop.f32.mrb[8].mxu0 }
 0xb5f   : > { %v6816_v53 = vpop.f32.mrb[9].mxu0 }
 0xb60   : > { %v6817_v34 = vadd.f32 %v6816_v53, %v6815_v17 }
 0xb62   : > { %v4321_v18 = vadd.f32 %v6817_v34, %v10441_v35 }
 0xb64   : > { %v4568_v47 = vadd.f32 %v6855_v0, %v4321_v18 }
 0xb66   : > { %v6856_v31 = vpop.f32.mrb[6].mxu1 }
 0xb67   : > { %v6857_v11 = vpop.f32.mrb[7].mxu1 }
 0xb68   : > { %v6858_v57 = vadd.f32 %v6857_v11, %v6856_v31 }
 0xb6e   : > { %v6818_v6 = vpop.f32.mrb[10].mxu0 }
 0xb6f   : > { %v6819_v0 = vpop.f32.mrb[11].mxu0 }
 0xb70   : > { %v6820_v63 = vadd.f32 %v6819_v0, %v6818_v6 }
 0xb72   : > { %v4336_v38 = vadd.f32 %v6820_v63, %v10441_v35 }
 0xb74   : > { %v4575_v28 = vadd.f32 %v6858_v57, %v4336_v38 }
 0xb76   : > { %v6929_v17 = vpop.f32.mrb[8].mxu1 }
 0xb77   : > { %v6930_v3 = vpop.f32.mrb[9].mxu1 }
 0xb78   : > { %v6931_v53 = vadd.f32 %v6930_v3, %v6929_v17 }
 0xb7a   : > { %v6932_v44 = vpop.f32.mrb[10].mxu1 }
 0xb7b   : > { %v6933_v12 = vpop.f32.mrb[11].mxu1 }
 0xb7c   : > { %v6934_v27 = vadd.f32 %v6933_v12, %v6932_v44 }
 0xb7e   : > { %v6891_v34 = vpop.f32.mrb[12].mxu0 }
 0xb7f   : > { %v6892_v18 = vpop.f32.mrb[13].mxu0 }
 0xb80   : > { %v6893_v10 = vadd.f32 %v6892_v18, %v6891_v34 }
 0xb82   : > { %v4713_v22 = vadd.f32 %v6893_v10, %v4568_v47  ;;  %v6894_v30 = vpop.f32.mrb[14].mxu0 }
 0xb83   : > { %v6895_v46 = vpop.f32.mrb[15].mxu0 }
 0xb84   : > { %v6896_v33 = vadd.f32 %v6895_v46, %v6894_v30  ;;  %v4830_v45 = vadd.f32 %v6931_v53, %v4713_v22 }
 0xb86   : > { %v4722_v35 = vadd.f32 %v6896_v33, %v4575_v28 }
 0xb88   : > { %v4841_v31 = vadd.f32 %v6934_v27, %v4722_v35 }
 0xb97   : > { %v7005_v47 = vpop.f32.mrb[12].mxu1 }
 0xb98   : > { %v7006_v11 = vpop.f32.mrb[13].mxu1 }
 0xb99   : > { %v7007_v13 = vadd.f32 %v7006_v11, %v7005_v47  ;;  %v6606_v11 = vld [vmem:[#allocation27] ss:$0 sm:$0xff] }
 0xb9b   : > { %v7008_v15 = vpop.f32.mrb[14].mxu1 }
 0xb9c   : > { %v7009_v57 = vpop.f32.mrb[15].mxu1 }
 0xb9d   : > { %v7010_v23 = vadd.f32 %v7009_v57, %v7008_v15 }
 0xb9e   : > { %v6967_v25 = vpop.f32.mrb[16].mxu0 }
 0xb9f   : > { %v6968_v20 = vpop.f32.mrb[17].mxu0 }
 0xba0   : > { %v6969_v55 = vadd.f32 %v6968_v20, %v6967_v25 }
 0xba2   : > { %v5009_v2 = vadd.f32 %v6969_v55, %v4830_v45  ;;  %v6970_v58 = vpop.f32.mrb[18].mxu0 }
 0xba3   : > { %v6971_v48 = vpop.f32.mrb[19].mxu0 }
 0xba4   : > { %v6972_v36 = vadd.f32 %v6971_v48, %v6970_v58  ;;  %v5120_v1 = vadd.f32 %v7007_v13, %v5009_v2 }
 0xba6   : > { %v5016_v29 = vadd.f32 %v6972_v36, %v4841_v31 }
 0xba8   : > { %v5127_v14 = vadd.f32 %v7010_v23, %v5016_v29 }
 0xbce   : > { %v7472_v16 = vpop.f32.mrb[20].mxu0 }
 0xbcf   : > { %v8119_v59 = vadd.f32 %v7472_v16, %v5127_v14  ;;  %v5648_v37 = vpop.f32.mrb[21].mxu0 }
 0xbd0   : > { %v8120_v4 = vadd.f32 %v5648_v37, %v5120_v1 }
 0xbd1   : > { %v5659_v39 = vmax.f32 %v8119_v59, 0.0 }
 0xbd2   : > { %v5658_v5 = vmax.f32 %v8120_v4, 0.0 }
 0xbd3   : > { %v5679_v7 = vsel %vm4151_vm10, %v5659_v39, 0 }
 0xbd4   : > { %v5764_v24 = vand.u32 4294901760, %v5679_v7  ;;  %v5676_v40 = vsel %vm4151_vm10, %v5658_v5, 0 }
 0xbd5   : > { %v5754_v6 = vand.u32 4294901760, %v5676_v40 }
 0xbd6   : > { %v5765_v0 = vsub.f32 %v5679_v7, %v5764_v24 }
 0xbd7   : > { %v5755_v19 = vsub.f32 %v5676_v40, %v5754_v6 }
 0xbd8   : > { %v5766_v41 = vand.u32 4294901760, %v5765_v0 }
 0xbd9   : > { %v5756_v63 = vand.u32 4294901760, %v5755_v19 }
 0xbda   : > { %v5767_v38 = vsub.f32 %v5765_v0, %v5766_v41 }
 0xbdb   : > { %v5757_v28 = vsub.f32 %v5755_v19, %v5756_v63 }
 0xbdc   : > { %v5768_v3 = vand.u32 4294901760, %v5767_v38 }
 0xbdd   : > { %v5758_v17 = vand.u32 4294901760, %v5757_v28 }
 0xbdf   : > { %7489 = vmatprep.mubr.f32.mxu1 %v5758_v17 }
 0xbe0   : > { %7490 = vmatmul.mubr.f32.vlgmr.msra.gmra.mrb[16].mxu1 %v5768_v3 }
 0xbe1   : > { %8038 = vmatpush3.bf16.msra.mxu1 %v10485_v56  ;;  %7508 = vmatprep.mubr.f32.mxu1 %v5754_v6 }
 0xbe2   : > { %8040 = vmatprep.subr.bf16.mxu1 %v10481_v21 }
 0xbe5   : > { %8042 = vmatpush3.bf16.msra.mxu1 %v10481_v21  ;;  %v6604_v21 = vld [vmem:[#allocation24] ss:$0 sm:$0xff] }
 0xbe6   : > { %8044 = vmatprep.subr.bf16.mxu1 %v10488_v60 }
 0xbe9   : > { %8046 = vmatpush3.bf16.msra.mxu1 %v10488_v60 }
 0xbea   : > { %8048 = vmatprep.subr.bf16.mxu1 %v10495_v62 }
 0xbed   : > { %8050 = vmatpush3.bf16.msra.mxu1 %v10495_v62 }
 0xbee   : > { %8052 = vmatprep.subr.bf16.mxu1 %v10493_v43 }
 0xbf0   : > { %7509 = vmatmul.mubr.f32.vlgmr.msra.gmra.mrb[16].mxu1 %v5764_v24 }
 0xbf1   : > { %8054 = vmatpush3.bf16.msra.mxu1 %v10493_v43  ;;  %7527 = vmatprep.mubr.f32.mxu1 %v5755_v19 }
 0xbf2   : > { %8056 = vmatprep.subr.bf16.mxu1 %v10499_v32 }
 0xbf5   : > { %8058 = vmatpush3.bf16.msra.mxu1 %v10499_v32 }
 0xbf6   : > { %8060 = vmatprep.subr.bf16.mxu1 %v10502_v51 }
 0xbf9   : > { %8062 = vmatpush3.bf16.msra.mxu1 %v10502_v51  ;;  %v10878_v51 = vld [vmem:[#allocation54_spill] sm:$0xff] }
 0xbfa   : > { %8064 = vmatprep.subr.bf16.mxu1 %v10504_v42 }
 0xbfd   : > { %8066 = vmatpush3.bf16.msra.mxu1 %v10504_v42 }
 0xbfe   : > { %8068 = vmatprep.subr.bf16.mxu1 %v10443_v54 }
 0xc00   : > { %7528 = vmatmul.mubr.f32.vlgmr.msra.gmra.mrb[16].mxu1 %v5765_v0 }
 0xc01   : > { %8070 = vmatpush3.bf16.msra.mxu1 %v10443_v54  ;;  %7546 = vmatprep.mubr.f32.mxu1 %v5756_v63 }
 0xc02   : > { %8072 = vmatprep.subr.bf16.mxu1 %v10447_v26 }
 0xc05   : > { %8074 = vmatpush3.bf16.msra.mxu1 %v10447_v26 }
 0xc06   : > { %8076 = vmatprep.subr.bf16.mxu1 %v10461_v50 }
 0xc09   : > { %8078 = vmatpush3.bf16.msra.mxu1 %v10461_v50 }
 0xc0a   : > { %8080 = vmatprep.subr.bf16.mxu1 %v10478_v8 }
 0xc0d   : > { %8082 = vmatpush3.bf16.msra.mxu1 %v10478_v8 }
 0xc0e   : > { %8084 = vmatprep.subr.bf16.mxu1 %v10510_v52 }
 0xc10   : > { %7547 = vmatmul.mubr.f32.vlgmr.msra.gmra.mrb[16].mxu1 %v5766_v41 }
 0xc11   : > { %8086 = vmatpush3.bf16.msra.mxu1 %v10510_v52  ;;  %7565 = vmatprep.mubr.f32.mxu1 %v5754_v6 }
 0xc12   : > { %8088 = vmatprep.subr.bf16.mxu1 %v10516_v9 }
 0xc15   : > { %8090 = vmatpush3.bf16.msra.mxu1 %v10516_v9 }
 0xc16   : > { %8092 = vmatprep.subr.bf16.mxu1 %v10518_v61 }
 0xc19   : > { %8094 = vmatpush3.bf16.msra.mxu1 %v10518_v61  ;;  %v6605_v61 = vld [vmem:[#allocation26] ss:$0 sm:$0xff] }
 0xc1a   : > { %8096 = vmatprep.subr.bf16.mxu1 %v10520_v49 }
 0xc1d   : > { %8098 = vmatpush3.bf16.msra.mxu1 %v10520_v49 }
 0xc1e   : > { %8100 = vmatprep.subr.bf16.mxu1 %v10443_v54 }
 0xc20   : > { %7566 = vmatmul.mubr.f32.vlgmr.msra.gmra.mrb[16].mxu1 %v5764_v24 }
 0xc21   : > { %8102 = vmatpush3.bf16.msra.mxu1 %v10443_v54  ;;  %7584 = vmatprep.mubr.f32.mxu1 %v5754_v6  ;;  %v10877_v54 = vld [vmem:[#allocation53_spill] sm:$0xff] }
 0xc22   : > { %8104 = vmatprep.subr.bf16.mxu1 %v10447_v26 }
 0xc25   : > { %8106 = vmatpush3.bf16.msra.mxu1 %v10447_v26 }
 0xc26   : > { %8108 = vmatprep.subr.bf16.mxu1 %v10461_v50 }
 0xc29   : > { %8110 = vmatpush3.bf16.msra.mxu1 %v10461_v50 }
 0xc2a   : > { %8112 = vmatprep.subr.bf16.mxu1 %v10478_v8 }
 0xc2d   : > { %8114 = vmatpush3.bf16.msra.mxu1 %v10478_v8 }
 0xc30   : > { %7585 = vmatmul.mubr.f32.vlgmr.msra.gmra.mrb[16].mxu1 %v5764_v24 }
 0xd03   : > { %v7586_v56 = vpop.f32.mrb[16].mxu1 }
 0xd04   : > { %v8121_v60 = vadd.f32 %v7586_v56, %v6604_v21  ;;  %v6251_v43 = vpop.f32.mrb[17].mxu1 }
 0xd05   : > { %v8122_v62 = vadd.f32 %v6604_v21, %v6251_v43 }
 0xd06   : > { %v6262_v32 = vadd.f32 %v8121_v60, %v10877_v54 }
 0xd07   : > { %v6261_v53 = vadd.f32 %v8122_v62, %v10878_v51 }
 0xd08   : > { %v6266_v26 = vsel %vm804_vm0, %v6262_v32, 0.0 }
 0xd09   : > { %6267 = vadd.xlane.f32.xlu1 %v6266_v26  ;;  %v6263_v42 = vsel %vm804_vm0, %v6261_v53, 0.0 }
 0xd0a   : > { %6264 = vadd.xlane.f32.xlu0 %v6263_v42 }
 0xd96   : > { %v6268_v50 = vpop.xlane.xlu1 %6267 }
 0xd97   : > { %v6270_v44 = vmul.f32 0.03125, %v6268_v50  ;;  %v6265_v12 = vpop.xlane.xlu0 %6264 }
 0xd98   : > { %v6269_v8 = vmul.f32 0.03125, %v6265_v12 }
 0xd99   : > { %v6272_v27 = vsub.f32 %v6262_v32, %v6270_v44 }
 0xd9a   : > { %v6271_v34 = vsub.f32 %v6261_v53, %v6269_v8 }
 0xd9b   : > { %v6274_v22 = vmul.f32 %v6272_v27, %v6272_v27 }
 0xd9c   : > { %v6273_v18 = vmul.f32 %v6271_v34, %v6271_v34 }
 0xd9d   : > { %v6278_v30 = vsel %vm804_vm0, %v6274_v22, 0.0 }
 0xd9e   : > { %v6275_v10 = vsel %vm804_vm0, %v6273_v18, 0.0 }
 0xd9f   : > { %6276 = vadd.xlane.f32.xlu0 %v6275_v10 }
 0xda3   : > { %6279 = vadd.xlane.f32.xlu0 %v6278_v30 }
 0xe2c   : > { %v6277_v46 = vpop.xlane.xlu0 %6276 }
 0xe2d   : > { %v6281_v33 = vmul.f32 0.03125, %v6277_v46 }
 0xe2f   : > { %v6283_v45 = vadd.f32 1e-05, %v6281_v33 }
 0xe30   : > { %v6280_v35 = vpop.xlane.xlu0 %6279 }
 0xe31   : > { %8425 = vrsqrt.f32 %v6283_v45  ;;  %v6282_v31 = vmul.f32 0.03125, %v6280_v35 }
 0xe33   : > { %v6284_v52 = vadd.f32 1e-05, %v6282_v31 }
 0xe35   : > { %8427 = vrsqrt.f32 %v6284_v52 }
 0xe3b   : > { %v8426_v9 = vpop.eup %8425 }
 0xe3c   : > { %v6287_v47 = vmul.f32 %v8426_v9, %v6271_v34 }
 0xe3e   : > { %v6296_v13 = vmul.f32 %v6605_v61, %v6287_v47 }
 0xe3f   : > { %v8428_v49 = vpop.eup %8427 }
 0xe40   : > { %v6305_v15 = vadd.f32 %v6606_v11, %v6296_v13  ;;  %v6288_v57 = vmul.f32 %v8428_v49, %v6272_v27 }
 0xe42   : > { %v6307_v25 = vsel %vm4075_vm9, 0.0, %v6305_v15  ;;  %v6297_v20 = vmul.f32 %v6605_v61, %v6288_v57 }
 0xe43   : > { %6309 = vst.msk [vmem:[%s780_s19] sm:$0xff] %vm804_vm0, %v6307_v25 }
 0xe44   : > { %v6306_v55 = vadd.f32 %v6606_v11, %v6297_v20 }
 0xe46   : > { %v6308_v58 = vsel %vm4076_vm8, 0.0, %v6306_v55 }
 0xe47   : > { %6310 = vst.msk [vmem:[%s780_s19 + $0x8] sm:$0xff] %vm804_vm0, %v6308_v58 }
 0xe48   : > { %8896 = shalt.err (!%p8893_p13)
}
 0xe49   : > { %s8897_s21 = scalar_lea.hbm %s10577_s27, 256  ;;  %s8901_s28 = scalar_lea.hbm %s10881_s6, 512 }
 0xe4a   : > { %p8898_p1 = scmp.ne.s32.totalorder %s10577_s27, %s8897_s21  ;;  %p8902_p0 = scmp.lt.u32.totalorder %s10577_s27, %s10881_s6 }
 0xe4b   : > { %p8903_p6 = scmp.lt.u32.totalorder %s8901_s28, %s8897_s21  ;;  %p8905_p4 = scmp.lt.u32.totalorder %s8897_s21, %s10577_s27 }
 0xe4c   : > { %p8899_p9 = pnand %p8898_p1, %p10883_p10 }
 0xe4d   : > { %p8904_p8 = por %p8903_p6, %p8902_p0 }
 0xe4e   : > { %p8900_p7 = pneg %p8899_p9 }
 0xe4f   : > { %p8906_p11 = por %p8905_p4, %p8904_p8 }
 0xe51   : > { %p8907_p3 = pnand %p8906_p11, %p8900_p7 }
 0xe53   : > { %8910 = shalt.err (!%p8907_p3)
}
 0xe54   : > { %s9015_s26 = smov 128   ;;  %s9016_s19 = smov 8  }
 0xe55   : > { %8261 = dma.vmem_to_hbm [thread:$0]  (%p10883_p10), %s10579_s2, 256, %s10577_s27, %s6312_s8, %s9015_s26, %s9015_s26, %s9016_s19  }
 0xe56 PF: > { %s10884_s25 = sld [smem:[#allocation41_spill]]  ;;  %s10885_s22 = sld [smem:[#allocation48_spill]] }
 0xe57   : > { %p10887_p2 = scmp.ge.s32.totalorder %s8985_s24, 2 }
 0xe5c   : > { %s6340_s15 = sand.u32 1, %s10884_s25   ;;  %p10886_p5 = scmp.ne.s32.totalorder %s10885_s22, 0 }
 0xe5d   : > { %s6341_s16 = scalar_lea.sflag [#allocation6], %s6340_s15 }
 0xe5e   : > { %p8314_p12 = pnand %p10887_p2, %p10886_p5 }
 0xe60   : > { %8968 = dma.done.wait (!%p8314_p12), %s6341_s16, 256  }
 0xe61   : > { %8970 = vsyncadd (!%p8314_p12), %s6341_s16, 4294967040  ;;  %s10888_s24 = sld [smem:[#allocation44_spill]]  ;;  %s10889_s21 = sld [smem:[#allocation42_spill]] }
 0xe62   : > { %s10890_s29 = sld [smem:[#allocation45_spill]]  ;;  %s10891_s22 = smov %s8981_s23 }
 0xe67   : > { %p36_p13 = scmp.ge.s32.totalorder %s10888_s24, 4  }
 0xe68   : > { %s10892_s23 = smov %s10890_s29 }
 0xe69   :  { %38 = sbr.rel (!%p36_p13) target bundleno = 27 (0x1b), region = 203 }
 0xe70   :  { %6346 = vsyncpa [#allocation5], 1 }
 0xe71   :  { %6348 = vsyncpa [#allocation5 + $0x1], 1 }
 0xe72   :  { %6349 = vsyncpa [#allocation8], 1 }
 0xe73   :  { %6350 = vsyncpa [#allocation13], 1 }
 0xe74   :  { %6351 = vsyncpa [#allocation16], 1 }
 0xe75   :  { %6352 = vsyncpa [#allocation19], 1 }
 0xe76   :  { %6353 = vsyncpa [#allocation22], 1 }
 0xe77   :  { %6354 = vsyncpa [#allocation25], 1 }
 0xe78   :  { %6355 = vsyncpa [#allocation28], 1 }
 0xe79   :  { %6356 = vsyncpa [#allocation6], 1 }
 0xe7a   :  { %6358 = vsyncpa [#allocation6 + $0x1], 1 }

</bundles_post_ra>
